<compile_context>
chip_gen: v7x
topology: tpu7x:2x2x1
jax: 0.10.0
libtpu: 0.0.40
codegen_flags: <defaults>
</compile_context>

<pallas_src>
import functools

import jax
import jax.numpy as jnp
from jax.experimental import pallas as pl
from jax.experimental.pallas import tpu as pltpu

ACT_DTYPE = jnp.bfloat16


def _round_up(x, m):
    return ((x + m - 1) // m) * m


def _resident_spec(shape):
    """Full-array block with a constant index map -> stays resident in VMEM."""
    return pl.BlockSpec(shape, lambda n: (0,) * len(shape))


# --------------------------------- kernel ----------------------------------- #

def _encoder_kernel(x_ref, w_in_ref, b_in_ref, wd_ref, bd_ref,
                    w1_ref, b1_ref, w2_ref, b2_ref, w_out_ref, b_out_ref,
                    o_ref, act_scr, lhs_scr, xin_scr,
                    *, l0, c_in, width, down_t, stride_t, dilations, halo):
    """Entire encoder for one batch sample, activation held in VMEM scratch.

    act_scr : (rows_act, W) f32   activation / residual carry (interior @ halo)
    lhs_scr : (rows_lhs, W) bf16  relu'd / cast matmul LHS with zero halos
    xin_scr : (l0 + 4, C_in) bf16 zero-haloed raw input for the k=3 input conv
    """
    f32 = jnp.float32
    s = stride_t
    pad_t = s // 2
    filt = 2 * s
    depth = len(dilations)
    max_dil = max(dilations) if dilations else 1

    # Front halos are only ever written with zeros -> zero once per grid step.
    act_scr[0:halo, :] = jnp.zeros((halo, width), f32)
    lhs_scr[0:halo, :] = jnp.zeros((halo, width), ACT_DTYPE)

    # ---------------- input conv (k=3, pad=1) + ReLU ------------------------
    xin_scr[0:2, :] = jnp.zeros((2, c_in), ACT_DTYPE)
    xin_scr[l0 + 2:l0 + 4, :] = jnp.zeros((2, c_in), ACT_DTYPE)
    xin_scr[2:l0 + 2, :] = x_ref[0]
    acc = jnp.dot(xin_scr[1:1 + l0, :], w_in_ref[0], preferred_element_type=f32)
    acc = acc + jnp.dot(xin_scr[2:2 + l0, :], w_in_ref[1],
                        preferred_element_type=f32)
    acc = acc + jnp.dot(xin_scr[3:3 + l0, :], w_in_ref[2],
                        preferred_element_type=f32)
    act_scr[halo:halo + l0, :] = jnp.maximum(acc + b_in_ref[...], 0.0)

    # ---------------- down_t fused stages -----------------------------------
    l_in = l0
    for st in range(down_t):
        l_mid = (l_in + 2 * pad_t - filt) // s + 1

        # zero only the rows past the live activation that the taps will read
        back_need = s * (l_mid + 1) - pad_t - l_in
        if back_need > 0:
            act_scr[halo + l_in:halo + l_in + back_need, :] = (
                jnp.zeros((back_need, width), f32))

        # strided conv (filter=2s, stride=s, pad=s//2): one strided phase load
        # per input phase, stride-1 slices of it feed the 2s taps
        acc = None
        for p in range(s):
            phase = act_scr[pl.ds(halo - pad_t + p, l_mid + 1, stride=s),
                            :].astype(ACT_DTYPE)
            for q in range(2):                       # tap j = q*s + p
                contrib = jnp.dot(phase[q:q + l_mid, :],
                                  wd_ref[st * filt + q * s + p],
                                  preferred_element_type=f32)
                acc = contrib if acc is None else acc + contrib
        act_scr[halo:halo + l_mid, :] = acc + bd_ref[st]

        # zero the bf16 LHS back halo once per stage (shared by every dilation)
        lhs_scr[halo + l_mid:halo + l_mid + max_dil, :] = (
            jnp.zeros((max_dil, width), ACT_DTYPE))

        # residual blocks: x += conv1x1(relu(conv3_dil(relu(x))))
        for blk, d in enumerate(dilations):
            widx = st * depth + blk
            res = act_scr[halo:halo + l_mid, :]
            # ReLU + bf16 cast hoisted: one write, three shifted tap reads
            lhs_scr[halo:halo + l_mid, :] = (
                jnp.maximum(res, 0.0).astype(ACT_DTYPE))
            h = jnp.dot(lhs_scr[halo - d:halo - d + l_mid, :],
                        w1_ref[widx * 3 + 0], preferred_element_type=f32)
            h = h + jnp.dot(lhs_scr[halo:halo + l_mid, :],
                            w1_ref[widx * 3 + 1], preferred_element_type=f32)
            h = h + jnp.dot(lhs_scr[halo + d:halo + d + l_mid, :],
                            w1_ref[widx * 3 + 2], preferred_element_type=f32)
            h = jnp.maximum(h + b1_ref[widx], 0.0).astype(ACT_DTYPE)
            out = jnp.dot(h, w2_ref[widx], preferred_element_type=f32)
            act_scr[halo:halo + l_mid, :] = out + b2_ref[widx] + res

        l_in = l_mid

    # ---------------- output conv (k=3, pad=1, linear) -----------------------
    l_fin = l_in
    lhs_scr[halo:halo + l_fin, :] = act_scr[halo:halo + l_fin, :].astype(ACT_DTYPE)
    lhs_scr[halo + l_fin:halo + l_fin + 1, :] = jnp.zeros((1, width), ACT_DTYPE)
    acc = jnp.dot(lhs_scr[halo - 1:halo - 1 + l_fin, :], w_out_ref[0],
                  preferred_element_type=f32)
    acc = acc + jnp.dot(lhs_scr[halo:halo + l_fin, :], w_out_ref[1],
                        preferred_element_type=f32)
    acc = acc + jnp.dot(lhs_scr[halo + 1:halo + 1 + l_fin, :], w_out_ref[2],
                        preferred_element_type=f32)
    o_ref[0, :, :] = (acc + b_out_ref[...]).astype(o_ref.dtype)


# -------------------------------- wrapper ------------------------------------ #

def encoder_forward(x_ncl, params, *, down_t, stride_t, depth, dilation_growth_rate):
    assert down_t >= 1
    n, c_in, l0 = x_ncl.shape
    w_in, b_in = params["in_conv"]
    width = w_in.shape[0]
    w_out, b_out = params["out_conv"]
    c_out = w_out.shape[0]

    s = stride_t
    pad_t = s // 2
    filt = 2 * s
    dilations = tuple([dilation_growth_rate ** d for d in range(depth)][::-1])
    max_dil = max(dilations) if dilations else 1

    halo = _round_up(max(max_dil, pad_t, 1), 16)      # aligned f32/bf16 interior

    # scratch row budgets
    rows_act = halo + l0
    rows_lhs = halo + 1
    l_in = l0
    stage_lmids = []
    for _ in range(down_t):
        l_mid = (l_in + 2 * pad_t - filt) // s + 1
        assert l_mid >= 1
        rows_act = max(rows_act, halo + s * (l_mid + 1) - pad_t)
        rows_lhs = max(rows_lhs, halo + l_mid + max_dil)
        stage_lmids.append(l_mid)
        l_in = l_mid
    l_final = l_in
    rows_lhs = max(rows_lhs, halo + l_final + 1)
    rows_act = _round_up(rows_act, 8)
    rows_lhs = _round_up(rows_lhs, 16)

    # ---- pack operands (channels-last, taps leading, stages/blocks stacked) ----
    x_nlc = jnp.transpose(x_ncl, (0, 2, 1)).astype(ACT_DTYPE)

    w_in_t = jnp.transpose(w_in, (2, 1, 0)).astype(ACT_DTYPE)           # (3, C_in, W)
    b_in_t = b_in.reshape(1, width).astype(jnp.float32)

    wd_l, bd_l, w1_l, b1_l, w2_l, b2_l = [], [], [], [], [], []
    for i in range(down_t):
        stg = params[f"stage_{i}"]
        wd, bd = stg["down"]
        wd_l.append(jnp.transpose(wd, (2, 1, 0)))                        # (2s, W, W)
        bd_l.append(bd)
        for j in range(depth):
            w1, b1 = stg[f"res{j}_conv1"]
            w2, b2 = stg[f"res{j}_conv2"]
            w1_l.append(jnp.transpose(w1, (2, 1, 0)))                    # (3, W, W)
            b1_l.append(b1)
            w2_l.append(jnp.transpose(w2[:, :, 0], (1, 0)))              # (W, W)
            b2_l.append(b2)
    wd_all = jnp.concatenate(wd_l, 0).astype(ACT_DTYPE)                  # (down_t*2s, W, W)
    bd_all = jnp.stack(bd_l).astype(jnp.float32)                         # (down_t, W)
    w1_all = jnp.concatenate(w1_l, 0).astype(ACT_DTYPE)                  # (down_t*depth*3, W, W)
    b1_all = jnp.stack(b1_l).astype(jnp.float32)                         # (down_t*depth, W)
    w2_all = jnp.stack(w2_l).astype(ACT_DTYPE)                           # (down_t*depth, W, W)
    b2_all = jnp.stack(b2_l).astype(jnp.float32)                         # (down_t*depth, W)

    w_out_t = jnp.transpose(w_out, (2, 1, 0)).astype(ACT_DTYPE)          # (3, W, C_out)
    b_out_t = b_out.reshape(1, c_out).astype(jnp.float32)

    operands = [x_nlc, w_in_t, b_in_t, wd_all, bd_all,
                w1_all, b1_all, w2_all, b2_all, w_out_t, b_out_t]
    in_specs = [pl.BlockSpec((1, l0, c_in), lambda nn: (nn, 0, 0))]
    in_specs += [_resident_spec(op.shape) for op in operands[1:]]

    # rough roofline hints for the XLA scheduler
    flops = 2 * n * l0 * 3 * c_in * width
    for lm in stage_lmids:
        flops += 2 * n * lm * width * (filt * width + depth * 4 * width)
    flops += 2 * n * l_final * 3 * width * c_out
    bytes_acc = int(x_nlc.size * 2 + n * l_final * c_out * 4
                    + sum(int(op.size) * op.dtype.itemsize for op in operands[1:]))

    out_nlc = pl.pallas_call(
        functools.partial(_encoder_kernel, l0=l0, c_in=c_in, width=width,
                          down_t=down_t, stride_t=s, dilations=dilations,
                          halo=halo),
        out_shape=jax.ShapeDtypeStruct((n, l_final, c_out), jnp.float32),
        grid=(n,),
        in_specs=in_specs,
        out_specs=pl.BlockSpec((1, l_final, c_out), lambda nn: (nn, 0, 0)),
        scratch_shapes=[pltpu.VMEM((rows_act, width), jnp.float32),
                        pltpu.VMEM((rows_lhs, width), ACT_DTYPE),
                        pltpu.VMEM((l0 + 4, c_in), ACT_DTYPE)],
        compiler_params=pltpu.CompilerParams(dimension_semantics=("parallel",)),
        cost_estimate=pl.CostEstimate(flops=int(flops), transcendentals=0,
                                      bytes_accessed=bytes_acc),
    )(*operands)

    return jnp.transpose(out_nlc, (0, 2, 1))          # NLC -> NCL, f32


# ------------------------------- parameters ---------------------------------- #

def init_encoder_params(key, *, input_emb_width, output_emb_width, down_t,
                        stride_t, width, depth, dilation_growth_rate):
    """PyTorch-style (uniform +-1/sqrt(fan_in)) conv parameter init."""
    def conv_p(k, c_out, c_in, ksize):
        k1, k2 = jax.random.split(k)
        scale = 1.0 / jnp.sqrt(float(c_in * ksize))
        w = jax.random.uniform(k1, (c_out, c_in, ksize), jnp.float32, -scale, scale)
        b = jax.random.uniform(k2, (c_out,), jnp.float32, -scale, scale)
        return w, b

    n_convs = 2 + down_t * (1 + 2 * depth)
    keys = jax.random.split(key, n_convs)
    ki = iter(range(n_convs))

    filter_t = stride_t * 2
    params = {"in_conv": conv_p(keys[next(ki)], width, input_emb_width, 3)}
    for i in range(down_t):
        stage = {"down": conv_p(keys[next(ki)], width, width, filter_t)}
        for j in range(depth):
            stage[f"res{j}_conv1"] = conv_p(keys[next(ki)], width, width, 3)
            stage[f"res{j}_conv2"] = conv_p(keys[next(ki)], width, width, 1)
        params[f"stage_{i}"] = stage
    params["out_conv"] = conv_p(keys[next(ki)], output_emb_width, width, 3)
    return params


# ---------------------------- pure-JAX reference ------------------------------ #

def _conv1d_ref(x_nlc, weight, bias, *, stride=1, padding=0, dilation=1):
    N, L, C_in = x_nlc.shape
    C_out, _, K = weight.shape
    xp = jnp.pad(x_nlc, ((0, 0), (padding, padding), (0, 0)))
    L_out = (L + 2 * padding - dilation * (K - 1) - 1) // stride + 1
    out = jnp.zeros((N, L_out, C_out), jnp.float32) + bias
    for j in range(K):
        xs = xp[:, j * dilation: j * dilation + stride * (L_out - 1) + 1: stride, :]
        out = out + jnp.einsum('nlc,cd->nld', xs, weight[:, :, j].T)
    return out


def encoder_ref(x_ncl, params, *, down_t, stride_t, depth, dilation_growth_rate):
    x = jnp.transpose(x_ncl, (0, 2, 1))
    w, b = params["in_conv"]
    x = jax.nn.relu(_conv1d_ref(x, w, b, padding=1))
    dilations = [dilation_growth_rate ** d for d in range(depth)][::-1]
    for i in range(down_t):
        st = params[f"stage_{i}"]
        w, b = st["down"]
        x = _conv1d_ref(x, w, b, stride=stride_t, padding=stride_t // 2)
        for j, d in enumerate(dilations):
            w1, b1 = st[f"res{j}_conv1"]
            w2, b2 = st[f"res{j}_conv2"]
            h = _conv1d_ref(jax.nn.relu(x), w1, b1, padding=d, dilation=d)
            h = _conv1d_ref(jax.nn.relu(h), w2, b2)
            x = x + h
    w, b = params["out_conv"]
    x = _conv1d_ref(x, w, b, padding=1)
    return jnp.transpose(x, (0, 2, 1))


# ----------------------------------- main ------------------------------------- #

if __name__ == "__main__":
    # small demo config; width a multiple of 128 so channel lanes are dense
    cfg = dict(input_emb_width=4, output_emb_width=128, down_t=2, stride_t=2,
               width=128, depth=2, dilation_growth_rate=3)
    N, C_in, L = 4, cfg["input_emb_width"], 32

    key = jax.random.PRNGKey(0)
    kx, kp = jax.random.split(key)
    x = jax.random.normal(kx, (N, C_in, L), jnp.float32)   # NCL, like PyTorch

    params = init_encoder_params(kp, **cfg)

    run_kw = dict(down_t=cfg["down_t"], stride_t=cfg["stride_t"],
                  depth=cfg["depth"], dilation_growth_rate=cfg["dilation_growth_rate"])
    fwd = jax.jit(functools.partial(encoder_forward, **run_kw))

    out = fwd(x, params)
    jax.block_until_ready(out)

    expected_L = L // (cfg["stride_t"] ** cfg["down_t"])
    assert out.shape == (N, cfg["output_emb_width"], expected_L), out.shape
    assert bool(jnp.all(jnp.isfinite(out)))

    # loose check vs f32 reference (kernel runs weights/matmul LHS in bf16,
    # residual carry and accumulation in f32)
    ref = encoder_ref(x, params, **run_kw)
    rel_err = float(jnp.max(jnp.abs(out - ref)) / (jnp.max(jnp.abs(ref)) + 1e-6))
    assert rel_err < 0.15, rel_err

    print("KERNEL_OK")
</pallas_src>

<mosaic_0001>
module attributes {stable_mosaic.version = 11 : i64} {
  func.func @_encoder_kernel(%arg0: i32, %arg1: memref<1x32x4xbf16, #tpu.memory_space<vmem>>, %arg2: memref<3x4x128xbf16, #tpu.memory_space<vmem>>, %arg3: memref<1x128xf32, #tpu.memory_space<vmem>>, %arg4: memref<8x128x128xbf16, #tpu.memory_space<vmem>>, %arg5: memref<2x128xf32, #tpu.memory_space<vmem>>, %arg6: memref<12x128x128xbf16, #tpu.memory_space<vmem>>, %arg7: memref<4x128xf32, #tpu.memory_space<vmem>>, %arg8: memref<4x128x128xbf16, #tpu.memory_space<vmem>>, %arg9: memref<4x128xf32, #tpu.memory_space<vmem>>, %arg10: memref<3x128x128xbf16, #tpu.memory_space<vmem>>, %arg11: memref<1x128xf32, #tpu.memory_space<vmem>>, %arg12: memref<1x8x128xf32, #tpu.memory_space<vmem>>, %arg13: memref<56x128xf32, #tpu.memory_space<vmem>>, %arg14: memref<48x128xbf16, #tpu.memory_space<vmem>>, %arg15: memref<36x4xbf16, #tpu.memory_space<vmem>>) attributes {dimension_semantics = [#tpu.dimension_semantics<parallel>], iteration_bounds = array<i64: 4>, scalar_prefetch = 0 : i64, scratch_operands = 3 : i64, tpu.core_type = #tpu.core_type<tc>, window_params = [{transform_indices = @transform_0, window_bounds = array<i64: 1, 32, 4>}, {pipeline_mode = #tpu.pipeline_mode<synchronous>, transform_indices = @transform_1, window_bounds = array<i64: 3, 4, 128>}, {pipeline_mode = #tpu.pipeline_mode<synchronous>, transform_indices = @transform_2, window_bounds = array<i64: 1, 128>}, {pipeline_mode = #tpu.pipeline_mode<synchronous>, transform_indices = @transform_3, window_bounds = array<i64: 8, 128, 128>}, {pipeline_mode = #tpu.pipeline_mode<synchronous>, transform_indices = @transform_4, window_bounds = array<i64: 2, 128>}, {pipeline_mode = #tpu.pipeline_mode<synchronous>, transform_indices = @transform_5, window_bounds = array<i64: 12, 128, 128>}, {pipeline_mode = #tpu.pipeline_mode<synchronous>, transform_indices = @transform_6, window_bounds = array<i64: 4, 128>}, {pipeline_mode = #tpu.pipeline_mode<synchronous>, transform_indices = @transform_7, window_bounds = array<i64: 4, 128, 128>}, {pipeline_mode = #tpu.pipeline_mode<synchronous>, transform_indices = @transform_8, window_bounds = array<i64: 4, 128>}, {pipeline_mode = #tpu.pipeline_mode<synchronous>, transform_indices = @transform_9, window_bounds = array<i64: 3, 128, 128>}, {pipeline_mode = #tpu.pipeline_mode<synchronous>, transform_indices = @transform_10, window_bounds = array<i64: 1, 128>}, {transform_indices = @transform_11, window_bounds = array<i64: 1, 8, 128>}]} {
    %cst = arith.constant 0.000000e+00 : f32
    %0 = vector.broadcast %cst : f32 to vector<16x128xf32>
    %c0 = arith.constant 0 : index
    %c0_0 = arith.constant 0 : index
    %1 = vector.load %arg13[%c0, %c0_0] : memref<56x128xf32, #tpu.memory_space<vmem>>, vector<16x128xf32>
    tpu.vector_store %arg13[%c0, %c0_0], %0 {strides = array<i32>} : memref<56x128xf32, #tpu.memory_space<vmem>>, vector<16x128xf32>,
    %cst_1 = arith.constant 0.000000e+00 : bf16
    %2 = vector.broadcast %cst_1 : bf16 to vector<16x128xbf16>
    %c0_2 = arith.constant 0 : index
    %c0_3 = arith.constant 0 : index
    %3 = vector.load %arg14[%c0_2, %c0_3] : memref<48x128xbf16, #tpu.memory_space<vmem>>, vector<16x128xbf16>
    tpu.vector_store %arg14[%c0_2, %c0_3], %2 {strides = array<i32>} : memref<48x128xbf16, #tpu.memory_space<vmem>>, vector<16x128xbf16>,
    %cst_4 = arith.constant 0.000000e+00 : bf16
    %4 = vector.broadcast %cst_4 : bf16 to vector<2x4xbf16>
    %c0_5 = arith.constant 0 : index
    %c0_6 = arith.constant 0 : index
    %5 = vector.load %arg15[%c0_5, %c0_6] : memref<36x4xbf16, #tpu.memory_space<vmem>>, vector<2x4xbf16>
    tpu.vector_store %arg15[%c0_5, %c0_6], %4 {strides = array<i32>} : memref<36x4xbf16, #tpu.memory_space<vmem>>, vector<2x4xbf16>,
    %cst_7 = arith.constant 0.000000e+00 : bf16
    %6 = vector.broadcast %cst_7 : bf16 to vector<2x4xbf16>
    %c34 = arith.constant 34 : index
    %c0_8 = arith.constant 0 : index
    %7 = vector.load %arg15[%c34, %c0_8] : memref<36x4xbf16, #tpu.memory_space<vmem>>, vector<2x4xbf16>
    tpu.vector_store %arg15[%c34, %c0_8], %6 {strides = array<i32>} : memref<36x4xbf16, #tpu.memory_space<vmem>>, vector<2x4xbf16>,
    %c0_9 = arith.constant 0 : index
    %c0_10 = arith.constant 0 : index
    %c0_11 = arith.constant 0 : index
    %8 = vector.load %arg1[%c0_9, %c0_10, %c0_11] : memref<1x32x4xbf16, #tpu.memory_space<vmem>>, vector<1x32x4xbf16>
    %9 = vector.shape_cast %8 : vector<1x32x4xbf16> to vector<32x4xbf16>
    %c2 = arith.constant 2 : index
    %c0_12 = arith.constant 0 : index
    %10 = vector.load %arg15[%c2, %c0_12] : memref<36x4xbf16, #tpu.memory_space<vmem>>, vector<32x4xbf16>
    tpu.vector_store %arg15[%c2, %c0_12], %9 {strides = array<i32>} : memref<36x4xbf16, #tpu.memory_space<vmem>>, vector<32x4xbf16>,
    %c1 = arith.constant 1 : index
    %c0_13 = arith.constant 0 : index
    %11 = vector.load %arg15[%c1, %c0_13] : memref<36x4xbf16, #tpu.memory_space<vmem>>, vector<32x4xbf16>
    %c0_14 = arith.constant 0 : index
    %c0_15 = arith.constant 0 : index
    %c0_16 = arith.constant 0 : index
    %12 = vector.load %arg2[%c0_14, %c0_15, %c0_16] : memref<3x4x128xbf16, #tpu.memory_space<vmem>>, vector<1x4x128xbf16>
    %13 = vector.shape_cast %12 : vector<1x4x128xbf16> to vector<4x128xbf16>
    %cst_17 = arith.constant dense<0.000000e+00> : vector<32x128xf32>
    %14 = tpu.matmul %11, %13, %cst_17 {dimension_numbers = #tpu.dot_dimension_numbers<[1], [0], [0], [1], [0, 0, 1, 1], [], []>} : vector<32x4xbf16>, vector<4x128xbf16>, vector<32x128xf32> -> vector<32x128xf32>
    %c2_18 = arith.constant 2 : index
    %c0_19 = arith.constant 0 : index
    %15 = vector.load %arg15[%c2_18, %c0_19] : memref<36x4xbf16, #tpu.memory_space<vmem>>, vector<32x4xbf16>
    %c1_20 = arith.constant 1 : index
    %c0_21 = arith.constant 0 : index
    %c0_22 = arith.constant 0 : index
    %16 = vector.load %arg2[%c1_20, %c0_21, %c0_22] : memref<3x4x128xbf16, #tpu.memory_space<vmem>>, vector<1x4x128xbf16>
    %17 = vector.shape_cast %16 : vector<1x4x128xbf16> to vector<4x128xbf16>
    %cst_23 = arith.constant dense<0.000000e+00> : vector<32x128xf32>
    %18 = tpu.matmul %15, %17, %cst_23 {dimension_numbers = #tpu.dot_dimension_numbers<[1], [0], [0], [1], [0, 0, 1, 1], [], []>} : vector<32x4xbf16>, vector<4x128xbf16>, vector<32x128xf32> -> vector<32x128xf32>
    %19 = arith.addf %14, %18 : vector<32x128xf32>
    %c3 = arith.constant 3 : index
    %c0_24 = arith.constant 0 : index
    %20 = vector.load %arg15[%c3, %c0_24] : memref<36x4xbf16, #tpu.memory_space<vmem>>, vector<32x4xbf16>
    %c2_25 = arith.constant 2 : index
    %c0_26 = arith.constant 0 : index
    %c0_27 = arith.constant 0 : index
    %21 = vector.load %arg2[%c2_25, %c0_26, %c0_27] : memref<3x4x128xbf16, #tpu.memory_space<vmem>>, vector<1x4x128xbf16>
    %22 = vector.shape_cast %21 : vector<1x4x128xbf16> to vector<4x128xbf16>
    %cst_28 = arith.constant dense<0.000000e+00> : vector<32x128xf32>
    %23 = tpu.matmul %20, %22, %cst_28 {dimension_numbers = #tpu.dot_dimension_numbers<[1], [0], [0], [1], [0, 0, 1, 1], [], []>} : vector<32x4xbf16>, vector<4x128xbf16>, vector<32x128xf32> -> vector<32x128xf32>
    %24 = arith.addf %19, %23 : vector<32x128xf32>
    %c0_29 = arith.constant 0 : index
    %c0_30 = arith.constant 0 : index
    %25 = vector.load %arg3[%c0_29, %c0_30] : memref<1x128xf32, #tpu.memory_space<vmem>>, vector<1x128xf32>
    %26 = vector.broadcast %25 : vector<1x128xf32> to vector<32x128xf32>
    %27 = arith.addf %24, %26 : vector<32x128xf32>
    %cst_31 = arith.constant 0.000000e+00 : f32
    %28 = vector.broadcast %cst_31 : f32 to vector<32x128xf32>
    %29 = arith.maximumf %27, %28 : vector<32x128xf32>
    %c16 = arith.constant 16 : index
    %c0_32 = arith.constant 0 : index
    %30 = vector.load %arg13[%c16, %c0_32] : memref<56x128xf32, #tpu.memory_space<vmem>>, vector<32x128xf32>
    tpu.vector_store %arg13[%c16, %c0_32], %29 {strides = array<i32>} : memref<56x128xf32, #tpu.memory_space<vmem>>, vector<32x128xf32>,
    %cst_33 = arith.constant 0.000000e+00 : f32
    %31 = vector.broadcast %cst_33 : f32 to vector<1x128xf32>
    %c48 = arith.constant 48 : index
    %c0_34 = arith.constant 0 : index
    %32 = vector.load %arg13[%c48, %c0_34] : memref<56x128xf32, #tpu.memory_space<vmem>>, vector<1x128xf32>
    tpu.vector_store %arg13[%c48, %c0_34], %31 {strides = array<i32>} : memref<56x128xf32, #tpu.memory_space<vmem>>, vector<1x128xf32>,
    %c15 = arith.constant 15 : index
    %c0_35 = arith.constant 0 : index
    %33 = tpu.strided_load %arg13[%c15, %c0_35] {strides = array<i32: 2, 1>} : memref<56x128xf32, #tpu.memory_space<vmem>>, vector<17x128xf32>
    %34 = arith.truncf %33 : vector<17x128xf32> to vector<17x128xbf16>
    %35 = vector.extract_strided_slice %34 {offsets = [0, 0], sizes = [16, 128], strides = [1, 1]} : vector<17x128xbf16> to vector<16x128xbf16>
    %c0_36 = arith.constant 0 : index
    %c0_37 = arith.constant 0 : index
    %c0_38 = arith.constant 0 : index
    %36 = vector.load %arg4[%c0_36, %c0_37, %c0_38] : memref<8x128x128xbf16, #tpu.memory_space<vmem>>, vector<1x128x128xbf16>
    %37 = vector.shape_cast %36 : vector<1x128x128xbf16> to vector<128x128xbf16>
    %cst_39 = arith.constant dense<0.000000e+00> : vector<16x128xf32>
    %38 = tpu.matmul %35, %37, %cst_39 {dimension_numbers = #tpu.dot_dimension_numbers<[1], [0], [0], [1], [0, 0, 1, 1], [], []>} : vector<16x128xbf16>, vector<128x128xbf16>, vector<16x128xf32> -> vector<16x128xf32>
    %39 = vector.extract_strided_slice %34 {offsets = [1, 0], sizes = [16, 128], strides = [1, 1]} : vector<17x128xbf16> to vector<16x128xbf16>
    %c2_40 = arith.constant 2 : index
    %c0_41 = arith.constant 0 : index
    %c0_42 = arith.constant 0 : index
    %40 = vector.load %arg4[%c2_40, %c0_41, %c0_42] : memref<8x128x128xbf16, #tpu.memory_space<vmem>>, vector<1x128x128xbf16>
    %41 = vector.shape_cast %40 : vector<1x128x128xbf16> to vector<128x128xbf16>
    %cst_43 = arith.constant dense<0.000000e+00> : vector<16x128xf32>
    %42 = tpu.matmul %39, %41, %cst_43 {dimension_numbers = #tpu.dot_dimension_numbers<[1], [0], [0], [1], [0, 0, 1, 1], [], []>} : vector<16x128xbf16>, vector<128x128xbf16>, vector<16x128xf32> -> vector<16x128xf32>
    %43 = arith.addf %38, %42 : vector<16x128xf32>
    %c16_44 = arith.constant 16 : index
    %c0_45 = arith.constant 0 : index
    %44 = tpu.strided_load %arg13[%c16_44, %c0_45] {strides = array<i32: 2, 1>} : memref<56x128xf32, #tpu.memory_space<vmem>>, vector<17x128xf32>
    %45 = arith.truncf %44 : vector<17x128xf32> to vector<17x128xbf16>
    %46 = vector.extract_strided_slice %45 {offsets = [0, 0], sizes = [16, 128], strides = [1, 1]} : vector<17x128xbf16> to vector<16x128xbf16>
    %c1_46 = arith.constant 1 : index
    %c0_47 = arith.constant 0 : index
    %c0_48 = arith.constant 0 : index
    %47 = vector.load %arg4[%c1_46, %c0_47, %c0_48] : memref<8x128x128xbf16, #tpu.memory_space<vmem>>, vector<1x128x128xbf16>
    %48 = vector.shape_cast %47 : vector<1x128x128xbf16> to vector<128x128xbf16>
    %cst_49 = arith.constant dense<0.000000e+00> : vector<16x128xf32>
    %49 = tpu.matmul %46, %48, %cst_49 {dimension_numbers = #tpu.dot_dimension_numbers<[1], [0], [0], [1], [0, 0, 1, 1], [], []>} : vector<16x128xbf16>, vector<128x128xbf16>, vector<16x128xf32> -> vector<16x128xf32>
    %50 = arith.addf %43, %49 : vector<16x128xf32>
    %51 = vector.extract_strided_slice %45 {offsets = [1, 0], sizes = [16, 128], strides = [1, 1]} : vector<17x128xbf16> to vector<16x128xbf16>
    %c3_50 = arith.constant 3 : index
    %c0_51 = arith.constant 0 : index
    %c0_52 = arith.constant 0 : index
    %52 = vector.load %arg4[%c3_50, %c0_51, %c0_52] : memref<8x128x128xbf16, #tpu.memory_space<vmem>>, vector<1x128x128xbf16>
    %53 = vector.shape_cast %52 : vector<1x128x128xbf16> to vector<128x128xbf16>
    %cst_53 = arith.constant dense<0.000000e+00> : vector<16x128xf32>
    %54 = tpu.matmul %51, %53, %cst_53 {dimension_numbers = #tpu.dot_dimension_numbers<[1], [0], [0], [1], [0, 0, 1, 1], [], []>} : vector<16x128xbf16>, vector<128x128xbf16>, vector<16x128xf32> -> vector<16x128xf32>
    %55 = arith.addf %50, %54 : vector<16x128xf32>
    %c0_54 = arith.constant 0 : index
    %c0_55 = arith.constant 0 : index
    %56 = vector.load %arg5[%c0_54, %c0_55] : memref<2x128xf32, #tpu.memory_space<vmem>>, vector<1x128xf32>
    %57 = vector.shape_cast %56 : vector<1x128xf32> to vector<128xf32>
    %58 = vector.shape_cast %57 : vector<128xf32> to vector<1x128xf32>
    %59 = vector.broadcast %58 : vector<1x128xf32> to vector<16x128xf32>
    %60 = arith.addf %55, %59 : vector<16x128xf32>
    %c16_56 = arith.constant 16 : index
    %c0_57 = arith.constant 0 : index
    %61 = vector.load %arg13[%c16_56, %c0_57] : memref<56x128xf32, #tpu.memory_space<vmem>>, vector<16x128xf32>
    tpu.vector_store %arg13[%c16_56, %c0_57], %60 {strides = array<i32>} : memref<56x128xf32, #tpu.memory_space<vmem>>, vector<16x128xf32>,
    %cst_58 = arith.constant 0.000000e+00 : bf16
    %62 = vector.broadcast %cst_58 : bf16 to vector<3x128xbf16>
    %c32 = arith.constant 32 : index
    %c0_59 = arith.constant 0 : index
    %63 = vector.load %arg14[%c32, %c0_59] : memref<48x128xbf16, #tpu.memory_space<vmem>>, vector<3x128xbf16>
    tpu.vector_store %arg14[%c32, %c0_59], %62 {strides = array<i32>} : memref<48x128xbf16, #tpu.memory_space<vmem>>, vector<3x128xbf16>,
    %c16_60 = arith.constant 16 : index
    %c0_61 = arith.constant 0 : index
    %64 = vector.load %arg13[%c16_60, %c0_61] : memref<56x128xf32, #tpu.memory_space<vmem>>, vector<16x128xf32>
    %cst_62 = arith.constant 0.000000e+00 : f32
    %65 = vector.broadcast %cst_62 : f32 to vector<16x128xf32>
    %66 = arith.maximumf %64, %65 : vector<16x128xf32>
    %67 = arith.truncf %66 : vector<16x128xf32> to vector<16x128xbf16>
    %c16_63 = arith.constant 16 : index
    %c0_64 = arith.constant 0 : index
    %68 = vector.load %arg14[%c16_63, %c0_64] : memref<48x128xbf16, #tpu.memory_space<vmem>>, vector<16x128xbf16>
    tpu.vector_store %arg14[%c16_63, %c0_64], %67 {strides = array<i32>} : memref<48x128xbf16, #tpu.memory_space<vmem>>, vector<16x128xbf16>,
    %c13 = arith.constant 13 : index
    %c0_65 = arith.constant 0 : index
    %69 = vector.load %arg14[%c13, %c0_65] : memref<48x128xbf16, #tpu.memory_space<vmem>>, vector<16x128xbf16>
    %c0_66 = arith.constant 0 : index
    %c0_67 = arith.constant 0 : index
    %c0_68 = arith.constant 0 : index
    %70 = vector.load %arg6[%c0_66, %c0_67, %c0_68] : memref<12x128x128xbf16, #tpu.memory_space<vmem>>, vector<1x128x128xbf16>
    %71 = vector.shape_cast %70 : vector<1x128x128xbf16> to vector<128x128xbf16>
    %cst_69 = arith.constant dense<0.000000e+00> : vector<16x128xf32>
    %72 = tpu.matmul %69, %71, %cst_69 {dimension_numbers = #tpu.dot_dimension_numbers<[1], [0], [0], [1], [0, 0, 1, 1], [], []>} : vector<16x128xbf16>, vector<128x128xbf16>, vector<16x128xf32> -> vector<16x128xf32>
    %c16_70 = arith.constant 16 : index
    %c0_71 = arith.constant 0 : index
    %73 = vector.load %arg14[%c16_70, %c0_71] : memref<48x128xbf16, #tpu.memory_space<vmem>>, vector<16x128xbf16>
    %c1_72 = arith.constant 1 : index
    %c0_73 = arith.constant 0 : index
    %c0_74 = arith.constant 0 : index
    %74 = vector.load %arg6[%c1_72, %c0_73, %c0_74] : memref<12x128x128xbf16, #tpu.memory_space<vmem>>, vector<1x128x128xbf16>
    %75 = vector.shape_cast %74 : vector<1x128x128xbf16> to vector<128x128xbf16>
    %cst_75 = arith.constant dense<0.000000e+00> : vector<16x128xf32>
    %76 = tpu.matmul %73, %75, %cst_75 {dimension_numbers = #tpu.dot_dimension_numbers<[1], [0], [0], [1], [0, 0, 1, 1], [], []>} : vector<16x128xbf16>, vector<128x128xbf16>, vector<16x128xf32> -> vector<16x128xf32>
    %77 = arith.addf %72, %76 : vector<16x128xf32>
    %c19 = arith.constant 19 : index
    %c0_76 = arith.constant 0 : index
    %78 = vector.load %arg14[%c19, %c0_76] : memref<48x128xbf16, #tpu.memory_space<vmem>>, vector<16x128xbf16>
    %c2_77 = arith.constant 2 : index
    %c0_78 = arith.constant 0 : index
    %c0_79 = arith.constant 0 : index
    %79 = vector.load %arg6[%c2_77, %c0_78, %c0_79] : memref<12x128x128xbf16, #tpu.memory_space<vmem>>, vector<1x128x128xbf16>
    %80 = vector.shape_cast %79 : vector<1x128x128xbf16> to vector<128x128xbf16>
    %cst_80 = arith.constant dense<0.000000e+00> : vector<16x128xf32>
    %81 = tpu.matmul %78, %80, %cst_80 {dimension_numbers = #tpu.dot_dimension_numbers<[1], [0], [0], [1], [0, 0, 1, 1], [], []>} : vector<16x128xbf16>, vector<128x128xbf16>, vector<16x128xf32> -> vector<16x128xf32>
    %82 = arith.addf %77, %81 : vector<16x128xf32>
    %c0_81 = arith.constant 0 : index
    %c0_82 = arith.constant 0 : index
    %83 = vector.load %arg7[%c0_81, %c0_82] : memref<4x128xf32, #tpu.memory_space<vmem>>, vector<1x128xf32>
    %84 = vector.shape_cast %83 : vector<1x128xf32> to vector<128xf32>
    %85 = vector.shape_cast %84 : vector<128xf32> to vector<1x128xf32>
    %86 = vector.broadcast %85 : vector<1x128xf32> to vector<16x128xf32>
    %87 = arith.addf %82, %86 : vector<16x128xf32>
    %cst_83 = arith.constant 0.000000e+00 : f32
    %88 = vector.broadcast %cst_83 : f32 to vector<16x128xf32>
    %89 = arith.maximumf %87, %88 : vector<16x128xf32>
    %90 = arith.truncf %89 : vector<16x128xf32> to vector<16x128xbf16>
    %c0_84 = arith.constant 0 : index
    %c0_85 = arith.constant 0 : index
    %c0_86 = arith.constant 0 : index
    %91 = vector.load %arg8[%c0_84, %c0_85, %c0_86] : memref<4x128x128xbf16, #tpu.memory_space<vmem>>, vector<1x128x128xbf16>
    %92 = vector.shape_cast %91 : vector<1x128x128xbf16> to vector<128x128xbf16>
    %cst_87 = arith.constant dense<0.000000e+00> : vector<16x128xf32>
    %93 = tpu.matmul %90, %92, %cst_87 {dimension_numbers = #tpu.dot_dimension_numbers<[1], [0], [0], [1], [0, 0, 1, 1], [], []>} : vector<16x128xbf16>, vector<128x128xbf16>, vector<16x128xf32> -> vector<16x128xf32>
    %c0_88 = arith.constant 0 : index
    %c0_89 = arith.constant 0 : index
    %94 = vector.load %arg9[%c0_88, %c0_89] : memref<4x128xf32, #tpu.memory_space<vmem>>, vector<1x128xf32>
    %95 = vector.shape_cast %94 : vector<1x128xf32> to vector<128xf32>
    %96 = vector.shape_cast %95 : vector<128xf32> to vector<1x128xf32>
    %97 = vector.broadcast %96 : vector<1x128xf32> to vector<16x128xf32>
    %98 = arith.addf %93, %97 : vector<16x128xf32>
    %99 = arith.addf %98, %64 : vector<16x128xf32>
    %c16_90 = arith.constant 16 : index
    %c0_91 = arith.constant 0 : index
    %100 = vector.load %arg13[%c16_90, %c0_91] : memref<56x128xf32, #tpu.memory_space<vmem>>, vector<16x128xf32>
    tpu.vector_store %arg13[%c16_90, %c0_91], %99 {strides = array<i32>} : memref<56x128xf32, #tpu.memory_space<vmem>>, vector<16x128xf32>,
    %c16_92 = arith.constant 16 : index
    %c0_93 = arith.constant 0 : index
    %101 = vector.load %arg13[%c16_92, %c0_93] : memref<56x128xf32, #tpu.memory_space<vmem>>, vector<16x128xf32>
    %cst_94 = arith.constant 0.000000e+00 : f32
    %102 = vector.broadcast %cst_94 : f32 to vector<16x128xf32>
    %103 = arith.maximumf %101, %102 : vector<16x128xf32>
    %104 = arith.truncf %103 : vector<16x128xf32> to vector<16x128xbf16>
    %c16_95 = arith.constant 16 : index
    %c0_96 = arith.constant 0 : index
    %105 = vector.load %arg14[%c16_95, %c0_96] : memref<48x128xbf16, #tpu.memory_space<vmem>>, vector<16x128xbf16>
    tpu.vector_store %arg14[%c16_95, %c0_96], %104 {strides = array<i32>} : memref<48x128xbf16, #tpu.memory_space<vmem>>, vector<16x128xbf16>,
    %c15_97 = arith.constant 15 : index
    %c0_98 = arith.constant 0 : index
    %106 = vector.load %arg14[%c15_97, %c0_98] : memref<48x128xbf16, #tpu.memory_space<vmem>>, vector<16x128xbf16>
    %c3_99 = arith.constant 3 : index
    %c0_100 = arith.constant 0 : index
    %c0_101 = arith.constant 0 : index
    %107 = vector.load %arg6[%c3_99, %c0_100, %c0_101] : memref<12x128x128xbf16, #tpu.memory_space<vmem>>, vector<1x128x128xbf16>
    %108 = vector.shape_cast %107 : vector<1x128x128xbf16> to vector<128x128xbf16>
    %cst_102 = arith.constant dense<0.000000e+00> : vector<16x128xf32>
    %109 = tpu.matmul %106, %108, %cst_102 {dimension_numbers = #tpu.dot_dimension_numbers<[1], [0], [0], [1], [0, 0, 1, 1], [], []>} : vector<16x128xbf16>, vector<128x128xbf16>, vector<16x128xf32> -> vector<16x128xf32>
    %c16_103 = arith.constant 16 : index
    %c0_104 = arith.constant 0 : index
    %110 = vector.load %arg14[%c16_103, %c0_104] : memref<48x128xbf16, #tpu.memory_space<vmem>>, vector<16x128xbf16>
    %c4 = arith.constant 4 : index
    %c0_105 = arith.constant 0 : index
    %c0_106 = arith.constant 0 : index
    %111 = vector.load %arg6[%c4, %c0_105, %c0_106] : memref<12x128x128xbf16, #tpu.memory_space<vmem>>, vector<1x128x128xbf16>
    %112 = vector.shape_cast %111 : vector<1x128x128xbf16> to vector<128x128xbf16>
    %cst_107 = arith.constant dense<0.000000e+00> : vector<16x128xf32>
    %113 = tpu.matmul %110, %112, %cst_107 {dimension_numbers = #tpu.dot_dimension_numbers<[1], [0], [0], [1], [0, 0, 1, 1], [], []>} : vector<16x128xbf16>, vector<128x128xbf16>, vector<16x128xf32> -> vector<16x128xf32>
    %114 = arith.addf %109, %113 : vector<16x128xf32>
    %c17 = arith.constant 17 : index
    %c0_108 = arith.constant 0 : index
    %115 = vector.load %arg14[%c17, %c0_108] : memref<48x128xbf16, #tpu.memory_space<vmem>>, vector<16x128xbf16>
    %c5 = arith.constant 5 : index
    %c0_109 = arith.constant 0 : index
    %c0_110 = arith.constant 0 : index
    %116 = vector.load %arg6[%c5, %c0_109, %c0_110] : memref<12x128x128xbf16, #tpu.memory_space<vmem>>, vector<1x128x128xbf16>
    %117 = vector.shape_cast %116 : vector<1x128x128xbf16> to vector<128x128xbf16>
    %cst_111 = arith.constant dense<0.000000e+00> : vector<16x128xf32>
    %118 = tpu.matmul %115, %117, %cst_111 {dimension_numbers = #tpu.dot_dimension_numbers<[1], [0], [0], [1], [0, 0, 1, 1], [], []>} : vector<16x128xbf16>, vector<128x128xbf16>, vector<16x128xf32> -> vector<16x128xf32>
    %119 = arith.addf %114, %118 : vector<16x128xf32>
    %c1_112 = arith.constant 1 : index
    %c0_113 = arith.constant 0 : index
    %120 = vector.load %arg7[%c1_112, %c0_113] : memref<4x128xf32, #tpu.memory_space<vmem>>, vector<1x128xf32>
    %121 = vector.shape_cast %120 : vector<1x128xf32> to vector<128xf32>
    %122 = vector.shape_cast %121 : vector<128xf32> to vector<1x128xf32>
    %123 = vector.broadcast %122 : vector<1x128xf32> to vector<16x128xf32>
    %124 = arith.addf %119, %123 : vector<16x128xf32>
    %cst_114 = arith.constant 0.000000e+00 : f32
    %125 = vector.broadcast %cst_114 : f32 to vector<16x128xf32>
    %126 = arith.maximumf %124, %125 : vector<16x128xf32>
    %127 = arith.truncf %126 : vector<16x128xf32> to vector<16x128xbf16>
    %c1_115 = arith.constant 1 : index
    %c0_116 = arith.constant 0 : index
    %c0_117 = arith.constant 0 : index
    %128 = vector.load %arg8[%c1_115, %c0_116, %c0_117] : memref<4x128x128xbf16, #tpu.memory_space<vmem>>, vector<1x128x128xbf16>
    %129 = vector.shape_cast %128 : vector<1x128x128xbf16> to vector<128x128xbf16>
    %cst_118 = arith.constant dense<0.000000e+00> : vector<16x128xf32>
    %130 = tpu.matmul %127, %129, %cst_118 {dimension_numbers = #tpu.dot_dimension_numbers<[1], [0], [0], [1], [0, 0, 1, 1], [], []>} : vector<16x128xbf16>, vector<128x128xbf16>, vector<16x128xf32> -> vector<16x128xf32>
    %c1_119 = arith.constant 1 : index
    %c0_120 = arith.constant 0 : index
    %131 = vector.load %arg9[%c1_119, %c0_120] : memref<4x128xf32, #tpu.memory_space<vmem>>, vector<1x128xf32>
    %132 = vector.shape_cast %131 : vector<1x128xf32> to vector<128xf32>
    %133 = vector.shape_cast %132 : vector<128xf32> to vector<1x128xf32>
    %134 = vector.broadcast %133 : vector<1x128xf32> to vector<16x128xf32>
    %135 = arith.addf %130, %134 : vector<16x128xf32>
    %136 = arith.addf %135, %101 : vector<16x128xf32>
    %c16_121 = arith.constant 16 : index
    %c0_122 = arith.constant 0 : index
    %137 = vector.load %arg13[%c16_121, %c0_122] : memref<56x128xf32, #tpu.memory_space<vmem>>, vector<16x128xf32>
    tpu.vector_store %arg13[%c16_121, %c0_122], %136 {strides = array<i32>} : memref<56x128xf32, #tpu.memory_space<vmem>>, vector<16x128xf32>,
    %cst_123 = arith.constant 0.000000e+00 : f32
    %138 = vector.broadcast %cst_123 : f32 to vector<1x128xf32>
    %c32_124 = arith.constant 32 : index
    %c0_125 = arith.constant 0 : index
    %139 = vector.load %arg13[%c32_124, %c0_125] : memref<56x128xf32, #tpu.memory_space<vmem>>, vector<1x128xf32>
    tpu.vector_store %arg13[%c32_124, %c0_125], %138 {strides = array<i32>} : memref<56x128xf32, #tpu.memory_space<vmem>>, vector<1x128xf32>,
    %c15_126 = arith.constant 15 : index
    %c0_127 = arith.constant 0 : index
    %140 = tpu.strided_load %arg13[%c15_126, %c0_127] {strides = array<i32: 2, 1>} : memref<56x128xf32, #tpu.memory_space<vmem>>, vector<9x128xf32>
    %141 = arith.truncf %140 : vector<9x128xf32> to vector<9x128xbf16>
    %142 = vector.extract_strided_slice %141 {offsets = [0, 0], sizes = [8, 128], strides = [1, 1]} : vector<9x128xbf16> to vector<8x128xbf16>
    %c4_128 = arith.constant 4 : index
    %c0_129 = arith.constant 0 : index
    %c0_130 = arith.constant 0 : index
    %143 = vector.load %arg4[%c4_128, %c0_129, %c0_130] : memref<8x128x128xbf16, #tpu.memory_space<vmem>>, vector<1x128x128xbf16>
    %144 = vector.shape_cast %143 : vector<1x128x128xbf16> to vector<128x128xbf16>
    %cst_131 = arith.constant dense<0.000000e+00> : vector<8x128xf32>
    %145 = tpu.matmul %142, %144, %cst_131 {dimension_numbers = #tpu.dot_dimension_numbers<[1], [0], [0], [1], [0, 0, 1, 1], [], []>} : vector<8x128xbf16>, vector<128x128xbf16>, vector<8x128xf32> -> vector<8x128xf32>
    %146 = vector.extract_strided_slice %141 {offsets = [1, 0], sizes = [8, 128], strides = [1, 1]} : vector<9x128xbf16> to vector<8x128xbf16>
    %c6 = arith.constant 6 : index
    %c0_132 = arith.constant 0 : index
    %c0_133 = arith.constant 0 : index
    %147 = vector.load %arg4[%c6, %c0_132, %c0_133] : memref<8x128x128xbf16, #tpu.memory_space<vmem>>, vector<1x128x128xbf16>
    %148 = vector.shape_cast %147 : vector<1x128x128xbf16> to vector<128x128xbf16>
    %cst_134 = arith.constant dense<0.000000e+00> : vector<8x128xf32>
    %149 = tpu.matmul %146, %148, %cst_134 {dimension_numbers = #tpu.dot_dimension_numbers<[1], [0], [0], [1], [0, 0, 1, 1], [], []>} : vector<8x128xbf16>, vector<128x128xbf16>, vector<8x128xf32> -> vector<8x128xf32>
    %150 = arith.addf %145, %149 : vector<8x128xf32>
    %c16_135 = arith.constant 16 : index
    %c0_136 = arith.constant 0 : index
    %151 = tpu.strided_load %arg13[%c16_135, %c0_136] {strides = array<i32: 2, 1>} : memref<56x128xf32, #tpu.memory_space<vmem>>, vector<9x128xf32>
    %152 = arith.truncf %151 : vector<9x128xf32> to vector<9x128xbf16>
    %153 = vector.extract_strided_slice %152 {offsets = [0, 0], sizes = [8, 128], strides = [1, 1]} : vector<9x128xbf16> to vector<8x128xbf16>
    %c5_137 = arith.constant 5 : index
    %c0_138 = arith.constant 0 : index
    %c0_139 = arith.constant 0 : index
    %154 = vector.load %arg4[%c5_137, %c0_138, %c0_139] : memref<8x128x128xbf16, #tpu.memory_space<vmem>>, vector<1x128x128xbf16>
    %155 = vector.shape_cast %154 : vector<1x128x128xbf16> to vector<128x128xbf16>
    %cst_140 = arith.constant dense<0.000000e+00> : vector<8x128xf32>
    %156 = tpu.matmul %153, %155, %cst_140 {dimension_numbers = #tpu.dot_dimension_numbers<[1], [0], [0], [1], [0, 0, 1, 1], [], []>} : vector<8x128xbf16>, vector<128x128xbf16>, vector<8x128xf32> -> vector<8x128xf32>
    %157 = arith.addf %150, %156 : vector<8x128xf32>
    %158 = vector.extract_strided_slice %152 {offsets = [1, 0], sizes = [8, 128], strides = [1, 1]} : vector<9x128xbf16> to vector<8x128xbf16>
    %c7 = arith.constant 7 : index
    %c0_141 = arith.constant 0 : index
    %c0_142 = arith.constant 0 : index
    %159 = vector.load %arg4[%c7, %c0_141, %c0_142] : memref<8x128x128xbf16, #tpu.memory_space<vmem>>, vector<1x128x128xbf16>
    %160 = vector.shape_cast %159 : vector<1x128x128xbf16> to vector<128x128xbf16>
    %cst_143 = arith.constant dense<0.000000e+00> : vector<8x128xf32>
    %161 = tpu.matmul %158, %160, %cst_143 {dimension_numbers = #tpu.dot_dimension_numbers<[1], [0], [0], [1], [0, 0, 1, 1], [], []>} : vector<8x128xbf16>, vector<128x128xbf16>, vector<8x128xf32> -> vector<8x128xf32>
    %162 = arith.addf %157, %161 : vector<8x128xf32>
    %c1_144 = arith.constant 1 : index
    %c0_145 = arith.constant 0 : index
    %163 = vector.load %arg5[%c1_144, %c0_145] : memref<2x128xf32, #tpu.memory_space<vmem>>, vector<1x128xf32>
    %164 = vector.shape_cast %163 : vector<1x128xf32> to vector<128xf32>
    %165 = vector.shape_cast %164 : vector<128xf32> to vector<1x128xf32>
    %166 = vector.broadcast %165 : vector<1x128xf32> to vector<8x128xf32>
    %167 = arith.addf %162, %166 : vector<8x128xf32>
    %c16_146 = arith.constant 16 : index
    %c0_147 = arith.constant 0 : index
    %168 = vector.load %arg13[%c16_146, %c0_147] : memref<56x128xf32, #tpu.memory_space<vmem>>, vector<8x128xf32>
    tpu.vector_store %arg13[%c16_146, %c0_147], %167 {strides = array<i32>} : memref<56x128xf32, #tpu.memory_space<vmem>>, vector<8x128xf32>,
    %cst_148 = arith.constant 0.000000e+00 : bf16
    %169 = vector.broadcast %cst_148 : bf16 to vector<3x128xbf16>
    %c24 = arith.constant 24 : index
    %c0_149 = arith.constant 0 : index
    %170 = vector.load %arg14[%c24, %c0_149] : memref<48x128xbf16, #tpu.memory_space<vmem>>, vector<3x128xbf16>
    tpu.vector_store %arg14[%c24, %c0_149], %169 {strides = array<i32>} : memref<48x128xbf16, #tpu.memory_space<vmem>>, vector<3x128xbf16>,
    %c16_150 = arith.constant 16 : index
    %c0_151 = arith.constant 0 : index
    %171 = vector.load %arg13[%c16_150, %c0_151] : memref<56x128xf32, #tpu.memory_space<vmem>>, vector<8x128xf32>
    %cst_152 = arith.constant 0.000000e+00 : f32
    %172 = vector.broadcast %cst_152 : f32 to vector<8x128xf32>
    %173 = arith.maximumf %171, %172 : vector<8x128xf32>
    %174 = arith.truncf %173 : vector<8x128xf32> to vector<8x128xbf16>
    %c16_153 = arith.constant 16 : index
    %c0_154 = arith.constant 0 : index
    %175 = vector.load %arg14[%c16_153, %c0_154] : memref<48x128xbf16, #tpu.memory_space<vmem>>, vector<8x128xbf16>
    tpu.vector_store %arg14[%c16_153, %c0_154], %174 {strides = array<i32>} : memref<48x128xbf16, #tpu.memory_space<vmem>>, vector<8x128xbf16>,
    %c13_155 = arith.constant 13 : index
    %c0_156 = arith.constant 0 : index
    %176 = vector.load %arg14[%c13_155, %c0_156] : memref<48x128xbf16, #tpu.memory_space<vmem>>, vector<8x128xbf16>
    %c6_157 = arith.constant 6 : index
    %c0_158 = arith.constant 0 : index
    %c0_159 = arith.constant 0 : index
    %177 = vector.load %arg6[%c6_157, %c0_158, %c0_159] : memref<12x128x128xbf16, #tpu.memory_space<vmem>>, vector<1x128x128xbf16>
    %178 = vector.shape_cast %177 : vector<1x128x128xbf16> to vector<128x128xbf16>
    %cst_160 = arith.constant dense<0.000000e+00> : vector<8x128xf32>
    %179 = tpu.matmul %176, %178, %cst_160 {dimension_numbers = #tpu.dot_dimension_numbers<[1], [0], [0], [1], [0, 0, 1, 1], [], []>} : vector<8x128xbf16>, vector<128x128xbf16>, vector<8x128xf32> -> vector<8x128xf32>
    %c16_161 = arith.constant 16 : index
    %c0_162 = arith.constant 0 : index
    %180 = vector.load %arg14[%c16_161, %c0_162] : memref<48x128xbf16, #tpu.memory_space<vmem>>, vector<8x128xbf16>
    %c7_163 = arith.constant 7 : index
    %c0_164 = arith.constant 0 : index
    %c0_165 = arith.constant 0 : index
    %181 = vector.load %arg6[%c7_163, %c0_164, %c0_165] : memref<12x128x128xbf16, #tpu.memory_space<vmem>>, vector<1x128x128xbf16>
    %182 = vector.shape_cast %181 : vector<1x128x128xbf16> to vector<128x128xbf16>
    %cst_166 = arith.constant dense<0.000000e+00> : vector<8x128xf32>
    %183 = tpu.matmul %180, %182, %cst_166 {dimension_numbers = #tpu.dot_dimension_numbers<[1], [0], [0], [1], [0, 0, 1, 1], [], []>} : vector<8x128xbf16>, vector<128x128xbf16>, vector<8x128xf32> -> vector<8x128xf32>
    %184 = arith.addf %179, %183 : vector<8x128xf32>
    %c19_167 = arith.constant 19 : index
    %c0_168 = arith.constant 0 : index
    %185 = vector.load %arg14[%c19_167, %c0_168] : memref<48x128xbf16, #tpu.memory_space<vmem>>, vector<8x128xbf16>
    %c8 = arith.constant 8 : index
    %c0_169 = arith.constant 0 : index
    %c0_170 = arith.constant 0 : index
    %186 = vector.load %arg6[%c8, %c0_169, %c0_170] : memref<12x128x128xbf16, #tpu.memory_space<vmem>>, vector<1x128x128xbf16>
    %187 = vector.shape_cast %186 : vector<1x128x128xbf16> to vector<128x128xbf16>
    %cst_171 = arith.constant dense<0.000000e+00> : vector<8x128xf32>
    %188 = tpu.matmul %185, %187, %cst_171 {dimension_numbers = #tpu.dot_dimension_numbers<[1], [0], [0], [1], [0, 0, 1, 1], [], []>} : vector<8x128xbf16>, vector<128x128xbf16>, vector<8x128xf32> -> vector<8x128xf32>
    %189 = arith.addf %184, %188 : vector<8x128xf32>
    %c2_172 = arith.constant 2 : index
    %c0_173 = arith.constant 0 : index
    %190 = vector.load %arg7[%c2_172, %c0_173] : memref<4x128xf32, #tpu.memory_space<vmem>>, vector<1x128xf32>
    %191 = vector.shape_cast %190 : vector<1x128xf32> to vector<128xf32>
    %192 = vector.shape_cast %191 : vector<128xf32> to vector<1x128xf32>
    %193 = vector.broadcast %192 : vector<1x128xf32> to vector<8x128xf32>
    %194 = arith.addf %189, %193 : vector<8x128xf32>
    %cst_174 = arith.constant 0.000000e+00 : f32
    %195 = vector.broadcast %cst_174 : f32 to vector<8x128xf32>
    %196 = arith.maximumf %194, %195 : vector<8x128xf32>
    %197 = arith.truncf %196 : vector<8x128xf32> to vector<8x128xbf16>
    %c2_175 = arith.constant 2 : index
    %c0_176 = arith.constant 0 : index
    %c0_177 = arith.constant 0 : index
    %198 = vector.load %arg8[%c2_175, %c0_176, %c0_177] : memref<4x128x128xbf16, #tpu.memory_space<vmem>>, vector<1x128x128xbf16>
    %199 = vector.shape_cast %198 : vector<1x128x128xbf16> to vector<128x128xbf16>
    %cst_178 = arith.constant dense<0.000000e+00> : vector<8x128xf32>
    %200 = tpu.matmul %197, %199, %cst_178 {dimension_numbers = #tpu.dot_dimension_numbers<[1], [0], [0], [1], [0, 0, 1, 1], [], []>} : vector<8x128xbf16>, vector<128x128xbf16>, vector<8x128xf32> -> vector<8x128xf32>
    %c2_179 = arith.constant 2 : index
    %c0_180 = arith.constant 0 : index
    %201 = vector.load %arg9[%c2_179, %c0_180] : memref<4x128xf32, #tpu.memory_space<vmem>>, vector<1x128xf32>
    %202 = vector.shape_cast %201 : vector<1x128xf32> to vector<128xf32>
    %203 = vector.shape_cast %202 : vector<128xf32> to vector<1x128xf32>
    %204 = vector.broadcast %203 : vector<1x128xf32> to vector<8x128xf32>
    %205 = arith.addf %200, %204 : vector<8x128xf32>
    %206 = arith.addf %205, %171 : vector<8x128xf32>
    %c16_181 = arith.constant 16 : index
    %c0_182 = arith.constant 0 : index
    %207 = vector.load %arg13[%c16_181, %c0_182] : memref<56x128xf32, #tpu.memory_space<vmem>>, vector<8x128xf32>
    tpu.vector_store %arg13[%c16_181, %c0_182], %206 {strides = array<i32>} : memref<56x128xf32, #tpu.memory_space<vmem>>, vector<8x128xf32>,
    %c16_183 = arith.constant 16 : index
    %c0_184 = arith.constant 0 : index
    %208 = vector.load %arg13[%c16_183, %c0_184] : memref<56x128xf32, #tpu.memory_space<vmem>>, vector<8x128xf32>
    %cst_185 = arith.constant 0.000000e+00 : f32
    %209 = vector.broadcast %cst_185 : f32 to vector<8x128xf32>
    %210 = arith.maximumf %208, %209 : vector<8x128xf32>
    %211 = arith.truncf %210 : vector<8x128xf32> to vector<8x128xbf16>
    %c16_186 = arith.constant 16 : index
    %c0_187 = arith.constant 0 : index
    %212 = vector.load %arg14[%c16_186, %c0_187] : memref<48x128xbf16, #tpu.memory_space<vmem>>, vector<8x128xbf16>
    tpu.vector_store %arg14[%c16_186, %c0_187], %211 {strides = array<i32>} : memref<48x128xbf16, #tpu.memory_space<vmem>>, vector<8x128xbf16>,
    %c15_188 = arith.constant 15 : index
    %c0_189 = arith.constant 0 : index
    %213 = vector.load %arg14[%c15_188, %c0_189] : memref<48x128xbf16, #tpu.memory_space<vmem>>, vector<8x128xbf16>
    %c9 = arith.constant 9 : index
    %c0_190 = arith.constant 0 : index
    %c0_191 = arith.constant 0 : index
    %214 = vector.load %arg6[%c9, %c0_190, %c0_191] : memref<12x128x128xbf16, #tpu.memory_space<vmem>>, vector<1x128x128xbf16>
    %215 = vector.shape_cast %214 : vector<1x128x128xbf16> to vector<128x128xbf16>
    %cst_192 = arith.constant dense<0.000000e+00> : vector<8x128xf32>
    %216 = tpu.matmul %213, %215, %cst_192 {dimension_numbers = #tpu.dot_dimension_numbers<[1], [0], [0], [1], [0, 0, 1, 1], [], []>} : vector<8x128xbf16>, vector<128x128xbf16>, vector<8x128xf32> -> vector<8x128xf32>
    %c16_193 = arith.constant 16 : index
    %c0_194 = arith.constant 0 : index
    %217 = vector.load %arg14[%c16_193, %c0_194] : memref<48x128xbf16, #tpu.memory_space<vmem>>, vector<8x128xbf16>
    %c10 = arith.constant 10 : index
    %c0_195 = arith.constant 0 : index
    %c0_196 = arith.constant 0 : index
    %218 = vector.load %arg6[%c10, %c0_195, %c0_196] : memref<12x128x128xbf16, #tpu.memory_space<vmem>>, vector<1x128x128xbf16>
    %219 = vector.shape_cast %218 : vector<1x128x128xbf16> to vector<128x128xbf16>
    %cst_197 = arith.constant dense<0.000000e+00> : vector<8x128xf32>
    %220 = tpu.matmul %217, %219, %cst_197 {dimension_numbers = #tpu.dot_dimension_numbers<[1], [0], [0], [1], [0, 0, 1, 1], [], []>} : vector<8x128xbf16>, vector<128x128xbf16>, vector<8x128xf32> -> vector<8x128xf32>
    %221 = arith.addf %216, %220 : vector<8x128xf32>
    %c17_198 = arith.constant 17 : index
    %c0_199 = arith.constant 0 : index
    %222 = vector.load %arg14[%c17_198, %c0_199] : memref<48x128xbf16, #tpu.memory_space<vmem>>, vector<8x128xbf16>
    %c11 = arith.constant 11 : index
    %c0_200 = arith.constant 0 : index
    %c0_201 = arith.constant 0 : index
    %223 = vector.load %arg6[%c11, %c0_200, %c0_201] : memref<12x128x128xbf16, #tpu.memory_space<vmem>>, vector<1x128x128xbf16>
    %224 = vector.shape_cast %223 : vector<1x128x128xbf16> to vector<128x128xbf16>
    %cst_202 = arith.constant dense<0.000000e+00> : vector<8x128xf32>
    %225 = tpu.matmul %222, %224, %cst_202 {dimension_numbers = #tpu.dot_dimension_numbers<[1], [0], [0], [1], [0, 0, 1, 1], [], []>} : vector<8x128xbf16>, vector<128x128xbf16>, vector<8x128xf32> -> vector<8x128xf32>
    %226 = arith.addf %221, %225 : vector<8x128xf32>
    %c3_203 = arith.constant 3 : index
    %c0_204 = arith.constant 0 : index
    %227 = vector.load %arg7[%c3_203, %c0_204] : memref<4x128xf32, #tpu.memory_space<vmem>>, vector<1x128xf32>
    %228 = vector.shape_cast %227 : vector<1x128xf32> to vector<128xf32>
    %229 = vector.shape_cast %228 : vector<128xf32> to vector<1x128xf32>
    %230 = vector.broadcast %229 : vector<1x128xf32> to vector<8x128xf32>
    %231 = arith.addf %226, %230 : vector<8x128xf32>
    %cst_205 = arith.constant 0.000000e+00 : f32
    %232 = vector.broadcast %cst_205 : f32 to vector<8x128xf32>
    %233 = arith.maximumf %231, %232 : vector<8x128xf32>
    %234 = arith.truncf %233 : vector<8x128xf32> to vector<8x128xbf16>
    %c3_206 = arith.constant 3 : index
    %c0_207 = arith.constant 0 : index
    %c0_208 = arith.constant 0 : index
    %235 = vector.load %arg8[%c3_206, %c0_207, %c0_208] : memref<4x128x128xbf16, #tpu.memory_space<vmem>>, vector<1x128x128xbf16>
    %236 = vector.shape_cast %235 : vector<1x128x128xbf16> to vector<128x128xbf16>
    %cst_209 = arith.constant dense<0.000000e+00> : vector<8x128xf32>
    %237 = tpu.matmul %234, %236, %cst_209 {dimension_numbers = #tpu.dot_dimension_numbers<[1], [0], [0], [1], [0, 0, 1, 1], [], []>} : vector<8x128xbf16>, vector<128x128xbf16>, vector<8x128xf32> -> vector<8x128xf32>
    %c3_210 = arith.constant 3 : index
    %c0_211 = arith.constant 0 : index
    %238 = vector.load %arg9[%c3_210, %c0_211] : memref<4x128xf32, #tpu.memory_space<vmem>>, vector<1x128xf32>
    %239 = vector.shape_cast %238 : vector<1x128xf32> to vector<128xf32>
    %240 = vector.shape_cast %239 : vector<128xf32> to vector<1x128xf32>
    %241 = vector.broadcast %240 : vector<1x128xf32> to vector<8x128xf32>
    %242 = arith.addf %237, %241 : vector<8x128xf32>
    %243 = arith.addf %242, %208 : vector<8x128xf32>
    %c16_212 = arith.constant 16 : index
    %c0_213 = arith.constant 0 : index
    %244 = vector.load %arg13[%c16_212, %c0_213] : memref<56x128xf32, #tpu.memory_space<vmem>>, vector<8x128xf32>
    tpu.vector_store %arg13[%c16_212, %c0_213], %243 {strides = array<i32>} : memref<56x128xf32, #tpu.memory_space<vmem>>, vector<8x128xf32>,
    %c16_214 = arith.constant 16 : index
    %c0_215 = arith.constant 0 : index
    %245 = vector.load %arg13[%c16_214, %c0_215] : memref<56x128xf32, #tpu.memory_space<vmem>>, vector<8x128xf32>
    %246 = arith.truncf %245 : vector<8x128xf32> to vector<8x128xbf16>
    %c16_216 = arith.constant 16 : index
    %c0_217 = arith.constant 0 : index
    %247 = vector.load %arg14[%c16_216, %c0_217] : memref<48x128xbf16, #tpu.memory_space<vmem>>, vector<8x128xbf16>
    tpu.vector_store %arg14[%c16_216, %c0_217], %246 {strides = array<i32>} : memref<48x128xbf16, #tpu.memory_space<vmem>>, vector<8x128xbf16>,
    %cst_218 = arith.constant 0.000000e+00 : bf16
    %248 = vector.broadcast %cst_218 : bf16 to vector<1x128xbf16>
    %c24_219 = arith.constant 24 : index
    %c0_220 = arith.constant 0 : index
    %249 = vector.load %arg14[%c24_219, %c0_220] : memref<48x128xbf16, #tpu.memory_space<vmem>>, vector<1x128xbf16>
    tpu.vector_store %arg14[%c24_219, %c0_220], %248 {strides = array<i32>} : memref<48x128xbf16, #tpu.memory_space<vmem>>, vector<1x128xbf16>,
    %c15_221 = arith.constant 15 : index
    %c0_222 = arith.constant 0 : index
    %250 = vector.load %arg14[%c15_221, %c0_222] : memref<48x128xbf16, #tpu.memory_space<vmem>>, vector<8x128xbf16>
    %c0_223 = arith.constant 0 : index
    %c0_224 = arith.constant 0 : index
    %c0_225 = arith.constant 0 : index
    %251 = vector.load %arg10[%c0_223, %c0_224, %c0_225] : memref<3x128x128xbf16, #tpu.memory_space<vmem>>, vector<1x128x128xbf16>
    %252 = vector.shape_cast %251 : vector<1x128x128xbf16> to vector<128x128xbf16>
    %cst_226 = arith.constant dense<0.000000e+00> : vector<8x128xf32>
    %253 = tpu.matmul %250, %252, %cst_226 {dimension_numbers = #tpu.dot_dimension_numbers<[1], [0], [0], [1], [0, 0, 1, 1], [], []>} : vector<8x128xbf16>, vector<128x128xbf16>, vector<8x128xf32> -> vector<8x128xf32>
    %c16_227 = arith.constant 16 : index
    %c0_228 = arith.constant 0 : index
    %254 = vector.load %arg14[%c16_227, %c0_228] : memref<48x128xbf16, #tpu.memory_space<vmem>>, vector<8x128xbf16>
    %c1_229 = arith.constant 1 : index
    %c0_230 = arith.constant 0 : index
    %c0_231 = arith.constant 0 : index
    %255 = vector.load %arg10[%c1_229, %c0_230, %c0_231] : memref<3x128x128xbf16, #tpu.memory_space<vmem>>, vector<1x128x128xbf16>
    %256 = vector.shape_cast %255 : vector<1x128x128xbf16> to vector<128x128xbf16>
    %cst_232 = arith.constant dense<0.000000e+00> : vector<8x128xf32>
    %257 = tpu.matmul %254, %256, %cst_232 {dimension_numbers = #tpu.dot_dimension_numbers<[1], [0], [0], [1], [0, 0, 1, 1], [], []>} : vector<8x128xbf16>, vector<128x128xbf16>, vector<8x128xf32> -> vector<8x128xf32>
    %258 = arith.addf %253, %257 : vector<8x128xf32>
    %c17_233 = arith.constant 17 : index
    %c0_234 = arith.constant 0 : index
    %259 = vector.load %arg14[%c17_233, %c0_234] : memref<48x128xbf16, #tpu.memory_space<vmem>>, vector<8x128xbf16>
    %c2_235 = arith.constant 2 : index
    %c0_236 = arith.constant 0 : index
    %c0_237 = arith.constant 0 : index
    %260 = vector.load %arg10[%c2_235, %c0_236, %c0_237] : memref<3x128x128xbf16, #tpu.memory_space<vmem>>, vector<1x128x128xbf16>
    %261 = vector.shape_cast %260 : vector<1x128x128xbf16> to vector<128x128xbf16>
    %cst_238 = arith.constant dense<0.000000e+00> : vector<8x128xf32>
    %262 = tpu.matmul %259, %261, %cst_238 {dimension_numbers = #tpu.dot_dimension_numbers<[1], [0], [0], [1], [0, 0, 1, 1], [], []>} : vector<8x128xbf16>, vector<128x128xbf16>, vector<8x128xf32> -> vector<8x128xf32>
    %263 = arith.addf %258, %262 : vector<8x128xf32>
    %c0_239 = arith.constant 0 : index
    %c0_240 = arith.constant 0 : index
    %264 = vector.load %arg11[%c0_239, %c0_240] : memref<1x128xf32, #tpu.memory_space<vmem>>, vector<1x128xf32>
    %265 = vector.broadcast %264 : vector<1x128xf32> to vector<8x128xf32>
    %266 = arith.addf %263, %265 : vector<8x128xf32>
    %c0_241 = arith.constant 0 : index
    %c0_242 = arith.constant 0 : index
    %c0_243 = arith.constant 0 : index
    %267 = vector.load %arg12[%c0_241, %c0_242, %c0_243] : memref<1x8x128xf32, #tpu.memory_space<vmem>>, vector<1x8x128xf32>
    %268 = vector.shape_cast %267 : vector<1x8x128xf32> to vector<8x128xf32>
    %269 = vector.shape_cast %266 : vector<8x128xf32> to vector<1x8x128xf32>
    tpu.vector_store %arg12[%c0_241, %c0_242, %c0_243], %269 {strides = array<i32>} : memref<1x8x128xf32, #tpu.memory_space<vmem>>, vector<1x8x128xf32>,
    return
  }
  func.func @transform_0(%arg0: i32) -> (i32, i32, i32) {
    %c0_i32 = arith.constant 0 : i32
    %c0_i32_0 = arith.constant 0 : i32
    %c0_i32_1 = arith.constant 0 : i32
    return %arg0, %c0_i32, %c0_i32_0 : i32, i32, i32
  }
  func.func @transform_1(%arg0: i32) -> (i32, i32, i32) {
    %c0_i32 = arith.constant 0 : i32
    %c0_i32_0 = arith.constant 0 : i32
    %c0_i32_1 = arith.constant 0 : i32
    %c0_i32_2 = arith.constant 0 : i32
    return %c0_i32, %c0_i32_0, %c0_i32_1 : i32, i32, i32
  }
  func.func @transform_2(%arg0: i32) -> (i32, i32) {
    %c0_i32 = arith.constant 0 : i32
    %c0_i32_0 = arith.constant 0 : i32
    %c0_i32_1 = arith.constant 0 : i32
    return %c0_i32, %c0_i32_0 : i32, i32
  }
  func.func @transform_3(%arg0: i32) -> (i32, i32, i32) {
    %c0_i32 = arith.constant 0 : i32
    %c0_i32_0 = arith.constant 0 : i32
    %c0_i32_1 = arith.constant 0 : i32
    %c0_i32_2 = arith.constant 0 : i32
    return %c0_i32, %c0_i32_0, %c0_i32_1 : i32, i32, i32
  }
  func.func @transform_4(%arg0: i32) -> (i32, i32) {
    %c0_i32 = arith.constant 0 : i32
    %c0_i32_0 = arith.constant 0 : i32
    %c0_i32_1 = arith.constant 0 : i32
    return %c0_i32, %c0_i32_0 : i32, i32
  }
  func.func @transform_5(%arg0: i32) -> (i32, i32, i32) {
    %c0_i32 = arith.constant 0 : i32
    %c0_i32_0 = arith.constant 0 : i32
    %c0_i32_1 = arith.constant 0 : i32
    %c0_i32_2 = arith.constant 0 : i32
    return %c0_i32, %c0_i32_0, %c0_i32_1 : i32, i32, i32
  }
  func.func @transform_6(%arg0: i32) -> (i32, i32) {
    %c0_i32 = arith.constant 0 : i32
    %c0_i32_0 = arith.constant 0 : i32
    %c0_i32_1 = arith.constant 0 : i32
    return %c0_i32, %c0_i32_0 : i32, i32
  }
  func.func @transform_7(%arg0: i32) -> (i32, i32, i32) {
    %c0_i32 = arith.constant 0 : i32
    %c0_i32_0 = arith.constant 0 : i32
    %c0_i32_1 = arith.constant 0 : i32
    %c0_i32_2 = arith.constant 0 : i32
    return %c0_i32, %c0_i32_0, %c0_i32_1 : i32, i32, i32
  }
  func.func @transform_8(%arg0: i32) -> (i32, i32) {
    %c0_i32 = arith.constant 0 : i32
    %c0_i32_0 = arith.constant 0 : i32
    %c0_i32_1 = arith.constant 0 : i32
    return %c0_i32, %c0_i32_0 : i32, i32
  }
  func.func @transform_9(%arg0: i32) -> (i32, i32, i32) {
    %c0_i32 = arith.constant 0 : i32
    %c0_i32_0 = arith.constant 0 : i32
    %c0_i32_1 = arith.constant 0 : i32
    %c0_i32_2 = arith.constant 0 : i32
    return %c0_i32, %c0_i32_0, %c0_i32_1 : i32, i32, i32
  }
  func.func @transform_10(%arg0: i32) -> (i32, i32) {
    %c0_i32 = arith.constant 0 : i32
    %c0_i32_0 = arith.constant 0 : i32
    %c0_i32_1 = arith.constant 0 : i32
    return %c0_i32, %c0_i32_0 : i32, i32
  }
  func.func @transform_11(%arg0: i32) -> (i32, i32, i32) {
    %c0_i32 = arith.constant 0 : i32
    %c0_i32_0 = arith.constant 0 : i32
    %c0_i32_1 = arith.constant 0 : i32
    return %arg0, %c0_i32, %c0_i32_0 : i32, i32, i32
  }
}

</mosaic_0001>

<bundles_post_ra>
// kernel: encoder_forward.1
= control target key start
LH: loop header
LB: loop body
LE: loop exit
PB: predicated region body
PF: predicated region fallthrough
CT: control target
= control target key end

     0   :  { %s6956_s0 = inlined_call_operand.vmem [shape: bf16[4,32,4], index: 0, kind: input, shape index: {}]   ;;  %s6957_s1 = inlined_call_operand.vmem [shape: bf16[3,4,128], index: 1, kind: input, shape index: {}]   ;;  %s6958_s2 = inlined_call_operand.vmem [shape: f32[1,128], index: 2, kind: input, shape index: {}]   ;;  %s6959_s3 = inlined_call_operand.vmem [shape: bf16[8,128,128], index: 3, kind: input, shape index: {}]   ;;  %s6960_s4 = inlined_call_operand.vmem [shape: f32[2,128], index: 4, kind: input, shape index: {}]   ;;  %s6961_s5 = inlined_call_operand.vmem [shape: bf16[12,128,128], index: 5, kind: input, shape index: {}]   ;;  %s6962_s6 = inlined_call_operand.vmem [shape: f32[4,128], index: 6, kind: input, shape index: {}]   ;;  %s6963_s7 = inlined_call_operand.vmem [shape: bf16[4,128,128], index: 7, kind: input, shape index: {}]   ;;  %s6964_s8 = inlined_call_operand.vmem [shape: f32[4,128], index: 8, kind: input, shape index: {}]   ;;  %s6965_s9 = inlined_call_operand.vmem [shape: bf16[3,128,128], index: 9, kind: input, shape index: {}]   ;;  %s6966_s10 = inlined_call_operand.vmem [shape: f32[1,128], index: 10, kind: input, shape index: {}]   ;;  %s6967_s11 = inlined_call_operand.hbm [shape: f32[4,8,128], index: 11, kind: output, shape index: {}]  }
   0x1   :  { %6968 = sst [smem:[#allocation8_spill]] %s6956_s0 }
   0x2   :  { %16 = vsyncpa [#allocation6], 0 }
   0x3   :  { %18 = vsyncpa [#allocation6 + $0x1], 0  ;;  %s5821_s17 = smov 0   ;;  %s5823_s18 = smov 0  }
   0x4   :  { %s5825_s19 = smov 0   ;;  %s5827_s20 = smov 0  }
   0x5 LB: > { %s5842_s21 = sadd.s32 4294967295, %s5755_s20   ;;  %s3985_s22 = sadd.s32 4294967294, %s5755_s20   ;;  %s5755_s20 = sphi %s5827_s20, %s6977_s20   ;;  %s5751_s19 = sphi %s5825_s19, %s6976_s19   ;;  %s5747_s18 = sphi %s5823_s18, %s6975_s18   ;;  %s5743_s17 = sphi %s5821_s17, %s6974_s17  }
   0x6   : > { %s5846_s23 = sadd.s32 1, %s5755_s20   ;;  %s267_s24 = sadd.s32 1, %s5751_s19 }
   0x7   : > { %s264_s25 = ssub.s32 %s5755_s20, %s5846_s23  ;;  %p277_p0 = scmp.ne.s32.totalorder %s5751_s19, %s5747_s18 }
   0x8   : > { %p265_p1 = scmp.eq.s32.totalorder %s264_s25, 0  ;;  %p278_p2 = scmp.eq.s32.totalorder %s5842_s21, 3 }
   0x9   : > { %p283_p3 = scmp.ne.s32.totalorder %s5747_s18, %s5743_s17  ;;  %p284_p4 = scmp.eq.s32.totalorder %s3985_s22, 3 }
   0xa   : > { %s5857_s26 = scalar_select %p265_p1, %s5751_s19, %s267_s24  }
   0xb   : > { %p5859_p5 = por %p278_p2, %p277_p0  ;;  %p5863_p6 = por %p284_p4, %p283_p3 }
   0xc   : > { %p3988_p7 = scmp.ge.s32.totalorder %s5755_s20, 1  ;;  %p340_p8 = scmp.lt.s32.totalorder %s5755_s20, 5 }
   0xe   : > { %p341_p9 = pnand %p3988_p7, %p340_p8 }
   0xf   : > { %v3992_v0 = vld [vmem:[%s6957_s1 + $0x2] sm:$0x3] (!%p341_p9)  ;;  %vm462_vm0 = vcmask (!%p341_p9), 1041408   ;;  %p380_p10 = scmp.lt.s32.totalorder (!%p341_p9), %s5842_s21, 3  ;;  %vm389_vm1 = vcmask (!%p341_p9), 24576   ;;  %v5757_v2 = vmov (!%p341_p9), 0  }
  0x10   : > { %344 = sbr.rel (%p341_p9) target bundleno = 3009 (0xbc1), region = 64  ;;  %5424 = vmatprep.subr.msk.bf16.mxu0 (!%p341_p9), %vm462_vm0, %v3992_v0  ;;  %v464_v1 = vsel (!%p341_p9), %vm462_vm0, %v3992_v0, 0  ;;  %390 = vst.msk [vmem:[#allocation4] sm:$0x1] (!%p341_p9), %vm389_vm1, %v5757_v2  ;;  %388 = vst [vmem:[#allocation3] sm:$0xff] (!%p341_p9), %v5757_v2  ;;  %vm401_vm2 = vcmask (!%p341_p9), 1040384  }
  0x11   : > { %v432_v3 = vld [vmem:[%s6957_s1] sm:$0x3] (!%p341_p9)  ;;  %4859 = vmatpush3.bf16.msra.mxu0 (!%p341_p9), %v464_v1  ;;  %vm402_vm3 = vcmask (!%p341_p9), 1044484   ;;  %vm420_vm4 = vcmask (!%p341_p9), 27649   ;;  %s6971_s0 = sld [smem:[#allocation8_spill]] (!%p341_p9)  ;;  %v5758_v4 = vmov (!%p341_p9), 0.0  }
  0x12   : > { %5425 = vmatprep.subr.msk.bf16.mxu0 (!%p341_p9), %vm462_vm0, %v432_v3  ;;  %386 = vst [vmem:[#allocation2] sm:$0xff] (!%p341_p9), %v5758_v4  ;;  %387 = vst [vmem:[#allocation2 + $0x8] sm:$0xff] (!%p341_p9), %v5758_v4  ;;  %4876 = vmatprep.subr.bf16.mxu1 (!%p341_p9), %v5758_v4  ;;  %v5476_v14 = vld [vmem:[%s6959_s3 + $0x80] sm:$0xff] (!%p341_p9)   ;;  %vm422_vm6 = vcmask (!%p341_p9), 27648   ;;  %v5478_v19 = vld [vmem:[%s6959_s3 + $0x88] sm:$0xff] (!%p341_p9)   ;;  %vm449_vm7 = vcmask (!%p341_p9), 1046528  }
  0x13   : > { %706 = vst [vmem:[#allocation2 + $0x30] sm:$0x1] (!%p341_p9), %v5758_v4  ;;  %vm5889_vm5 = vmor (!%p341_p9), %vm401_vm2, %vm402_vm3  ;;  %4877 = vmatpush3.bf16.msra.mxu1 (!%p341_p9), %v5476_v14  ;;  %vm455_vm8 = vcmask (!%p341_p9), 31744   ;;  %vm518_vm9 = vsmask.f32 (!%p341_p9), 7424  ;;  %v546_v30 = vsel (!%p341_p9), %vm462_vm0, %v432_v3, 0 }
  0x14   : > { %4878 = vmatprep.subr.bf16.mxu1 (!%p341_p9), %v5758_v4  ;;  %v4001_v31 = vld [vmem:[%s6957_s1 + $0x4] sm:$0x3] (!%p341_p9)  ;;  %vm603_vm10 = vsmask.f32 (!%p341_p9), 6400  ;;  %v5475_v3 = vld [vmem:[%s6959_s3 + $0x8] sm:$0xff] (!%p341_p9)   ;;  %v5482_v9 = vld [vmem:[%s6959_s3 + $0x98] sm:$0xff] (!%p341_p9)  }
  0x15   : > { %v632_v48 = vsel (!%p341_p9), %vm462_vm0, %v4001_v31, 0  ;;  %v5474_v1 = vld [vmem:[%s6959_s3] sm:$0xff] (!%p341_p9)   ;;  %v5487_v14 = vld [vmem:[%s6959_s3 + $0x38] sm:$0xff] (!%p341_p9)   ;;  %vm5759_vm11 = vmmov (!%p341_p9), 0   ;;  %vm1186_vm12 = vsmask.f32 (!%p341_p9), 1280 }
  0x16   : > { %vm1187_vm13 = vmand (!%p341_p9), %vm462_vm0, %vm1186_vm12  ;;  %vm2615_vm14 = vcmask (!%p341_p9), 1045508   ;;  %vm2616_vm15 = vsmask.f32 (!%p341_p9), 5376  ;;  %vm3559_vm2 = vsmask.f32 (!%p341_p9), 4352  ;;  %s4602_s25 = sshll.u32 (!%p341_p9), %s5842_s21, 7 }
  0x17   : > { %s381_s14 = scalar_select %p380_p10, %s5842_s21, 3  ;;  %4879 = vmatpush3.bf16.msra.mxu1 %v5478_v19 }
  0x18   : > { %4880 = vmatprep.subr.bf16.mxu1 %v5758_v4 }
  0x19   : > { %s4605_s15 = sshll.u32 %s381_s14, 4  ;;  %s6914_s14 = scalar_lea.hbm %s6967_s11, %s4602_s25 }
  0x1a   : > { %s384_s24 = scalar_lea.vmem %s6971_s0, %s4605_s15  ;;  %s377_s15 = sand.u32 1, %s5747_s18  }
  0x1b   : > { %v393_v5 = vld [vmem:[%s384_s24] sm:$0xf]  ;;  %v394_v6 = vld [vmem:[%s384_s24 + $0x4] sm:$0xf]  ;;  %v395_v7 = vld [vmem:[%s384_s24 + $0x8] sm:$0xf] }
  0x1c   : > { %v396_v8 = vld [vmem:[%s384_s24 + $0xc] sm:$0xf]  ;;  %v404_v10 = vrot.slane %v393_v5, 7  ;;  %v406_v11 = vrot.slane %v394_v6, 7  ;;  %v409_v12 = vrot.slane %v395_v7, 7  ;;  %v5477_v5 = vld [vmem:[%s6959_s3 + $0x10] sm:$0xff]  }
  0x1d   : > { %v412_v13 = vrot.slane %v396_v8, 7  ;;  %v5479_v6 = vld [vmem:[%s6959_s3 + $0x18] sm:$0xff]   ;;  %v5480_v7 = vld [vmem:[%s6959_s3 + $0x90] sm:$0xff]   ;;  %v5481_v8 = vld [vmem:[%s6959_s3 + $0x20] sm:$0xff]   ;;  %s3989_s16 = sshll.u32 %s377_s15, 3  ;;  %s3913_s22 = scalar_lea.sflag [#allocation6], %s377_s15 }
  0x1e   : > { %v405_v15 = vrot.slane %v404_v10, 4  ;;  %v408_v16 = vrot.slane %v406_v11, 4  ;;  %v411_v17 = vrot.slane %v409_v12, 4  ;;  %421 = vst.msk [vmem:[#allocation4] sm:$0xe] %vm420_vm4, %v404_v10  ;;  %4881 = vmatpush3.bf16.msra.mxu1 %v5480_v7  ;;  %v5483_v10 = vld [vmem:[%s6959_s3 + $0x28] sm:$0xff]   ;;  %vm3560_vm4 = vmand %vm402_vm3, %vm3559_vm2 }
  0x1f   : > { %v414_v18 = vrot.slane %v412_v13, 4  ;;  %4882 = vmatprep.subr.bf16.mxu1 %v5758_v4  ;;  %v5506_v7 = vld [vmem:[%s6961_s5 + $0x40] sm:$0xff]   ;;  %s379_s29 = scalar_lea.vmem [#allocation5], %s3989_s16  ;;  %s5760_s16 = smov [#allocation5]  }
  0x20   : > { %v407_v20 = vsel %vm5889_vm5, %v405_v15, %v406_v11  ;;  %v410_v21 = vsel %vm5889_vm5, %v408_v16, %v409_v12  ;;  %v413_v22 = vsel %vm5889_vm5, %v411_v17, %v412_v13  ;;  %v5484_v11 = vld [vmem:[%s6959_s3 + $0xa0] sm:$0xff]   ;;  %v5485_v12 = vld [vmem:[%s6959_s3 + $0x30] sm:$0xff]   ;;  %v5486_v13 = vld [vmem:[%s6959_s3 + $0xa8] sm:$0xff]   ;;  %s3926_s30 = sshll.u32 %s379_s29, 4  ;;  %s5697_s24 = sshll.u32 %s5760_s16, 4  ;;  %s6916_s30 = int_to_ptr.vmem [resolvable:$true] %s3926_s30  ;;  %s5698_s24 = int_to_ptr.vmem [resolvable:$false] %s5697_s24 }
  0x21   : > { %423 = vst.msk [vmem:[#allocation4 + $0x4] sm:$0xf] %vm422_vm6, %v407_v20  ;;  %424 = vst.msk [vmem:[#allocation4 + $0x8] sm:$0xf] %vm422_vm6, %v410_v21  ;;  %v5488_v15 = vld [vmem:[%s6959_s3 + $0xb0] sm:$0xff]   ;;  %v5978_v16 = vld [vmem:[#allocation2] sm:$0xff]  ;;  %p5700_p0 = scmp.lt.s32.totalorder %s6916_s30, %s5698_s24 }
  0x22   : > { %425 = vst.msk [vmem:[#allocation4 + $0xc] sm:$0xf] %vm422_vm6, %v413_v22  ;;  %4883 = vmatpush3.bf16.msra.mxu1 %v5482_v9  ;;  %4892 = vmatprep.mubr.msk.bf16.mxu1 %vm5759_vm11, %v5978_v16  ;;  %v4005_v17 = vld [vmem:[%s6958_s2] ss:$0 sm:$0xff]  ;;  %v5508_v9 = vld [vmem:[%s6961_s5 + $0x50] sm:$0xff]   ;;  %s5693_s21 = scalar_lea.vmem %s6916_s30, 128 }
  0x23   : > { %426 = vst.msk [vmem:[#allocation4 + $0x10] sm:$0x1] %vm389_vm1, %v414_v18  ;;  %4884 = vmatprep.subr.bf16.mxu1 %v5758_v4  ;;  %vm2617_vm1 = vmand %vm2615_vm14, %vm2616_vm15  ;;  %p5694_p11 = scmp.ne.s32.totalorder %s6916_s30, %s5693_s21  ;;  %s5699_s0 = scalar_lea.vmem %s5698_s24, 256 }
  0x24   : > { %p5701_p1 = scmp.lt.s32.totalorder %s5699_s0, %s5693_s21 }
  0x25   : > { %v427_v23 = vld [vmem:[#allocation4] sm:$0xf]  ;;  %p5695_p12 = pnand %p5694_p11, %p5859_p5 }
  0x26   : > { %v433_v24 = vld [vmem:[#allocation4] sm:$0xe]  ;;  %4885 = vmatpush3.bf16.msra.mxu1 %v5484_v11  ;;  %v5509_v11 = vld [vmem:[%s6961_s5] sm:$0xff]   ;;  %p5702_p2 = por %p5701_p1, %p5700_p0 }
  0x27   : > { %4886 = vmatprep.subr.bf16.mxu1 %v5758_v4  ;;  %p5696_p13 = pneg %p5695_p12 }
  0x28   : > { %v428_v25 = vld [vmem:[#allocation4 + $0x4] sm:$0xf] }
  0x29   : > { %v3993_v26 = vcombine.low %v433_v24, %v428_v25  ;;  %v5470_v27 = vld [vmem:[#allocation4 + $0x8] sm:$0xff]   ;;  %v3998_v28 = vcombine.low %v427_v23, %v428_v25  ;;  %p5703_p3 = pnand %p5702_p2, %p5696_p13 }
  0x2a   : > { %v5472_v29 = vld [vmem:[#allocation4 + $0x10] ss:$0 sps:$4 sm:$0x11]   ;;  %v451_v34 = vrot.slane %v5470_v27, 1  ;;  %v527_v38 = vshll.u32 %v5470_v27, 16  ;;  %v531_v39 = vshrl.u32 %v5470_v27, 16  ;;  %4887 = vmatpush3.bf16.msra.mxu1 %v5486_v13 }
  0x2b   : > { %v5473_v32 = vld [vmem:[#allocation4 + $0x10] ss:$0 sps:$4 sm:$0x33]   ;;  %v450_v33 = vrot.slane %v3993_v26, 1  ;;  %v453_v35 = vrot.slane %v5472_v29, 1  ;;  %v520_v36 = vshrl.u32 %v3998_v28, 16  ;;  %4888 = vmatprep.subr.bf16.mxu1 %v5758_v4 }
  0x2c   : > { %v522_v37 = vshll.u32 %v3998_v28, 16  ;;  %v535_v40 = vshll.u32 %v5472_v29, 16  ;;  %v605_v43 = vshrl.u32 %v3993_v26, 16  ;;  %v608_v44 = vshll.u32 %v3993_v26, 16  ;;  %v5511_v13 = vld [vmem:[%s6961_s5 + $0x8] sm:$0xff]  }
  0x2d   : > { %v452_v41 = vsel %vm449_vm7, %v450_v33, %v451_v34  ;;  %v454_v42 = vsel %vm449_vm7, %v451_v34, %v453_v35  ;;  %v529_v46 = vrot.slane %v527_v38, 1  ;;  %v612_v49 = vrot.slane %v531_v39, 1  ;;  %v5489_v34 = vld [vmem:[%s6959_s3 + $0xc0] sm:$0xff]  }
  0x2e   : > { %4860 = vmatprep.mubr.msk.bf16.mxu0 %vm455_vm8, %v452_v41  ;;  %v524_v45 = vrot.slane %v522_v37, 1  ;;  %v537_v47 = vrot.slane %v535_v40, 1  ;;  %v617_v50 = vshrl.u32 %v5473_v32, 16  ;;  %v607_v52 = vrot.slane %v605_v43, 1  ;;  %4889 = vmatpush3.bf16.msra.mxu1 %v5488_v15  ;;  %v5513_v15 = vld [vmem:[%s6961_s5 + $0x10] sm:$0xff]  }
  0x2f   : > { %4861 = vmatmul.mubr.msk.bf16.vlgmr.msra.gmra.mrb[0].mxu0 %vm455_vm8, %v454_v42  ;;  %v620_v53 = vshll.u32 %v5473_v32, 16  ;;  %v610_v54 = vrot.slane %v608_v44, 2  ;;  %v613_v55 = vrot.slane %v527_v38, 2  ;;  %v533_v59 = vor.u32 %v531_v39, %v529_v46  ;;  %4890 = vmatprep.subr.bf16.mxu1 %v5978_v16  ;;  %v5491_v39 = vld [vmem:[%s6959_s3 + $0xc8] sm:$0xff]   ;;  %v5492_v44 = vld [vmem:[%s6959_s3 + $0x40] sm:$0xff]  }
  0x30   : > { %4865 = vmatpush3.bf16.msra.mxu0 %v546_v30  ;;  %v525_v51 = vor.u32 %v524_v45, %v520_v36  ;;  %v619_v57 = vrot.slane %v617_v50, 1  ;;  %v5493_v45 = vld [vmem:[%s6959_s3 + $0xd0] sm:$0xff]  }
  0x31   : > { %5426 = vmatprep.subr.msk.bf16.mxu0 %vm462_vm0, %v4001_v31  ;;  %v622_v58 = vrot.slane %v620_v53, 2  ;;  %v611_v60 = vor.u32 %v610_v54, %v607_v52  ;;  %v614_v61 = vor.u32 %v613_v55, %v612_v49  ;;  %v538_v62 = vsel %vm518_vm9, %v533_v59, %v537_v47  ;;  %v5494_v47 = vld [vmem:[%s6959_s3 + $0x48] sm:$0xff]   ;;  %v5496_v50 = vld [vmem:[%s6959_s3 + $0x50] sm:$0xff]   ;;  %v5498_v53 = vld [vmem:[%s6959_s3 + $0x58] sm:$0xff]  }
  0x32   : > { %v530_v56 = vsel %vm518_vm9, %v525_v51, %v529_v46  ;;  %v5497_v51 = vld [vmem:[%s6959_s3 + $0xe0] sm:$0xff]   ;;  %v944_v54 = vld [vmem:[#allocation2 + $0x30] ss:$2 sm:$0x1]  ;;  %v5499_v55 = vld [vmem:[%s6959_s3 + $0xe8] sm:$0xff]  }
  0x33   : > { %4866 = vmatprep.mubr.msk.bf16.mxu0 %vm455_vm8, %v530_v56  ;;  %v615_v63 = vsel %vm603_vm10, %v611_v60, %v614_v61  ;;  %v623_v0 = vor.u32 %v622_v58, %v619_v57  ;;  %v946_v56 = vpack.c.bf16 %v944_v54, %v944_v54  ;;  %v5500_v58 = vld [vmem:[%s6959_s3 + $0x60] sm:$0xff]   ;;  %v5501_v59 = vld [vmem:[%s6959_s3 + $0xf0] sm:$0xff]   ;;  %v1197_v54 = vld [vmem:[#allocation3] sm:$0xc0]  ;;  %vm1812_vm0 = vsmask.f32 256 }
  0x35   : > { %v624_v2 = vsel %vm603_vm10, %v614_v61, %v623_v0  ;;  %v1080_v61 = vshll.u32 %v946_v56, 16  ;;  %v1323_v56 = vshrl.u32 %v1197_v54, 16 }
  0x3b   : > { %4867 = vmatmul.mubr.msk.bf16.vlgmr.msra.gmra.mrb[0].mxu0 %vm455_vm8, %v538_v62  ;;  %v5502_v62 = vld [vmem:[%s6959_s3 + $0x68] sm:$0xff]  }
  0x3c   : > { %4871 = vmatpush3.bf16.msra.mxu0 %v632_v48  ;;  %4872 = vmatprep.mubr.msk.bf16.mxu0 %vm455_vm8, %v615_v63  ;;  %v5495_v48 = vld [vmem:[%s6959_s3 + $0xd8] sm:$0xff]  }
  0x3d   : > { %4896 = vmatprep.subr.bf16.mxu0 %v5758_v4  ;;  %v5503_v63 = vld [vmem:[%s6959_s3 + $0xf8] sm:$0xff]  }
  0x47   : > { %4873 = vmatmul.mubr.msk.bf16.vlgmr.msra.gmra.mrb[0].mxu0 %vm455_vm8, %v624_v2  ;;  %v1082_v2 = vrot.slane %v1080_v61, 1 }
  0x48   : > { %4897 = vmatpush3.bf16.msra.mxu0 %v5474_v1  ;;  %4912 = vmatprep.mubr.msk.bf16.mxu0 %vm5759_vm11, %v5978_v16 }
  0x49   : > { %4898 = vmatprep.subr.bf16.mxu0 %v5758_v4 }
  0x4c   : > { %4899 = vmatpush3.bf16.msra.mxu0 %v5475_v3  ;;  %v5504_v3 = vld [vmem:[%s6959_s3 + $0x70] sm:$0xff]  }
  0x4d   : > { %4900 = vmatprep.subr.bf16.mxu0 %v5758_v4 }
  0x50   : > { %4901 = vmatpush3.bf16.msra.mxu0 %v5477_v5 }
  0x51   : > { %4902 = vmatprep.subr.bf16.mxu0 %v5758_v4 }
  0x54   : > { %4903 = vmatpush3.bf16.msra.mxu0 %v5479_v6  ;;  %v5505_v6 = vld [vmem:[%s6959_s3 + $0x78] sm:$0xff]  }
  0x55   : > { %4904 = vmatprep.subr.bf16.mxu0 %v5758_v4 }
  0x58   : > { %4905 = vmatpush3.bf16.msra.mxu0 %v5481_v8  ;;  %v5507_v8 = vld [vmem:[%s6961_s5 + $0x48] sm:$0xff]  }
  0x59   : > { %4906 = vmatprep.subr.bf16.mxu0 %v5758_v4 }
  0x5c   : > { %4907 = vmatpush3.bf16.msra.mxu0 %v5483_v10  ;;  %v5510_v10 = vld [vmem:[%s6961_s5 + $0x58] sm:$0xff]  }
  0x5d   : > { %4908 = vmatprep.subr.bf16.mxu0 %v5758_v4 }
  0x60   : > { %4909 = vmatpush3.bf16.msra.mxu0 %v5485_v12  ;;  %v5512_v12 = vld [vmem:[%s6961_s5 + $0x60] sm:$0xff]  }
  0x61   : > { %4910 = vmatprep.subr.bf16.mxu0 %v5758_v4  ;;  %v5490_v4 = vld [vmem:[%s6959_s3 + $0xb8] sm:$0xff]  }
  0x62   : > { %4891 = vmatpush3.bf16.msra.mxu1 %v5490_v4  ;;  %v5516_v4 = vld [vmem:[%s6961_s5 + $0x70] sm:$0xff]  }
  0x63   : > { %4916 = vmatprep.subr.bf16.mxu1 %v5978_v16 }
  0x64   : > { %4911 = vmatpush3.bf16.msra.mxu0 %v5487_v14  ;;  %v5514_v14 = vld [vmem:[%s6961_s5 + $0x68] sm:$0xff]  }
  0x65   : > { %4936 = vmatprep.subr.bf16.mxu0 %v5978_v16 }
 0x11a   : > { %v4874_v18 = vpop.f32.mrb[0].mxu0 }
 0x11b   : > { %v696_v19 = vadd.f32 %v4874_v18, %v4005_v17  ;;  %v668_v20 = vpop.f32.mrb[1].mxu0  ;;  %v5518_v18 = vld [vmem:[%s6961_s5 + $0x78] sm:$0xff]  }
 0x11c   : > { %v694_v21 = vadd.f32 %v4005_v17, %v668_v20  ;;  %v4875_v22 = vpop.f32.mrb[2].mxu0  ;;  %v1188_v20 = vld [vmem:[#allocation3 + $0x10] sm:$0x3] }
 0x11d   : > { %v700_v23 = vmax.f32 %v696_v19, 0.0  ;;  %v697_v24 = vadd.f32 %v4875_v22, %v4005_v17  ;;  %v671_v25 = vpop.f32.mrb[3].mxu0  ;;  %v5517_v19 = vld [vmem:[%s6961_s5 + $0x20] sm:$0xff]   ;;  %v1189_v22 = vsel %vm1187_vm13, 0, %v1188_v20  ;;  %v5529_v20 = vld [vmem:[%s6961_s5 + $0xb8] sm:$0xff]  }
 0x11e   : > { %v698_v26 = vmax.f32 %v694_v21, 0.0  ;;  %v695_v27 = vadd.f32 %v4005_v17, %v671_v25  ;;  %v5515_v17 = vld [vmem:[%s6961_s5 + $0x18] sm:$0xff]   ;;  %v5519_v21 = vld [vmem:[%s6961_s5 + $0x28] sm:$0xff]   ;;  %1190 = vst [vmem:[#allocation3 + $0x10] sm:$0x3] %v1189_v22 }
 0x11f   : > { %704 = vst [vmem:[#allocation2 + $0x20] sm:$0xff] %v700_v23  ;;  %v701_v28 = vmax.f32 %v697_v24, 0.0  ;;  %v5520_v23 = vld [vmem:[%s6961_s5 + $0x30] sm:$0xff]   ;;  %v5522_v24 = vld [vmem:[%s6961_s5 + $0x38] sm:$0xff]  }
 0x120   : > { %702 = vst [vmem:[#allocation2 + $0x10] sm:$0xff] %v698_v26  ;;  %v699_v29 = vmax.f32 %v695_v27, 0.0 }
 0x121   : > { %705 = vst [vmem:[#allocation2 + $0x28] sm:$0xff] %v701_v28 }
 0x122   : > { %703 = vst [vmem:[#allocation2 + $0x18] sm:$0xff] %v699_v29 }
 0x128   : > { %v712_v30 = vld [vmem:[#allocation2 + $0x2f] ss:$2 sm:$0x1]  ;;  %v942_v31 = vld [vmem:[#allocation2 + $0x20] ss:$2 sm:$0xff] }
 0x129   : > { %v708_v32 = vld [vmem:[#allocation2 + $0xf] ss:$2 sm:$0xff]  ;;  %v710_v33 = vld [vmem:[#allocation2 + $0x1f] ss:$2 sm:$0xff]  ;;  %v714_v35 = vpack.c.bf16 %v712_v30, %v712_v30  ;;  %2163 = vst [vmem:[#allocation2 + $0x20] sm:$0x1] %v5978_v16 }
 0x12a   : > { %v713_v36 = vpack.c.bf16 %v710_v33, %v708_v32  ;;  %v940_v49 = vld [vmem:[#allocation2 + $0x10] ss:$2 sm:$0xff] }
 0x12b   : > { %v756_v38 = vshll.u32 %v714_v35, 16  ;;  %v945_v52 = vpack.c.bf16 %v942_v31, %v940_v49 }
 0x12c   : > { %4913 = vmatmul.mubr.bf16.vlgmr.msra.gmra.mrb[4].mxu0 %v713_v36  ;;  %v751_v37 = vshll.u32 %v713_v36, 16  ;;  %v749_v40 = vshrl.u32 %v713_v36, 16 }
 0x12d   : > { %4937 = vmatpush3.bf16.msra.mxu0 %v5489_v34  ;;  %4952 = vmatprep.mubr.msk.bf16.mxu0 %vm5759_vm11, %v5978_v16  ;;  %v758_v43 = vrot.slane %v756_v38, 1  ;;  %v1075_v57 = vshll.u32 %v945_v52, 16  ;;  %v1073_v0 = vshrl.u32 %v945_v52, 16 }
 0x12e   : > { %4938 = vmatprep.subr.bf16.mxu0 %v5978_v16  ;;  %v753_v41 = vrot.slane %v751_v37, 1 }
 0x12f   : > { %v1077_v60 = vrot.slane %v1075_v57, 1  ;;  %v1326_v57 = vshll.u32 %v1197_v54, 16 }
 0x130   : > { %v754_v42 = vor.u32 %v753_v41, %v749_v40 }
 0x131   : > { %4939 = vmatpush3.bf16.msra.mxu0 %v5491_v39  ;;  %v1078_v1 = vor.u32 %v1077_v60, %v1073_v0  ;;  %v1328_v60 = vrot.slane %v1326_v57, 7  ;;  %v5525_v0 = vld [vmem:[%s6961_s5 + $0x98] sm:$0xff]  }
 0x132   : > { %v759_v46 = vsel %vm518_vm9, %v754_v42, %v758_v43  ;;  %4940 = vmatprep.subr.bf16.mxu0 %v5978_v16  ;;  %v4086_v42 = vld [vmem:[%s6960_s4] ss:$0 sm:$0xff] }
 0x133   : > { %4893 = vmatmul.mubr.bf16.vlgmr.msra.gmra.mrb[0].mxu1 %v759_v46  ;;  %v1083_v5 = vsel %vm518_vm9, %v1078_v1, %v1082_v2 }
 0x134   : > { %4917 = vmatpush3.bf16.msra.mxu1 %v5492_v44  ;;  %4932 = vmatprep.mubr.msk.bf16.mxu1 %vm5759_vm11, %v5978_v16 }
 0x135   : > { %4941 = vmatpush3.bf16.msra.mxu0 %v5493_v45  ;;  %4918 = vmatprep.subr.bf16.mxu1 %v5978_v16 }
 0x136   : > { %4942 = vmatprep.subr.bf16.mxu0 %v5978_v16 }
 0x138   : > { %4919 = vmatpush3.bf16.msra.mxu1 %v5494_v47 }
 0x139   : > { %4943 = vmatpush3.bf16.msra.mxu0 %v5495_v48  ;;  %4920 = vmatprep.subr.bf16.mxu1 %v5978_v16 }
 0x13a   : > { %4944 = vmatprep.subr.bf16.mxu0 %v5978_v16 }
 0x13c   : > { %4921 = vmatpush3.bf16.msra.mxu1 %v5496_v50 }
 0x13d   : > { %4945 = vmatpush3.bf16.msra.mxu0 %v5497_v51  ;;  %4922 = vmatprep.subr.bf16.mxu1 %v5978_v16 }
 0x13e   : > { %4946 = vmatprep.subr.bf16.mxu0 %v5978_v16 }
 0x140   : > { %4923 = vmatpush3.bf16.msra.mxu1 %v5498_v53 }
 0x141   : > { %4947 = vmatpush3.bf16.msra.mxu0 %v5499_v55  ;;  %4924 = vmatprep.subr.bf16.mxu1 %v5978_v16  ;;  %v5523_v55 = vld [vmem:[%s6961_s5 + $0x88] sm:$0xff]  }
 0x142   : > { %4948 = vmatprep.subr.bf16.mxu0 %v5978_v16 }
 0x144   : > { %4925 = vmatpush3.bf16.msra.mxu1 %v5500_v58  ;;  %v5524_v58 = vld [vmem:[%s6961_s5 + $0x90] sm:$0xff]  }
 0x145   : > { %4949 = vmatpush3.bf16.msra.mxu0 %v5501_v59  ;;  %4926 = vmatprep.subr.bf16.mxu1 %v5978_v16  ;;  %v1325_v59 = vrot.slane %v1323_v56, 6 }
 0x146   : > { %4950 = vmatprep.subr.bf16.mxu0 %v5978_v16 }
 0x147   : > { %v1329_v1 = vor.u32 %v1328_v60, %v1325_v59  ;;  %v5541_v59 = vld [vmem:[%s6961_s5 + $0xc0] sm:$0xff]   ;;  %v5542_v60 = vld [vmem:[%s6961_s5 + $0x118] sm:$0xff]  }
 0x148   : > { %4927 = vmatpush3.bf16.msra.mxu1 %v5502_v62 }
 0x149   : > { %4951 = vmatpush3.bf16.msra.mxu0 %v5503_v63  ;;  %4928 = vmatprep.subr.bf16.mxu1 %v5978_v16 }
 0x14a   : > { %4976 = vmatprep.subr.bf16.mxu0 %v5978_v16 }
 0x14c   : > { %4929 = vmatpush3.bf16.msra.mxu1 %v5504_v3  ;;  %4953 = vmatmul.mubr.bf16.vlgmr.msra.gmra.mrb[8].mxu0 %v1083_v5 }
 0x14d   : > { %4930 = vmatprep.subr.bf16.mxu1 %v5978_v16  ;;  %4992 = vmatprep.mubr.msk.bf16.mxu0 %vm5759_vm11, %v5978_v16 }
 0x14e   : > { %4977 = vmatpush3.bf16.msra.mxu0 %v5509_v11 }
 0x14f   : > { %4978 = vmatprep.subr.bf16.mxu0 %v5978_v16 }
 0x150   : > { %4931 = vmatpush3.bf16.msra.mxu1 %v5505_v6  ;;  %v5526_v6 = vld [vmem:[%s6961_s5 + $0xa0] sm:$0xff]  }
 0x151   : > { %4956 = vmatprep.subr.bf16.mxu1 %v5978_v16 }
 0x152   : > { %4979 = vmatpush3.bf16.msra.mxu0 %v5511_v13 }
 0x153   : > { %4933 = vmatmul.mubr.bf16.vlgmr.msra.gmra.mrb[4].mxu1 %v945_v52  ;;  %4980 = vmatprep.subr.bf16.mxu0 %v5978_v16  ;;  %v5521_v52 = vld [vmem:[%s6961_s5 + $0x80] sm:$0xff]  }
 0x154   : > { %4972 = vmatprep.mubr.msk.bf16.mxu1 %vm5759_vm11, %v5978_v16  ;;  %4957 = vmatpush3.bf16.msra.mxu1 %v5506_v7 }
 0x155   : > { %4958 = vmatprep.subr.bf16.mxu1 %v5978_v16 }
 0x156   : > { %4981 = vmatpush3.bf16.msra.mxu0 %v5513_v15  ;;  %v5528_v15 = vld [vmem:[%s6961_s5 + $0xb0] sm:$0xff]  }
 0x157   : > { %4982 = vmatprep.subr.bf16.mxu0 %v5978_v16 }
 0x158   : > { %4959 = vmatpush3.bf16.msra.mxu1 %v5507_v8 }
 0x159   : > { %4960 = vmatprep.subr.bf16.mxu1 %v5978_v16 }
 0x15a   : > { %4983 = vmatpush3.bf16.msra.mxu0 %v5515_v17 }
 0x15b   : > { %4984 = vmatprep.subr.bf16.mxu0 %v5978_v16 }
 0x15c   : > { %4961 = vmatpush3.bf16.msra.mxu1 %v5508_v9  ;;  %v1430_v9 = vld [vmem:[#allocation3 + $0x10] sm:$0x3] }
 0x15d   : > { %4962 = vmatprep.subr.bf16.mxu1 %v5978_v16  ;;  %v1457_v13 = vshrl.u32 %v1430_v9, 16 }
 0x15e   : > { %4985 = vmatpush3.bf16.msra.mxu0 %v5517_v19 }
 0x15f   : > { %4986 = vmatprep.subr.bf16.mxu0 %v5978_v16 }
 0x160   : > { %4963 = vmatpush3.bf16.msra.mxu1 %v5510_v10  ;;  %v5527_v10 = vld [vmem:[%s6961_s5 + $0xa8] sm:$0xff]  }
 0x161   : > { %4964 = vmatprep.subr.bf16.mxu1 %v5978_v16 }
 0x162   : > { %4987 = vmatpush3.bf16.msra.mxu0 %v5519_v21 }
 0x163   : > { %4988 = vmatprep.subr.bf16.mxu0 %v5978_v16 }
 0x164   : > { %4965 = vmatpush3.bf16.msra.mxu1 %v5512_v12 }
 0x165   : > { %4966 = vmatprep.subr.bf16.mxu1 %v5978_v16 }
 0x166   : > { %4989 = vmatpush3.bf16.msra.mxu0 %v5520_v23 }
 0x167   : > { %4990 = vmatprep.subr.bf16.mxu0 %v5978_v16 }
 0x168   : > { %4967 = vmatpush3.bf16.msra.mxu1 %v5514_v14  ;;  %v1460_v14 = vshll.u32 %v1430_v9, 16  ;;  %v4144_v9 = vld [vmem:[%s6964_s8] ss:$0 sm:$0xff] }
 0x169   : > { %4968 = vmatprep.subr.bf16.mxu1 %v5978_v16 }
 0x16a   : > { %4991 = vmatpush3.bf16.msra.mxu0 %v5522_v24  ;;  %v1462_v19 = vrot.slane %v1460_v14, 2  ;;  %v5530_v24 = vld [vmem:[%s6963_s7] sm:$0xff]  }
 0x16b   : > { %5016 = vmatprep.subr.bf16.mxu0 %v5978_v16 }
 0x16c   : > { %4969 = vmatpush3.bf16.msra.mxu1 %v5516_v4 }
 0x16d   : > { %4970 = vmatprep.subr.bf16.mxu1 %v5978_v16 }
 0x170   : > { %4971 = vmatpush3.bf16.msra.mxu1 %v5518_v18  ;;  %v1459_v18 = vrot.slane %v1457_v13, 1 }
 0x171   : > { %4996 = vmatprep.subr.bf16.mxu1 %v5978_v16 }
 0x172   : > { %v1463_v22 = vor.u32 %v1462_v19, %v1459_v18  ;;  %v1687_v18 = vld [vmem:[#allocation3] sm:$0x80] }
 0x1ff   : > { %v932_v25 = vpop.f32.mrb[4].mxu0 }
 0x200   : > { %v4914_v26 = vpop.f32.mrb[5].mxu0 }
 0x201   : > { %v935_v27 = vpop.f32.mrb[6].mxu0  ;;  %v5532_v26 = vld [vmem:[%s6963_s7 + $0x10] sm:$0xff]  }
 0x202   : > { %v4915_v28 = vpop.f32.mrb[7].mxu0 }
 0x203   : > { %v5534_v28 = vld [vmem:[%s6963_s7 + $0x20] sm:$0xff]  }
 0x206   : > { %v843_v29 = vpop.f32.mrb[0].mxu1 }
 0x207   : > { %v933_v30 = vadd.f32 %v932_v25, %v843_v29  ;;  %v4894_v31 = vpop.f32.mrb[1].mxu1  ;;  %v5531_v25 = vld [vmem:[%s6963_s7 + $0x8] sm:$0xff]  }
 0x208   : > { %v846_v32 = vpop.f32.mrb[2].mxu1  ;;  %v5535_v29 = vld [vmem:[%s6963_s7 + $0x28] sm:$0xff]   ;;  %v5537_v31 = vld [vmem:[%s6963_s7 + $0x38] sm:$0xff]  }
 0x209   : > { %v936_v33 = vadd.f32 %v935_v27, %v846_v32  ;;  %v4895_v34 = vpop.f32.mrb[3].mxu1  ;;  %v5533_v27 = vld [vmem:[%s6963_s7 + $0x18] sm:$0xff]   ;;  %v5538_v32 = vld [vmem:[%s6961_s5 + $0x100] sm:$0xff]  }
 0x21f   : > { %v1167_v35 = vpop.f32.mrb[8].mxu0 }
 0x220   : > { %v4954_v36 = vpop.f32.mrb[9].mxu0 }
 0x221   : > { %v1170_v37 = vpop.f32.mrb[10].mxu0 }
 0x222   : > { %v4955_v38 = vpop.f32.mrb[11].mxu0 }
 0x226   : > { %v1046_v39 = vpop.f32.mrb[4].mxu1 }
 0x227   : > { %v1053_v40 = vadd.f32 %v1046_v39, %v933_v30  ;;  %v4934_v41 = vpop.f32.mrb[5].mxu1  ;;  %v5536_v30 = vld [vmem:[%s6963_s7 + $0x30] sm:$0xff]  }
 0x228   : > { %v1049_v43 = vpop.f32.mrb[6].mxu1 }
 0x229   : > { %v1174_v44 = vadd.f32 %v1167_v35, %v1053_v40  ;;  %v1054_v45 = vadd.f32 %v1049_v43, %v936_v33  ;;  %v4935_v46 = vpop.f32.mrb[7].mxu1  ;;  %v5539_v33 = vld [vmem:[%s6961_s5 + $0x108] sm:$0xff]  }
 0x22b   : > { %v6137_v47 = vadd.f32 %v4086_v42, %v1174_v44  ;;  %v1175_v48 = vadd.f32 %v1170_v37, %v1054_v45  ;;  %v4143_v45 = vld [vmem:[%s6962_s6] ss:$0 sm:$0xff] }
 0x22d   : > { %v6139_v49 = vadd.f32 %v4086_v42, %v1175_v48  ;;  %v1193_v50 = vmax.f32 %v6137_v47, 0.0 }
 0x22f   : > { %v1194_v51 = vmax.f32 %v6139_v49, 0.0 }
 0x231   : > { %v1195_v53 = vpack.c.bf16 %v1194_v51, %v1193_v50 }
 0x233   : > { %1196 = vst [vmem:[#allocation3 + $0x8] sm:$0xff] %v1195_v53  ;;  %4973 = vmatmul.mubr.bf16.vlgmr.msra.gmra.mrb[8].mxu1 %v1195_v53 }
 0x234   : > { %4997 = vmatpush3.bf16.msra.mxu1 %v5521_v52  ;;  %5012 = vmatprep.mubr.msk.bf16.mxu1 %vm5759_vm11, %v5978_v16 }
 0x235   : > { %4998 = vmatprep.subr.bf16.mxu1 %v5978_v16 }
 0x238   : > { %4999 = vmatpush3.bf16.msra.mxu1 %v5523_v55 }
 0x239   : > { %5000 = vmatprep.subr.bf16.mxu1 %v5978_v16 }
 0x23a   : > { %v1198_v61 = vld [vmem:[#allocation3 + $0x8] sm:$0x7f] }
 0x23b   : > { %v1331_v62 = vshrl.u32 %v1198_v61, 16  ;;  %v1334_v63 = vshll.u32 %v1198_v61, 16  ;;  %v1429_v8 = vld [vmem:[#allocation3 + $0x8] sm:$0xfe]  ;;  %v5543_v61 = vld [vmem:[%s6961_s5 + $0xc8] sm:$0xff]  }
 0x23c   : > { %5001 = vmatpush3.bf16.msra.mxu1 %v5524_v58  ;;  %v1449_v11 = vshrl.u32 %v1429_v8, 16  ;;  %v1452_v12 = vshll.u32 %v1429_v8, 16  ;;  %v5540_v58 = vld [vmem:[%s6961_s5 + $0x110] sm:$0xff]   ;;  %v5554_v8 = vld [vmem:[%s6961_s5 + $0xf8] sm:$0xff]  }
 0x23d   : > { %v1333_v2 = vrot.slane %v1331_v62, 6  ;;  %v1336_v3 = vrot.slane %v1334_v63, 7  ;;  %5002 = vmatprep.subr.bf16.mxu1 %v5978_v16  ;;  %v5544_v62 = vld [vmem:[%s6961_s5 + $0x120] sm:$0xff]   ;;  %v5545_v63 = vld [vmem:[%s6961_s5 + $0xd0] sm:$0xff]  }
 0x23e   : > { %v1451_v4 = vrot.slane %v1449_v11, 1  ;;  %v1454_v17 = vrot.slane %v1452_v12, 2 }
 0x23f   : > { %v1337_v5 = vor.u32 %v1336_v3, %v1333_v2  ;;  %v5548_v2 = vld [vmem:[%s6961_s5 + $0x130] sm:$0xff]   ;;  %v5549_v3 = vld [vmem:[%s6961_s5 + $0xe0] sm:$0xff]  }
 0x240   : > { %5003 = vmatpush3.bf16.msra.mxu1 %v5525_v0  ;;  %v1455_v21 = vor.u32 %v1454_v17, %v1451_v4  ;;  %v5546_v0 = vld [vmem:[%s6961_s5 + $0x128] sm:$0xff]  }
 0x241   : > { %v1338_v7 = vsel %vm1186_vm12, %v1329_v1, %v1337_v5  ;;  %5004 = vmatprep.subr.bf16.mxu1 %v5978_v16  ;;  %v5547_v1 = vld [vmem:[%s6961_s5 + $0xd8] sm:$0xff]  }
 0x242   : > { %4993 = vmatmul.mubr.bf16.vlgmr.msra.gmra.mrb[12].mxu0 %v1338_v7  ;;  %v1464_v23 = vsel %vm603_vm10, %v1455_v21, %v1463_v22  ;;  %v5550_v5 = vld [vmem:[%s6961_s5 + $0x138] sm:$0xff]   ;;  %v5552_v7 = vld [vmem:[%s6961_s5 + $0xf0] sm:$0xff]   ;;  %v5553_v21 = vld [vmem:[%s6961_s5 + $0x140] sm:$0xff]   ;;  %v1814_v22 = vshrl.u32 %v1687_v18, 16 }
 0x243   : > { %5032 = vmatprep.mubr.msk.bf16.mxu0 %vm5759_vm11, %v5978_v16  ;;  %5017 = vmatpush3.bf16.msra.mxu0 %v5530_v24  ;;  %v5571_v18 = vld [vmem:[%s6959_s3 + $0x108] sm:$0xff]  }
 0x244   : > { %5005 = vmatpush3.bf16.msra.mxu1 %v5526_v6  ;;  %5018 = vmatprep.subr.bf16.mxu0 %v5978_v16  ;;  %v5551_v6 = vld [vmem:[%s6961_s5 + $0xe8] sm:$0xff]   ;;  %v1816_v24 = vrot.slane %v1814_v22, 7  ;;  %v5578_v22 = vld [vmem:[%s6959_s3 + $0x198] sm:$0xff]  }
 0x245   : > { %5006 = vmatprep.subr.bf16.mxu1 %v5978_v16 }
 0x247   : > { %5019 = vmatpush3.bf16.msra.mxu0 %v5531_v25 }
 0x248   : > { %5007 = vmatpush3.bf16.msra.mxu1 %v5527_v10  ;;  %5020 = vmatprep.subr.bf16.mxu0 %v5978_v16 }
 0x249   : > { %5008 = vmatprep.subr.bf16.mxu1 %v5978_v16 }
 0x24b   : > { %5021 = vmatpush3.bf16.msra.mxu0 %v5532_v26 }
 0x24c   : > { %5009 = vmatpush3.bf16.msra.mxu1 %v5528_v15  ;;  %5022 = vmatprep.subr.bf16.mxu0 %v5978_v16 }
 0x24d   : > { %5010 = vmatprep.subr.bf16.mxu1 %v5978_v16 }
 0x24f   : > { %5023 = vmatpush3.bf16.msra.mxu0 %v5533_v27 }
 0x250   : > { %5011 = vmatpush3.bf16.msra.mxu1 %v5529_v20  ;;  %5024 = vmatprep.subr.bf16.mxu0 %v5978_v16 }
 0x251   : > { %5036 = vmatprep.subr.bf16.mxu1 %v5978_v16 }
 0x253   : > { %5013 = vmatmul.mubr.bf16.vlgmr.msra.gmra.mrb[12].mxu1 %v1464_v23  ;;  %5025 = vmatpush3.bf16.msra.mxu0 %v5534_v28  ;;  %v5556_v28 = vld [vmem:[%s6961_s5 + $0x150] sm:$0xff]  }
 0x254   : > { %5052 = vmatprep.mubr.msk.bf16.mxu1 %vm5759_vm11, %v5978_v16  ;;  %5026 = vmatprep.subr.bf16.mxu0 %v5978_v16 }
 0x255   : > { %5037 = vmatpush3.bf16.msra.mxu1 %v5538_v32  ;;  %v5557_v32 = vld [vmem:[%s6961_s5 + $0x158] sm:$0xff]  }
 0x256   : > { %5038 = vmatprep.subr.bf16.mxu1 %v5978_v16 }
 0x257   : > { %5027 = vmatpush3.bf16.msra.mxu0 %v5535_v29 }
 0x258   : > { %5028 = vmatprep.subr.bf16.mxu0 %v5978_v16 }
 0x259   : > { %5039 = vmatpush3.bf16.msra.mxu1 %v5539_v33  ;;  %v5558_v33 = vld [vmem:[%s6961_s5 + $0x160] sm:$0xff]  }
 0x25a   : > { %5040 = vmatprep.subr.bf16.mxu1 %v5978_v16 }
 0x25b   : > { %5029 = vmatpush3.bf16.msra.mxu0 %v5536_v30 }
 0x25c   : > { %5030 = vmatprep.subr.bf16.mxu0 %v5978_v16 }
 0x25d   : > { %5041 = vmatpush3.bf16.msra.mxu1 %v5540_v58 }
 0x25e   : > { %5042 = vmatprep.subr.bf16.mxu1 %v5978_v16 }
 0x25f   : > { %5031 = vmatpush3.bf16.msra.mxu0 %v5537_v31 }
 0x260   : > { %5056 = vmatprep.subr.bf16.mxu0 %v5978_v16 }
 0x261   : > { %5043 = vmatpush3.bf16.msra.mxu1 %v5542_v60 }
 0x262   : > { %5044 = vmatprep.subr.bf16.mxu1 %v5978_v16 }
 0x265   : > { %5045 = vmatpush3.bf16.msra.mxu1 %v5544_v62 }
 0x266   : > { %5046 = vmatprep.subr.bf16.mxu1 %v5978_v16 }
 0x269   : > { %5047 = vmatpush3.bf16.msra.mxu1 %v5546_v0 }
 0x26a   : > { %5048 = vmatprep.subr.bf16.mxu1 %v5978_v16 }
 0x26d   : > { %5049 = vmatpush3.bf16.msra.mxu1 %v5548_v2 }
 0x26e   : > { %5050 = vmatprep.subr.bf16.mxu1 %v5978_v16 }
 0x271   : > { %5051 = vmatpush3.bf16.msra.mxu1 %v5550_v5 }
 0x272   : > { %5076 = vmatprep.subr.bf16.mxu1 %v5978_v16 }
 0x306   : > { %v1315_v34 = vpop.f32.mrb[8].mxu1 }
 0x307   : > { %v4974_v35 = vpop.f32.mrb[9].mxu1 }
 0x308   : > { %v1318_v36 = vpop.f32.mrb[10].mxu1  ;;  %v1916_v35 = vld [vmem:[#allocation3 + $0x10] sm:$0x1] }
 0x309   : > { %v4975_v37 = vpop.f32.mrb[11].mxu1 }
 0x315   : > { %v1422_v38 = vpop.f32.mrb[12].mxu0 }
 0x316   : > { %v1423_v39 = vadd.f32 %v1422_v38, %v1315_v34  ;;  %v4994_v40 = vpop.f32.mrb[13].mxu0  ;;  %v5559_v34 = vld [vmem:[%s6961_s5 + $0x168] sm:$0xff]   ;;  %v1942_v38 = vshll.u32 %v1916_v35, 16 }
 0x317   : > { %v1425_v41 = vpop.f32.mrb[14].mxu0 }
 0x318   : > { %v1426_v42 = vadd.f32 %v1425_v41, %v1318_v36  ;;  %v4995_v43 = vpop.f32.mrb[15].mxu0  ;;  %v5560_v36 = vld [vmem:[%s6961_s5 + $0x170] sm:$0xff]   ;;  %v1944_v41 = vrot.slane %v1942_v38, 1 }
 0x319   : > { %v5562_v43 = vld [vmem:[%s6963_s7 + $0x40] sm:$0xff]  }
 0x326   : > { %v1548_v44 = vpop.f32.mrb[12].mxu1 }
 0x327   : > { %v1555_v46 = vadd.f32 %v1548_v44, %v1423_v39  ;;  %v5014_v48 = vpop.f32.mrb[13].mxu1  ;;  %v5561_v39 = vld [vmem:[%s6961_s5 + $0x178] sm:$0xff]   ;;  %v5563_v44 = vld [vmem:[%s6963_s7 + $0x48] sm:$0xff]  }
 0x328   : > { %v1551_v50 = vpop.f32.mrb[14].mxu1  ;;  %v5566_v48 = vld [vmem:[%s6963_s7 + $0x60] sm:$0xff]  }
 0x329   : > { %v1562_v51 = vadd.f32 %v4143_v45, %v1555_v46  ;;  %v1556_v52 = vadd.f32 %v1551_v50, %v1426_v42  ;;  %v5015_v53 = vpop.f32.mrb[15].mxu1  ;;  %v5565_v46 = vld [vmem:[%s6963_s7 + $0x58] sm:$0xff]   ;;  %v5567_v50 = vld [vmem:[%s6963_s7 + $0x68] sm:$0xff]  }
 0x32a   : > { %v5572_v53 = vld [vmem:[%s6959_s3 + $0x180] sm:$0xff]  }
 0x32b   : > { %v1563_v54 = vadd.f32 %v4143_v45, %v1556_v52  ;;  %v1564_v55 = vmax.f32 %v1562_v51, 0.0  ;;  %v5564_v45 = vld [vmem:[%s6963_s7 + $0x50] sm:$0xff]   ;;  %v5569_v52 = vld [vmem:[%s6963_s7 + $0x78] sm:$0xff]  }
 0x32c   : > { %v5568_v51 = vld [vmem:[%s6963_s7 + $0x70] sm:$0xff]  }
 0x32d   : > { %v1565_v56 = vmax.f32 %v1563_v54, 0.0  ;;  %v5574_v54 = vld [vmem:[%s6959_s3 + $0x188] sm:$0xff]  }
 0x32f   : > { %v1566_v57 = vpack.c.bf16 %v1565_v56, %v1564_v55  ;;  %v5576_v55 = vld [vmem:[%s6959_s3 + $0x190] sm:$0xff]  }
 0x331   : > { %5033 = vmatmul.mubr.bf16.vlgmr.msra.gmra.mrb[16].mxu0 %v1566_v57 }
 0x332   : > { %5072 = vmatprep.mubr.msk.bf16.mxu0 %vm5759_vm11, %v5978_v16  ;;  %5057 = vmatpush3.bf16.msra.mxu0 %v5541_v59 }
 0x333   : > { %5058 = vmatprep.subr.bf16.mxu0 %v5978_v16 }
 0x336   : > { %5059 = vmatpush3.bf16.msra.mxu0 %v5543_v61 }
 0x337   : > { %5060 = vmatprep.subr.bf16.mxu0 %v5978_v16 }
 0x33a   : > { %5061 = vmatpush3.bf16.msra.mxu0 %v5545_v63 }
 0x33b   : > { %5062 = vmatprep.subr.bf16.mxu0 %v5978_v16 }
 0x33e   : > { %5063 = vmatpush3.bf16.msra.mxu0 %v5547_v1 }
 0x33f   : > { %5064 = vmatprep.subr.bf16.mxu0 %v5978_v16 }
 0x342   : > { %5065 = vmatpush3.bf16.msra.mxu0 %v5549_v3  ;;  %v4225_v3 = vld [vmem:[%s6962_s6 + $0x1] ss:$0 sm:$0xff] }
 0x343   : > { %5066 = vmatprep.subr.bf16.mxu0 %v5978_v16 }
 0x346   : > { %5067 = vmatpush3.bf16.msra.mxu0 %v5551_v6 }
 0x347   : > { %5068 = vmatprep.subr.bf16.mxu0 %v5978_v16 }
 0x34a   : > { %5069 = vmatpush3.bf16.msra.mxu0 %v5552_v7 }
 0x34b   : > { %5070 = vmatprep.subr.bf16.mxu0 %v5978_v16 }
 0x34e   : > { %5071 = vmatpush3.bf16.msra.mxu0 %v5554_v8 }
 0x34f   : > { %5096 = vmatprep.subr.bf16.mxu0 %v5978_v16 }
 0x404   : > { %v1670_v10 = vpop.f32.mrb[16].mxu0 }
 0x405   : > { %v1671_v11 = vadd.f32 %v4144_v9, %v1670_v10  ;;  %v5034_v12 = vpop.f32.mrb[17].mxu0 }
 0x406   : > { %v1673_v13 = vpop.f32.mrb[18].mxu0 }
 0x407   : > { %v6288_v14 = vadd.f32 %v1671_v11, %v6137_v47  ;;  %v1674_v15 = vadd.f32 %v4144_v9, %v1673_v13  ;;  %v5035_v4 = vpop.f32.mrb[19].mxu0 }
 0x409   : > { %v6291_v17 = vadd.f32 %v1674_v15, %v6139_v49  ;;  %v1683_v19 = vmax.f32 %v6288_v14, 0.0  ;;  %v5555_v49 = vld [vmem:[%s6961_s5 + $0x148] sm:$0xff]   ;;  %v5570_v15 = vld [vmem:[%s6959_s3 + $0x100] sm:$0xff]  }
 0x40b   : > { %v1684_v20 = vmax.f32 %v6291_v17, 0.0 }
 0x40d   : > { %v1685_v23 = vpack.c.bf16 %v1684_v20, %v1683_v19  ;;  %v5573_v19 = vld [vmem:[%s6959_s3 + $0x110] sm:$0xff]   ;;  %v6394_v20 = vld [vmem:[#allocation2] sm:$0xff] }
 0x40f   : > { %1686 = vst [vmem:[#allocation3 + $0x8] sm:$0xff] %v1685_v23  ;;  %5053 = vmatmul.mubr.bf16.vlgmr.msra.gmra.mrb[16].mxu1 %v1685_v23  ;;  %v1818_v47 = vshrl.u32 %v1685_v23, 16  ;;  %v1821_v26 = vshll.u32 %v1685_v23, 16  ;;  %v5579_v23 = vld [vmem:[%s6959_s3 + $0x128] sm:$0xff]  }
 0x410   : > { %5077 = vmatpush3.bf16.msra.mxu1 %v5553_v21  ;;  %5092 = vmatprep.mubr.msk.bf16.mxu1 %vm5759_vm11, %v5978_v16  ;;  %v5575_v21 = vld [vmem:[%s6959_s3 + $0x118] sm:$0xff]  }
 0x411   : > { %5078 = vmatprep.subr.bf16.mxu1 %v5978_v16  ;;  %v1820_v25 = vrot.slane %v1818_v47, 7  ;;  %v1939_v37 = vrot.slane %v1821_v26, 1 }
 0x413   : > { %v1823_v27 = vor.u32 %v1821_v26, %v1820_v25  ;;  %v1940_v40 = vor.u32 %v1939_v37, %v1818_v47  ;;  %v5580_v47 = vld [vmem:[%s6959_s3 + $0x1a0] sm:$0xff]   ;;  %v5583_v25 = vld [vmem:[%s6959_s3 + $0x138] sm:$0xff]   ;;  %v5584_v26 = vld [vmem:[%s6959_s3 + $0x1b0] sm:$0xff]  }
 0x414   : > { %5079 = vmatpush3.bf16.msra.mxu1 %v5555_v49  ;;  %v5581_v49 = vld [vmem:[%s6959_s3 + $0x130] sm:$0xff]  }
 0x415   : > { %v1824_v29 = vsel %vm1812_vm0, %v1816_v24, %v1823_v27  ;;  %5080 = vmatprep.subr.bf16.mxu1 %v5978_v16  ;;  %v1945_v42 = vsel %vm518_vm9, %v1940_v40, %v1944_v41  ;;  %v5582_v24 = vld [vmem:[%s6959_s3 + $0x1a8] sm:$0xff]   ;;  %v5586_v27 = vld [vmem:[%s6959_s3 + $0x1b8] sm:$0xff]  }
 0x416   : > { %5073 = vmatmul.mubr.bf16.vlgmr.msra.gmra.mrb[20].mxu0 %v1824_v29  ;;  %v2618_v30 = vld [vmem:[#allocation3 + $0x8] sm:$0x30] }
 0x417   : > { %v2619_v31 = vsel %vm2617_vm1, 0, %v2618_v30  ;;  %5112 = vmatprep.mubr.msk.bf16.mxu0 %vm5759_vm11, %v5978_v16  ;;  %5097 = vmatpush3.bf16.msra.mxu0 %v5562_v43  ;;  %v5588_v43 = vld [vmem:[%s6959_s3 + $0x140] sm:$0xff]  }
 0x418   : > { %5081 = vmatpush3.bf16.msra.mxu1 %v5556_v28  ;;  %2620 = vst [vmem:[#allocation3 + $0x8] sm:$0x30] %v2619_v31  ;;  %5098 = vmatprep.subr.bf16.mxu0 %v5978_v16  ;;  %v4242_v28 = vld [vmem:[%s6964_s8 + $0x1] ss:$0 sm:$0xff] }
 0x419   : > { %5082 = vmatprep.subr.bf16.mxu1 %v5978_v16 }
 0x41b   : > { %5099 = vmatpush3.bf16.msra.mxu0 %v5563_v44 }
 0x41c   : > { %5083 = vmatpush3.bf16.msra.mxu1 %v5557_v32  ;;  %5100 = vmatprep.subr.bf16.mxu0 %v5978_v16 }
 0x41d   : > { %5084 = vmatprep.subr.bf16.mxu1 %v5978_v16 }
 0x41f   : > { %5101 = vmatpush3.bf16.msra.mxu0 %v5564_v45  ;;  %v5589_v45 = vld [vmem:[%s6959_s3 + $0x1d0] sm:$0xff]  }
 0x420   : > { %5085 = vmatpush3.bf16.msra.mxu1 %v5558_v33  ;;  %5102 = vmatprep.subr.bf16.mxu0 %v5978_v16 }
 0x421   : > { %5086 = vmatprep.subr.bf16.mxu1 %v5978_v16 }
 0x423   : > { %5103 = vmatpush3.bf16.msra.mxu0 %v5565_v46  ;;  %v5590_v46 = vld [vmem:[%s6959_s3 + $0x148] sm:$0xff]  }
 0x424   : > { %5087 = vmatpush3.bf16.msra.mxu1 %v5559_v34  ;;  %5104 = vmatprep.subr.bf16.mxu0 %v5978_v16 }
 0x425   : > { %5088 = vmatprep.subr.bf16.mxu1 %v5978_v16 }
 0x427   : > { %5105 = vmatpush3.bf16.msra.mxu0 %v5566_v48  ;;  %v5591_v48 = vld [vmem:[%s6959_s3 + $0x1d8] sm:$0xff]  }
 0x428   : > { %5089 = vmatpush3.bf16.msra.mxu1 %v5560_v36  ;;  %5106 = vmatprep.subr.bf16.mxu0 %v5978_v16 }
 0x429   : > { %5090 = vmatprep.subr.bf16.mxu1 %v5978_v16 }
 0x42b   : > { %5107 = vmatpush3.bf16.msra.mxu0 %v5567_v50  ;;  %v5592_v50 = vld [vmem:[%s6959_s3 + $0x150] sm:$0xff]  }
 0x42c   : > { %5091 = vmatpush3.bf16.msra.mxu1 %v5561_v39  ;;  %5108 = vmatprep.subr.bf16.mxu0 %v5978_v16  ;;  %v5585_v39 = vld [vmem:[%s6959_s3 + $0x1c0] sm:$0xff]  }
 0x42d   : > { %5116 = vmatprep.subr.bf16.mxu1 %v5978_v16 }
 0x42f   : > { %5093 = vmatmul.mubr.bf16.vlgmr.msra.gmra.mrb[20].mxu1 %v1945_v42  ;;  %5109 = vmatpush3.bf16.msra.mxu0 %v5568_v51  ;;  %v5593_v51 = vld [vmem:[%s6959_s3 + $0x1e0] sm:$0xff]  }
 0x430   : > { %5132 = vmatprep.mubr.msk.bf16.mxu1 %vm5759_vm11, %v5978_v16  ;;  %5110 = vmatprep.subr.bf16.mxu0 %v5978_v16 }
 0x431   : > { %5117 = vmatpush3.bf16.msra.mxu1 %v5572_v53 }
 0x432   : > { %5118 = vmatprep.subr.bf16.mxu1 %v5978_v16 }
 0x433   : > { %5111 = vmatpush3.bf16.msra.mxu0 %v5569_v52  ;;  %v5594_v52 = vld [vmem:[%s6959_s3 + $0x158] sm:$0xff]  }
 0x434   : > { %5136 = vmatprep.subr.bf16.mxu0 %v5978_v16 }
 0x435   : > { %5119 = vmatpush3.bf16.msra.mxu1 %v5574_v54  ;;  %v2386_v54 = vld [vmem:[#allocation2 + $0x20] ss:$2 sm:$0x1] }
 0x436   : > { %5120 = vmatprep.subr.bf16.mxu1 %v5978_v16 }
 0x439   : > { %5121 = vmatpush3.bf16.msra.mxu1 %v5576_v55  ;;  %v5595_v55 = vld [vmem:[%s6959_s3 + $0x1e8] sm:$0xff]  }
 0x43a   : > { %5122 = vmatprep.subr.bf16.mxu1 %v5978_v16 }
 0x43d   : > { %5123 = vmatpush3.bf16.msra.mxu1 %v5578_v22 }
 0x43e   : > { %5124 = vmatprep.subr.bf16.mxu1 %v6394_v20 }
 0x441   : > { %5125 = vmatpush3.bf16.msra.mxu1 %v5580_v47 }
 0x442   : > { %5126 = vmatprep.subr.bf16.mxu1 %v6394_v20 }
 0x445   : > { %5127 = vmatpush3.bf16.msra.mxu1 %v5582_v24 }
 0x446   : > { %5128 = vmatprep.subr.bf16.mxu1 %v6394_v20 }
 0x449   : > { %5129 = vmatpush3.bf16.msra.mxu1 %v5584_v26 }
 0x44a   : > { %5130 = vmatprep.subr.bf16.mxu1 %v6394_v20 }
 0x44d   : > { %5131 = vmatpush3.bf16.msra.mxu1 %v5586_v27 }
 0x44e   : > { %5156 = vmatprep.subr.bf16.mxu1 %v6394_v20 }
 0x4e2   : > { %v1805_v56 = vpop.f32.mrb[16].mxu1 }
 0x4e3   : > { %v5054_v57 = vpop.f32.mrb[17].mxu1 }
 0x4e4   : > { %v1808_v58 = vpop.f32.mrb[18].mxu1  ;;  %v5596_v57 = vld [vmem:[%s6959_s3 + $0x160] sm:$0xff]  }
 0x4e5   : > { %v5055_v59 = vpop.f32.mrb[19].mxu1 }
 0x4e9   : > { %v1908_v60 = vpop.f32.mrb[20].mxu0 }
 0x4ea   : > { %v1909_v61 = vadd.f32 %v1908_v60, %v1805_v56  ;;  %v5074_v62 = vpop.f32.mrb[21].mxu0  ;;  %v5598_v60 = vld [vmem:[%s6959_s3 + $0x168] sm:$0xff]  }
 0x4eb   : > { %v1911_v63 = vpop.f32.mrb[22].mxu0 }
 0x4ec   : > { %v1912_v0 = vadd.f32 %v1911_v63, %v1808_v58  ;;  %v5075_v1 = vpop.f32.mrb[23].mxu0  ;;  %v5597_v58 = vld [vmem:[%s6959_s3 + $0x1f0] sm:$0xff]  }
 0x4ed   : > { %v5600_v63 = vld [vmem:[%s6959_s3 + $0x170] sm:$0xff]  }
 0x502   : > { %v2029_v2 = vpop.f32.mrb[20].mxu1 }
 0x503   : > { %v2036_v5 = vadd.f32 %v2029_v2, %v1909_v61  ;;  %v5094_v6 = vpop.f32.mrb[21].mxu1  ;;  %v5599_v61 = vld [vmem:[%s6959_s3 + $0x1f8] sm:$0xff]  }
 0x504   : > { %v2032_v7 = vpop.f32.mrb[22].mxu1  ;;  %v5601_v2 = vld [vmem:[%s6959_s3 + $0x178] sm:$0xff]   ;;  %v5604_v6 = vld [vmem:[%s6961_s5 + $0x1d0] sm:$0xff]  }
 0x505   : > { %v2043_v8 = vadd.f32 %v4225_v3, %v2036_v5  ;;  %v2037_v9 = vadd.f32 %v2032_v7, %v1912_v0  ;;  %v5095_v10 = vpop.f32.mrb[23].mxu1  ;;  %v5603_v5 = vld [vmem:[%s6961_s5 + $0x1c8] sm:$0xff]   ;;  %v5605_v7 = vld [vmem:[%s6961_s5 + $0x180] sm:$0xff]  }
 0x506   : > { %v5608_v10 = vld [vmem:[%s6961_s5 + $0x1e0] sm:$0xff]  }
 0x507   : > { %v2044_v11 = vadd.f32 %v4225_v3, %v2037_v9  ;;  %v2045_v12 = vmax.f32 %v2043_v8, 0.0  ;;  %v5602_v3 = vld [vmem:[%s6961_s5 + $0x1c0] sm:$0xff]   ;;  %v5606_v8 = vld [vmem:[%s6961_s5 + $0x1d8] sm:$0xff]   ;;  %v5607_v9 = vld [vmem:[%s6961_s5 + $0x188] sm:$0xff]  }
 0x509   : > { %v2046_v13 = vmax.f32 %v2044_v11, 0.0  ;;  %v5609_v11 = vld [vmem:[%s6961_s5 + $0x190] sm:$0xff]  }
 0x50b   : > { %v2047_v4 = vpack.c.bf16 %v2046_v13, %v2045_v12  ;;  %v5610_v12 = vld [vmem:[%s6961_s5 + $0x1e8] sm:$0xff]   ;;  %v5611_v13 = vld [vmem:[%s6961_s5 + $0x198] sm:$0xff]  }
 0x50d   : > { %5113 = vmatmul.mubr.bf16.vlgmr.msra.gmra.mrb[24].mxu0 %v2047_v4  ;;  %v5613_v4 = vld [vmem:[%s6961_s5 + $0x1a0] sm:$0xff]  }
 0x50e   : > { %5137 = vmatpush3.bf16.msra.mxu0 %v5570_v15  ;;  %5152 = vmatprep.mubr.msk.bf16.mxu0 %vm5759_vm11, %v5978_v16  ;;  %v5612_v15 = vld [vmem:[%s6961_s5 + $0x1f0] sm:$0xff]  }
 0x50f   : > { %5138 = vmatprep.subr.bf16.mxu0 %v5978_v16  ;;  %v5577_v16 = vld [vmem:[%s6959_s3 + $0x120] sm:$0xff]  }
 0x512   : > { %5139 = vmatpush3.bf16.msra.mxu0 %v5571_v18  ;;  %v5614_v18 = vld [vmem:[%s6961_s5 + $0x1f8] sm:$0xff]  }
 0x513   : > { %5140 = vmatprep.subr.bf16.mxu0 %v6394_v20 }
 0x516   : > { %5141 = vmatpush3.bf16.msra.mxu0 %v5573_v19  ;;  %v5615_v19 = vld [vmem:[%s6961_s5 + $0x1a8] sm:$0xff]  }
 0x517   : > { %5142 = vmatprep.subr.bf16.mxu0 %v6394_v20 }
 0x51a   : > { %5143 = vmatpush3.bf16.msra.mxu0 %v5575_v21  ;;  %v5616_v21 = vld [vmem:[%s6961_s5 + $0x1b0] sm:$0xff]  }
 0x51b   : > { %5144 = vmatprep.subr.bf16.mxu0 %v6394_v20 }
 0x51e   : > { %5145 = vmatpush3.bf16.msra.mxu0 %v5577_v16  ;;  %v5618_v16 = vld [vmem:[%s6961_s5 + $0x1b8] sm:$0xff]  }
 0x51f   : > { %5146 = vmatprep.subr.bf16.mxu0 %v6394_v20 }
 0x522   : > { %5147 = vmatpush3.bf16.msra.mxu0 %v5579_v23 }
 0x523   : > { %5148 = vmatprep.subr.bf16.mxu0 %v6394_v20 }
 0x526   : > { %5149 = vmatpush3.bf16.msra.mxu0 %v5581_v49 }
 0x527   : > { %5150 = vmatprep.subr.bf16.mxu0 %v6394_v20 }
 0x52a   : > { %5151 = vmatpush3.bf16.msra.mxu0 %v5583_v25 }
 0x52b   : > { %5176 = vmatprep.subr.bf16.mxu0 %v6394_v20 }
 0x5e0   : > { %v2152_v29 = vpop.f32.mrb[24].mxu0 }
 0x5e1   : > { %v2153_v30 = vadd.f32 %v4242_v28, %v2152_v29  ;;  %v5114_v31 = vpop.f32.mrb[25].mxu0 }
 0x5e2   : > { %v2155_v32 = vpop.f32.mrb[26].mxu0 }
 0x5e3   : > { %v2159_v33 = vadd.f32 %v2153_v30, %v6288_v14  ;;  %v2156_v34 = vadd.f32 %v4242_v28, %v2155_v32  ;;  %v5115_v35 = vpop.f32.mrb[27].mxu0  ;;  %v5587_v14 = vld [vmem:[%s6959_s3 + $0x1c8] sm:$0xff]  }
 0x5e5   : > { %2161 = vst [vmem:[#allocation2 + $0x10] sm:$0xff] %v2159_v33  ;;  %v2160_v36 = vadd.f32 %v2156_v34, %v6291_v17 }
 0x5e7   : > { %2162 = vst [vmem:[#allocation2 + $0x18] sm:$0xff] %v2160_v36  ;;  %v4347_v36 = vld [vmem:[%s6960_s4 + $0x1] ss:$0 sm:$0xff] }
 0x5ee   : > { %v2164_v37 = vld [vmem:[#allocation2 + $0xf] ss:$2 sm:$0xff]  ;;  %v2165_v38 = vld [vmem:[#allocation2 + $0x1f] ss:$2 sm:$0x1] }
 0x5ef   : > { %v2166_v40 = vpack.c.bf16 %v2165_v38, %v2164_v37  ;;  %v2385_v53 = vld [vmem:[#allocation2 + $0x10] ss:$2 sm:$0xff] }
 0x5f0   : > { %v2387_v56 = vpack.c.bf16 %v2386_v54, %v2385_v53  ;;  %v5619_v53 = vld [vmem:[%s6961_s5 + $0x208] sm:$0xff]  }
 0x5f1   : > { %5153 = vmatmul.mubr.bf16.vlgmr.msra.gmra.mrb[28].mxu0 %v2166_v40  ;;  %v2204_v41 = vshll.u32 %v2166_v40, 16  ;;  %v2202_v17 = vshrl.u32 %v2166_v40, 16 }
 0x5f2   : > { %5177 = vmatpush3.bf16.msra.mxu0 %v5585_v39  ;;  %5192 = vmatprep.mubr.msk.bf16.mxu0 %vm5759_vm11, %v6394_v20  ;;  %v2514_v59 = vshll.u32 %v2387_v56, 16  ;;  %v2512_v0 = vshrl.u32 %v2387_v56, 16 }
 0x5f3   : > { %5178 = vmatprep.subr.bf16.mxu0 %v6394_v20  ;;  %v2206_v42 = vrot.slane %v2204_v41, 1 }
 0x5f4   : > { %v2516_v62 = vrot.slane %v2514_v59, 1 }
 0x5f5   : > { %v2207_v44 = vor.u32 %v2206_v42, %v2202_v17  ;;  %v2625_v17 = vld [vmem:[#allocation3] sm:$0xc0] }
 0x5f6   : > { %5179 = vmatpush3.bf16.msra.mxu0 %v5587_v14  ;;  %v2517_v1 = vor.u32 %v2516_v62, %v2512_v0  ;;  %v2751_v42 = vshrl.u32 %v2625_v17, 16  ;;  %v5623_v62 = vld [vmem:[%s6961_s5 + $0x228] sm:$0xff]   ;;  %v5624_v0 = vld [vmem:[%s6961_s5 + $0x230] sm:$0xff]  }
 0x5f7   : > { %5133 = vmatmul.mubr.bf16.vlgmr.msra.gmra.mrb[24].mxu1 %v2207_v44  ;;  %5180 = vmatprep.subr.bf16.mxu0 %v6394_v20  ;;  %v5617_v44 = vld [vmem:[%s6961_s5 + $0x200] sm:$0xff]  }
 0x5f8   : > { %5157 = vmatpush3.bf16.msra.mxu1 %v5588_v43  ;;  %5172 = vmatprep.mubr.msk.bf16.mxu1 %vm5759_vm11, %v6394_v20  ;;  %v2754_v43 = vshll.u32 %v2625_v17, 16  ;;  %v5642_v17 = vld [vmem:[%s6961_s5 + $0x2a8] sm:$0xff]  }
 0x5f9   : > { %5158 = vmatprep.subr.bf16.mxu1 %v6394_v20 }
 0x5fa   : > { %5181 = vmatpush3.bf16.msra.mxu0 %v5589_v45  ;;  %v2753_v45 = vrot.slane %v2751_v42, 6  ;;  %v5643_v42 = vld [vmem:[%s6961_s5 + $0x258] sm:$0xff]  }
 0x5fb   : > { %5182 = vmatprep.subr.bf16.mxu0 %v6394_v20 }
 0x5fc   : > { %5159 = vmatpush3.bf16.msra.mxu1 %v5590_v46  ;;  %v2756_v46 = vrot.slane %v2754_v43, 7  ;;  %v5644_v43 = vld [vmem:[%s6961_s5 + $0x2b0] sm:$0xff]  }
 0x5fd   : > { %5160 = vmatprep.subr.bf16.mxu1 %v6394_v20 }
 0x5fe   : > { %5183 = vmatpush3.bf16.msra.mxu0 %v5591_v48  ;;  %v2757_v54 = vor.u32 %v2756_v46, %v2753_v45  ;;  %v5646_v45 = vld [vmem:[%s6961_s5 + $0x2b8] sm:$0xff]   ;;  %v5647_v46 = vld [vmem:[%s6961_s5 + $0x268] sm:$0xff]  }
 0x5ff   : > { %5184 = vmatprep.subr.bf16.mxu0 %v6394_v20 }
 0x600   : > { %5161 = vmatpush3.bf16.msra.mxu1 %v5592_v50 }
 0x601   : > { %5162 = vmatprep.subr.bf16.mxu1 %v6394_v20 }
 0x602   : > { %5185 = vmatpush3.bf16.msra.mxu0 %v5593_v51 }
 0x603   : > { %5186 = vmatprep.subr.bf16.mxu0 %v6394_v20 }
 0x604   : > { %5163 = vmatpush3.bf16.msra.mxu1 %v5594_v52 }
 0x605   : > { %5164 = vmatprep.subr.bf16.mxu1 %v6394_v20 }
 0x606   : > { %5187 = vmatpush3.bf16.msra.mxu0 %v5595_v55 }
 0x607   : > { %5188 = vmatprep.subr.bf16.mxu0 %v6394_v20 }
 0x608   : > { %5165 = vmatpush3.bf16.msra.mxu1 %v5596_v57 }
 0x609   : > { %5166 = vmatprep.subr.bf16.mxu1 %v6394_v20 }
 0x60a   : > { %5189 = vmatpush3.bf16.msra.mxu0 %v5597_v58  ;;  %v5620_v58 = vld [vmem:[%s6961_s5 + $0x210] sm:$0xff]  }
 0x60b   : > { %5190 = vmatprep.subr.bf16.mxu0 %v6394_v20 }
 0x60c   : > { %5167 = vmatpush3.bf16.msra.mxu1 %v5598_v60  ;;  %v5621_v60 = vld [vmem:[%s6961_s5 + $0x218] sm:$0xff]  }
 0x60d   : > { %5168 = vmatprep.subr.bf16.mxu1 %v6394_v20 }
 0x60e   : > { %5191 = vmatpush3.bf16.msra.mxu0 %v5599_v61  ;;  %v5622_v61 = vld [vmem:[%s6961_s5 + $0x220] sm:$0xff]  }
 0x60f   : > { %5216 = vmatprep.subr.bf16.mxu0 %v6394_v20 }
 0x610   : > { %5169 = vmatpush3.bf16.msra.mxu1 %v5600_v63 }
 0x611   : > { %5193 = vmatmul.mubr.bf16.vlgmr.msra.gmra.mrb[32].mxu0 %v2517_v1  ;;  %5170 = vmatprep.subr.bf16.mxu1 %v6394_v20 }
 0x612   : > { %5232 = vmatprep.mubr.msk.bf16.mxu0 %vm5759_vm11, %v6394_v20  ;;  %5217 = vmatpush3.bf16.msra.mxu0 %v5605_v7 }
 0x613   : > { %5218 = vmatprep.subr.bf16.mxu0 %v6394_v20 }
 0x614   : > { %5171 = vmatpush3.bf16.msra.mxu1 %v5601_v2 }
 0x615   : > { %5196 = vmatprep.subr.bf16.mxu1 %v6394_v20 }
 0x616   : > { %5219 = vmatpush3.bf16.msra.mxu0 %v5607_v9  ;;  %v5627_v9 = vld [vmem:[%s6963_s7 + $0x88] sm:$0xff]  }
 0x617   : > { %5173 = vmatmul.mubr.bf16.vlgmr.msra.gmra.mrb[28].mxu1 %v2387_v56  ;;  %5220 = vmatprep.subr.bf16.mxu0 %v6394_v20 }
 0x618   : > { %5212 = vmatprep.mubr.msk.bf16.mxu1 %vm5759_vm11, %v6394_v20  ;;  %5197 = vmatpush3.bf16.msra.mxu1 %v5602_v3  ;;  %v5625_v3 = vld [vmem:[%s6961_s5 + $0x238] sm:$0xff]  }
 0x619   : > { %5198 = vmatprep.subr.bf16.mxu1 %v6394_v20 }
 0x61a   : > { %5221 = vmatpush3.bf16.msra.mxu0 %v5609_v11  ;;  %v5629_v11 = vld [vmem:[%s6963_s7 + $0x98] sm:$0xff]  }
 0x61b   : > { %5222 = vmatprep.subr.bf16.mxu0 %v6394_v20 }
 0x61c   : > { %5199 = vmatpush3.bf16.msra.mxu1 %v5603_v5 }
 0x61d   : > { %5200 = vmatprep.subr.bf16.mxu1 %v6394_v20 }
 0x61e   : > { %5223 = vmatpush3.bf16.msra.mxu0 %v5611_v13  ;;  %v5631_v13 = vld [vmem:[%s6963_s7 + $0xa8] sm:$0xff]  }
 0x61f   : > { %5224 = vmatprep.subr.bf16.mxu0 %v6394_v20 }
 0x620   : > { %5201 = vmatpush3.bf16.msra.mxu1 %v5604_v6 }
 0x621   : > { %5202 = vmatprep.subr.bf16.mxu1 %v6394_v20 }
 0x622   : > { %5225 = vmatpush3.bf16.msra.mxu0 %v5613_v4  ;;  %v5633_v4 = vld [vmem:[%s6963_s7 + $0xb8] sm:$0xff]  }
 0x623   : > { %5226 = vmatprep.subr.bf16.mxu0 %v6394_v20 }
 0x624   : > { %5203 = vmatpush3.bf16.msra.mxu1 %v5606_v8  ;;  %v5626_v8 = vld [vmem:[%s6963_s7 + $0x80] sm:$0xff]  }
 0x625   : > { %5204 = vmatprep.subr.bf16.mxu1 %v6394_v20 }
 0x626   : > { %5227 = vmatpush3.bf16.msra.mxu0 %v5615_v19  ;;  %v5635_v19 = vld [vmem:[%s6961_s5 + $0x288] sm:$0xff]  }
 0x627   : > { %5228 = vmatprep.subr.bf16.mxu0 %v6394_v20 }
 0x628   : > { %5205 = vmatpush3.bf16.msra.mxu1 %v5608_v10  ;;  %v5628_v10 = vld [vmem:[%s6963_s7 + $0x90] sm:$0xff]  }
 0x629   : > { %5206 = vmatprep.subr.bf16.mxu1 %v6394_v20 }
 0x62a   : > { %5229 = vmatpush3.bf16.msra.mxu0 %v5616_v21 }
 0x62b   : > { %5230 = vmatprep.subr.bf16.mxu0 %v6394_v20 }
 0x62c   : > { %5207 = vmatpush3.bf16.msra.mxu1 %v5610_v12  ;;  %v5630_v12 = vld [vmem:[%s6963_s7 + $0xa0] sm:$0xff]  }
 0x62d   : > { %5208 = vmatprep.subr.bf16.mxu1 %v6394_v20 }
 0x62e   : > { %5231 = vmatpush3.bf16.msra.mxu0 %v5618_v16 }
 0x62f   : > { %5256 = vmatprep.subr.bf16.mxu0 %v6394_v20 }
 0x630   : > { %5209 = vmatpush3.bf16.msra.mxu1 %v5612_v15  ;;  %v5632_v15 = vld [vmem:[%s6963_s7 + $0xb0] sm:$0xff]  }
 0x631   : > { %5210 = vmatprep.subr.bf16.mxu1 %v6394_v20 }
 0x634   : > { %5211 = vmatpush3.bf16.msra.mxu1 %v5614_v18  ;;  %v5634_v18 = vld [vmem:[%s6961_s5 + $0x280] sm:$0xff]  }
 0x635   : > { %5236 = vmatprep.subr.bf16.mxu1 %v6394_v20 }
 0x6c4   : > { %v2379_v22 = vpop.f32.mrb[28].mxu0 }
 0x6c5   : > { %v5154_v23 = vpop.f32.mrb[29].mxu0 }
 0x6c6   : > { %v2382_v47 = vpop.f32.mrb[30].mxu0 }
 0x6c7   : > { %v5155_v49 = vpop.f32.mrb[31].mxu0 }
 0x6ca   : > { %v2291_v24 = vpop.f32.mrb[24].mxu1 }
 0x6cb   : > { %v2380_v25 = vadd.f32 %v2379_v22, %v2291_v24  ;;  %v5134_v26 = vpop.f32.mrb[25].mxu1 }
 0x6cc   : > { %v2294_v27 = vpop.f32.mrb[26].mxu1 }
 0x6cd   : > { %v5135_v28 = vpop.f32.mrb[27].mxu1 }
 0x6ce   : > { %v4420_v28 = vld [vmem:[%s6962_s6 + $0x2] ss:$0 sm:$0xff] }
 0x6e4   : > { %v2601_v29 = vpop.f32.mrb[32].mxu0 }
 0x6e5   : > { %v5194_v30 = vpop.f32.mrb[33].mxu0 }
 0x6e6   : > { %v2604_v31 = vpop.f32.mrb[34].mxu0 }
 0x6e7   : > { %v5195_v32 = vpop.f32.mrb[35].mxu0 }
 0x6ea   : > { %v2487_v33 = vpop.f32.mrb[28].mxu1 }
 0x6eb   : > { %v2493_v34 = vadd.f32 %v2487_v33, %v2380_v25  ;;  %v5174_v35 = vpop.f32.mrb[29].mxu1 }
 0x6ec   : > { %v2490_v37 = vpop.f32.mrb[30].mxu1 }
 0x6ed   : > { %v2607_v38 = vadd.f32 %v2601_v29, %v2493_v34  ;;  %v5175_v39 = vpop.f32.mrb[31].mxu1  ;;  %v5637_v37 = vld [vmem:[%s6961_s5 + $0x240] sm:$0xff]  }
 0x6ee   : > { %v5639_v39 = vld [vmem:[%s6961_s5 + $0x248] sm:$0xff]  }
 0x6ef   : > { %v6582_v40 = vadd.f32 %v4347_v36, %v2607_v38  ;;  %v5636_v36 = vld [vmem:[%s6961_s5 + $0x290] sm:$0xff]   ;;  %v5638_v38 = vld [vmem:[%s6961_s5 + $0x298] sm:$0xff]  }
 0x6f1   : > { %v2622_v41 = vmax.f32 %v6582_v40, 0.0 }
 0x6f3   : > { %v2623_v14 = vpack.c.bf16 %v2622_v41, %v2622_v41  ;;  %v5640_v41 = vld [vmem:[%s6961_s5 + $0x2a0] sm:$0xff]  }
 0x6f5   : > { %2624 = vst [vmem:[#allocation3 + $0x8] sm:$0xf] %v2623_v14  ;;  %v5641_v14 = vld [vmem:[%s6961_s5 + $0x250] sm:$0xff]  }
 0x6fc   : > { %v2644_v48 = vld [vmem:[#allocation3 + $0x8] sm:$0xf] }
 0x6fd   : > { %v2626_v50 = vld [vmem:[#allocation3 + $0x8] sm:$0x7]  ;;  %5213 = vmatmul.mubr.bf16.vlgmr.msra.gmra.mrb[32].mxu1 %v2644_v48  ;;  %v5648_v48 = vld [vmem:[%s6961_s5 + $0x270] sm:$0xff]  }
 0x6fe   : > { %v2759_v51 = vshrl.u32 %v2626_v50, 16  ;;  %v2762_v52 = vshll.u32 %v2626_v50, 16  ;;  %5237 = vmatpush3.bf16.msra.mxu1 %v5617_v44  ;;  %5252 = vmatprep.mubr.msk.bf16.mxu1 %vm5759_vm11, %v6394_v20  ;;  %v2856_v63 = vld [vmem:[#allocation3 + $0x8] sm:$0x3e]  ;;  %v5650_v50 = vld [vmem:[%s6961_s5 + $0x278] sm:$0xff]  }
 0x6ff   : > { %5238 = vmatprep.subr.bf16.mxu1 %v6394_v20  ;;  %v2875_v1 = vshrl.u32 %v2856_v63, 16  ;;  %v2878_v2 = vshll.u32 %v2856_v63, 16  ;;  %v5645_v44 = vld [vmem:[%s6961_s5 + $0x260] sm:$0xff]  }
 0x700   : > { %v2761_v55 = vrot.slane %v2759_v51, 6  ;;  %v2764_v56 = vrot.slane %v2762_v52, 7  ;;  %v4437_v51 = vld [vmem:[%s6964_s8 + $0x2] ss:$0 sm:$0xff] }
 0x701   : > { %v2877_v5 = vrot.slane %v2875_v1, 1  ;;  %v2880_v6 = vrot.slane %v2878_v2, 2 }
 0x702   : > { %v2765_v57 = vor.u32 %v2764_v56, %v2761_v55  ;;  %5239 = vmatpush3.bf16.msra.mxu1 %v5619_v53 }
 0x703   : > { %5240 = vmatprep.subr.bf16.mxu1 %v6394_v20  ;;  %v2881_v7 = vor.u32 %v2880_v6, %v2877_v5 }
 0x704   : > { %v2766_v59 = vsel %vm1186_vm12, %v2757_v54, %v2765_v57 }
 0x705   : > { %5233 = vmatmul.mubr.bf16.vlgmr.msra.gmra.mrb[36].mxu0 %v2766_v59 }
 0x706   : > { %5272 = vmatprep.mubr.msk.bf16.mxu0 %vm5759_vm11, %v6394_v20  ;;  %5241 = vmatpush3.bf16.msra.mxu1 %v5620_v58 }
 0x707   : > { %5242 = vmatprep.subr.bf16.mxu1 %v6394_v20  ;;  %5257 = vmatpush3.bf16.msra.mxu0 %v5626_v8 }
 0x708   : > { %5258 = vmatprep.subr.bf16.mxu0 %v6394_v20 }
 0x70a   : > { %5243 = vmatpush3.bf16.msra.mxu1 %v5621_v60  ;;  %v3096_v60 = vld [vmem:[#allocation3] sm:$0x80] }
 0x70b   : > { %5244 = vmatprep.subr.bf16.mxu1 %v6394_v20  ;;  %5259 = vmatpush3.bf16.msra.mxu0 %v5627_v9  ;;  %v3221_v63 = vshrl.u32 %v3096_v60, 16  ;;  %v5652_v9 = vld [vmem:[%s6961_s5 + $0x2d0] sm:$0xff]   ;;  %v5678_v60 = vld [vmem:[%s6965_s9 + $0x78] sm:$0xff]  }
 0x70c   : > { %5260 = vmatprep.subr.bf16.mxu0 %v6394_v20 }
 0x70e   : > { %5245 = vmatpush3.bf16.msra.mxu1 %v5622_v61  ;;  %v3561_v61 = vld [vmem:[#allocation3 + $0x8] sm:$0x10] }
 0x70f   : > { %5246 = vmatprep.subr.bf16.mxu1 %v6394_v20  ;;  %5261 = vmatpush3.bf16.msra.mxu0 %v5628_v10  ;;  %v3562_v2 = vsel %vm3560_vm4, 0, %v3561_v61  ;;  %v5679_v61 = vld [vmem:[%s6965_s9 + $0x28] sm:$0xff]  }
 0x710   : > { %5262 = vmatprep.subr.bf16.mxu0 %v6394_v20 }
 0x712   : > { %5247 = vmatpush3.bf16.msra.mxu1 %v5623_v62  ;;  %v5649_v62 = vld [vmem:[%s6961_s5 + $0x2c0] sm:$0xff]  }
 0x713   : > { %5248 = vmatprep.subr.bf16.mxu1 %v6394_v20  ;;  %5263 = vmatpush3.bf16.msra.mxu0 %v5629_v11  ;;  %v5653_v11 = vld [vmem:[%s6961_s5 + $0x2d8] sm:$0xff]  }
 0x714   : > { %5264 = vmatprep.subr.bf16.mxu0 %v6394_v20 }
 0x716   : > { %5249 = vmatpush3.bf16.msra.mxu1 %v5624_v0 }
 0x717   : > { %5250 = vmatprep.subr.bf16.mxu1 %v6394_v20  ;;  %5265 = vmatpush3.bf16.msra.mxu0 %v5630_v12  ;;  %v5654_v12 = vld [vmem:[%s6961_s5 + $0x2e0] sm:$0xff]  }
 0x718   : > { %5266 = vmatprep.subr.bf16.mxu0 %v6394_v20 }
 0x71a   : > { %5251 = vmatpush3.bf16.msra.mxu1 %v5625_v3  ;;  %v5651_v3 = vld [vmem:[%s6961_s5 + $0x2c8] sm:$0xff]  }
 0x71b   : > { %5276 = vmatprep.subr.bf16.mxu1 %v6394_v20  ;;  %5267 = vmatpush3.bf16.msra.mxu0 %v5631_v13  ;;  %v5655_v13 = vld [vmem:[%s6961_s5 + $0x2e8] sm:$0xff]  }
 0x71c   : > { %5268 = vmatprep.subr.bf16.mxu0 %v6394_v20 }
 0x71d   : > { %5253 = vmatmul.mubr.bf16.vlgmr.msra.gmra.mrb[36].mxu1 %v2881_v7  ;;  %v3223_v7 = vrot.slane %v3221_v63, 7  ;;  %v5682_v63 = vld [vmem:[%s6965_s9 + $0x38] sm:$0xff]  }
 0x71e   : > { %5292 = vmatprep.mubr.msk.bf16.mxu1 %vm5759_vm11, %v6394_v20  ;;  %5277 = vmatpush3.bf16.msra.mxu1 %v5634_v18  ;;  %v5657_v18 = vld [vmem:[%s6961_s5 + $0x2f8] sm:$0xff]  }
 0x71f   : > { %5269 = vmatpush3.bf16.msra.mxu0 %v5632_v15  ;;  %5278 = vmatprep.subr.bf16.mxu1 %v6394_v20  ;;  %v5656_v15 = vld [vmem:[%s6961_s5 + $0x2f0] sm:$0xff]  }
 0x720   : > { %5270 = vmatprep.subr.bf16.mxu0 %v6394_v20 }
 0x722   : > { %5279 = vmatpush3.bf16.msra.mxu1 %v5635_v19 }
 0x723   : > { %5271 = vmatpush3.bf16.msra.mxu0 %v5633_v4  ;;  %5280 = vmatprep.subr.bf16.mxu1 %v6394_v20 }
 0x724   : > { %5296 = vmatprep.subr.bf16.mxu0 %v6394_v20 }
 0x726   : > { %5281 = vmatpush3.bf16.msra.mxu1 %v5636_v36 }
 0x727   : > { %5282 = vmatprep.subr.bf16.mxu1 %v6394_v20 }
 0x72a   : > { %5283 = vmatpush3.bf16.msra.mxu1 %v5638_v38 }
 0x72b   : > { %5284 = vmatprep.subr.bf16.mxu1 %v6394_v20 }
 0x72e   : > { %5285 = vmatpush3.bf16.msra.mxu1 %v5640_v41 }
 0x72f   : > { %5286 = vmatprep.subr.bf16.mxu1 %v6394_v20 }
 0x732   : > { %5287 = vmatpush3.bf16.msra.mxu1 %v5642_v17 }
 0x733   : > { %5288 = vmatprep.subr.bf16.mxu1 %v6394_v20 }
 0x736   : > { %5289 = vmatpush3.bf16.msra.mxu1 %v5644_v43 }
 0x737   : > { %5290 = vmatprep.subr.bf16.mxu1 %v6394_v20 }
 0x73a   : > { %5291 = vmatpush3.bf16.msra.mxu1 %v5646_v45 }
 0x73b   : > { %5316 = vmatprep.subr.bf16.mxu1 %v6394_v20 }
 0x7d0   : > { %v2744_v21 = vpop.f32.mrb[32].mxu1 }
 0x7d1   : > { %v5214_v16 = vpop.f32.mrb[33].mxu1 }
 0x7d2   : > { %v2747_v22 = vpop.f32.mrb[34].mxu1 }
 0x7d3   : > { %v5215_v23 = vpop.f32.mrb[35].mxu1  ;;  %v5658_v22 = vld [vmem:[%s6963_s7 + $0xc0] sm:$0xff]  }
 0x7d4   : > { %v5659_v23 = vld [vmem:[%s6963_s7 + $0xc8] sm:$0xff]  }
 0x7d8   : > { %v2850_v47 = vpop.f32.mrb[36].mxu0 }
 0x7d9   : > { %v2851_v49 = vadd.f32 %v2850_v47, %v2744_v21  ;;  %v5234_v24 = vpop.f32.mrb[37].mxu0  ;;  %v5660_v47 = vld [vmem:[%s6963_s7 + $0xd0] sm:$0xff]  }
 0x7da   : > { %v2853_v25 = vpop.f32.mrb[38].mxu0  ;;  %v5662_v24 = vld [vmem:[%s6963_s7 + $0xe0] sm:$0xff]  }
 0x7db   : > { %v5235_v26 = vpop.f32.mrb[39].mxu0  ;;  %v5663_v25 = vld [vmem:[%s6963_s7 + $0xe8] sm:$0xff]  }
 0x7dc   : > { %v5664_v26 = vld [vmem:[%s6963_s7 + $0xf0] sm:$0xff]  }
 0x7f0   : > { %v2965_v27 = vpop.f32.mrb[36].mxu1 }
 0x7f1   : > { %v2971_v29 = vadd.f32 %v2965_v27, %v2851_v49  ;;  %v5254_v30 = vpop.f32.mrb[37].mxu1  ;;  %v5661_v49 = vld [vmem:[%s6963_s7 + $0xd8] sm:$0xff]  }
 0x7f2   : > { %v2968_v31 = vpop.f32.mrb[38].mxu1  ;;  %v5665_v27 = vld [vmem:[%s6963_s7 + $0xf8] sm:$0xff]   ;;  %v5668_v30 = vld [vmem:[%s6965_s9 + $0x50] sm:$0xff]  }
 0x7f3   : > { %v2977_v32 = vadd.f32 %v4420_v28, %v2971_v29  ;;  %v5255_v33 = vpop.f32.mrb[39].mxu1  ;;  %v5666_v28 = vld [vmem:[%s6965_s9 + $0x40] sm:$0xff]   ;;  %v5667_v29 = vld [vmem:[%s6965_s9 + $0x48] sm:$0xff]  }
 0x7f5   : > { %v2978_v34 = vmax.f32 %v2977_v32, 0.0 }
 0x7f7   : > { %v2979_v35 = vpack.c.bf16 %v2978_v34, %v2978_v34 }
 0x7f9   : > { %5273 = vmatmul.mubr.bf16.vlgmr.msra.gmra.mrb[40].mxu0 %v2979_v35 }
 0x7fa   : > { %5312 = vmatprep.mubr.msk.bf16.mxu0 %vm5759_vm11, %v6394_v20  ;;  %5297 = vmatpush3.bf16.msra.mxu0 %v5637_v37 }
 0x7fb   : > { %5298 = vmatprep.subr.bf16.mxu0 %v6394_v20 }
 0x7fe   : > { %5299 = vmatpush3.bf16.msra.mxu0 %v5639_v39 }
 0x7ff   : > { %5300 = vmatprep.subr.bf16.mxu0 %v6394_v20 }
 0x802   : > { %5301 = vmatpush3.bf16.msra.mxu0 %v5641_v14  ;;  %v4518_v14 = vld [vmem:[%s6962_s6 + $0x3] ss:$0 sm:$0xff] }
 0x803   : > { %5302 = vmatprep.subr.bf16.mxu0 %v6394_v20 }
 0x806   : > { %5303 = vmatpush3.bf16.msra.mxu0 %v5643_v42 }
 0x807   : > { %5304 = vmatprep.subr.bf16.mxu0 %v6394_v20 }
 0x80a   : > { %5305 = vmatpush3.bf16.msra.mxu0 %v5645_v44 }
 0x80b   : > { %5306 = vmatprep.subr.bf16.mxu0 %v6394_v20 }
 0x80e   : > { %5307 = vmatpush3.bf16.msra.mxu0 %v5647_v46 }
 0x80f   : > { %5308 = vmatprep.subr.bf16.mxu0 %v6394_v20 }
 0x812   : > { %5309 = vmatpush3.bf16.msra.mxu0 %v5648_v48  ;;  %v5669_v48 = vld [vmem:[%s6965_s9] sm:$0xff]  }
 0x813   : > { %5310 = vmatprep.subr.bf16.mxu0 %v6394_v20 }
 0x816   : > { %5311 = vmatpush3.bf16.msra.mxu0 %v5650_v50 }
 0x817   : > { %5336 = vmatprep.subr.bf16.mxu0 %v6394_v20 }
 0x8cc   : > { %v3084_v52 = vpop.f32.mrb[40].mxu0 }
 0x8cd   : > { %v3085_v53 = vadd.f32 %v4437_v51, %v3084_v52  ;;  %v5274_v54 = vpop.f32.mrb[41].mxu0  ;;  %v5670_v51 = vld [vmem:[%s6965_s9 + $0x58] sm:$0xff]   ;;  %v5671_v52 = vld [vmem:[%s6965_s9 + $0x8] sm:$0xff]  }
 0x8ce   : > { %v3087_v55 = vpop.f32.mrb[42].mxu0  ;;  %v5673_v54 = vld [vmem:[%s6965_s9 + $0x10] sm:$0xff]  }
 0x8cf   : > { %v6729_v56 = vadd.f32 %v3085_v53, %v6582_v40  ;;  %v5275_v57 = vpop.f32.mrb[43].mxu0  ;;  %v5672_v53 = vld [vmem:[%s6965_s9 + $0x60] sm:$0xff]   ;;  %v5674_v55 = vld [vmem:[%s6965_s9 + $0x68] sm:$0xff]  }
 0x8d0   : > { %v5675_v57 = vld [vmem:[%s6965_s9 + $0x18] sm:$0xff]  }
 0x8d1   : > { %v3093_v58 = vmax.f32 %v6729_v56, 0.0 }
 0x8d3   : > { %v3094_v59 = vpack.c.bf16 %v3093_v58, %v3093_v58  ;;  %v5676_v58 = vld [vmem:[%s6965_s9 + $0x70] sm:$0xff]  }
 0x8d5   : > { %3095 = vst [vmem:[#allocation3 + $0x8] sm:$0xf] %v3094_v59  ;;  %v5677_v59 = vld [vmem:[%s6965_s9 + $0x20] sm:$0xff]  }
 0x8dc   : > { %v3097_v0 = vld [vmem:[#allocation3 + $0x8] sm:$0xf] }
 0x8dd   : > { %v3321_v1 = vld [vmem:[#allocation3 + $0x8] sm:$0x1f]  ;;  %5293 = vmatmul.mubr.bf16.vlgmr.msra.gmra.mrb[40].mxu1 %v3097_v0  ;;  %v3225_v40 = vshrl.u32 %v3097_v0, 16  ;;  %v3228_v6 = vshll.u32 %v3097_v0, 16 }
 0x8de   : > { %3563 = vst [vmem:[#allocation3 + $0x8] sm:$0x10] %v3562_v2  ;;  %5317 = vmatpush3.bf16.msra.mxu1 %v5649_v62  ;;  %5332 = vmatprep.mubr.msk.bf16.mxu1 %vm5759_vm11, %v6394_v20  ;;  %v3342_v4 = vshll.u32 %v3321_v1, 16  ;;  %v3340_v21 = vshrl.u32 %v3321_v1, 16  ;;  %v5680_v62 = vld [vmem:[%s6965_s9 + $0x30] sm:$0xff]  }
 0x8df   : > { %v3227_v5 = vrot.slane %v3225_v40, 7  ;;  %5318 = vmatprep.subr.bf16.mxu1 %v6394_v20  ;;  %v4535_v0 = vld [vmem:[%s6964_s8 + $0x3] ss:$0 sm:$0xff] }
 0x8e0   : > { %v3344_v19 = vrot.slane %v3342_v4, 1 }
 0x8e1   : > { %v3230_v8 = vor.u32 %v3228_v6, %v3227_v5 }
 0x8e2   : > { %5319 = vmatpush3.bf16.msra.mxu1 %v5651_v3  ;;  %v3345_v16 = vor.u32 %v3344_v19, %v3340_v21  ;;  %v5684_v19 = vld [vmem:[%s6965_s9 + $0x90] sm:$0xff]  }
 0x8e3   : > { %v3231_v10 = vsel %vm1812_vm0, %v3223_v7, %v3230_v8  ;;  %5320 = vmatprep.subr.bf16.mxu1 %v6394_v20  ;;  %v3564_v8 = vld [vmem:[#allocation3] sm:$0x80] }
 0x8e4   : > { %5313 = vmatmul.mubr.bf16.vlgmr.msra.gmra.mrb[44].mxu0 %v3231_v10  ;;  %v3688_v10 = vshrl.u32 %v3564_v8, 16 }
 0x8e5   : > { %5352 = vmatprep.mubr.msk.bf16.mxu0 %vm5759_vm11, %v6394_v20  ;;  %5337 = vmatpush3.bf16.msra.mxu0 %v5658_v22  ;;  %v5686_v22 = vld [vmem:[%s6965_s9 + $0xa0] sm:$0xff]  }
 0x8e6   : > { %5321 = vmatpush3.bf16.msra.mxu1 %v5652_v9  ;;  %5338 = vmatprep.subr.bf16.mxu0 %v6394_v20  ;;  %v5681_v9 = vld [vmem:[%s6965_s9 + $0x80] sm:$0xff]   ;;  %v3690_v4 = vrot.slane %v3688_v10, 7 }
 0x8e7   : > { %5322 = vmatprep.subr.bf16.mxu1 %v6394_v20 }
 0x8e9   : > { %5339 = vmatpush3.bf16.msra.mxu0 %v5659_v23  ;;  %v5692_v23 = vld [vmem:[#allocation2] sm:$0xff] }
 0x8ea   : > { %5323 = vmatpush3.bf16.msra.mxu1 %v5653_v11  ;;  %5340 = vmatprep.subr.bf16.mxu0 %v6394_v20 }
 0x8eb   : > { %5324 = vmatprep.subr.bf16.mxu1 %v6394_v20 }
 0x8ed   : > { %5341 = vmatpush3.bf16.msra.mxu0 %v5660_v47  ;;  %v5687_v47 = vld [vmem:[%s6965_s9 + $0xa8] sm:$0xff]  }
 0x8ee   : > { %5325 = vmatpush3.bf16.msra.mxu1 %v5654_v12  ;;  %5342 = vmatprep.subr.bf16.mxu0 %v6394_v20 }
 0x8ef   : > { %5326 = vmatprep.subr.bf16.mxu1 %v6394_v20 }
 0x8f1   : > { %5343 = vmatpush3.bf16.msra.mxu0 %v5661_v49 }
 0x8f2   : > { %5327 = vmatpush3.bf16.msra.mxu1 %v5655_v13  ;;  %5344 = vmatprep.subr.bf16.mxu0 %v6394_v20  ;;  %v5683_v13 = vld [vmem:[%s6965_s9 + $0x88] sm:$0xff]  }
 0x8f3   : > { %5328 = vmatprep.subr.bf16.mxu1 %v6394_v20 }
 0x8f5   : > { %5345 = vmatpush3.bf16.msra.mxu0 %v5662_v24  ;;  %v5688_v24 = vld [vmem:[%s6965_s9 + $0xb0] sm:$0xff]  }
 0x8f6   : > { %5329 = vmatpush3.bf16.msra.mxu1 %v5656_v15  ;;  %5346 = vmatprep.subr.bf16.mxu0 %v6394_v20 }
 0x8f7   : > { %5330 = vmatprep.subr.bf16.mxu1 %v6394_v20 }
 0x8f9   : > { %5347 = vmatpush3.bf16.msra.mxu0 %v5663_v25  ;;  %v5689_v25 = vld [vmem:[%s6965_s9 + $0xb8] sm:$0xff]  }
 0x8fa   : > { %5331 = vmatpush3.bf16.msra.mxu1 %v5657_v18  ;;  %5348 = vmatprep.subr.bf16.mxu0 %v6394_v20 }
 0x8fb   : > { %5356 = vmatprep.subr.bf16.mxu1 %v6394_v20 }
 0x8fd   : > { %5333 = vmatmul.mubr.bf16.vlgmr.msra.gmra.mrb[44].mxu1 %v3345_v16  ;;  %5349 = vmatpush3.bf16.msra.mxu0 %v5664_v26  ;;  %v5685_v16 = vld [vmem:[%s6965_s9 + $0x98] sm:$0xff]  }
 0x8fe   : > { %5372 = vmatprep.mubr.msk.bf16.mxu1 %vm5759_vm11, %v6394_v20  ;;  %5350 = vmatprep.subr.bf16.mxu0 %v6394_v20 }
 0x8ff   : > { %5357 = vmatpush3.bf16.msra.mxu1 %v5666_v28 }
 0x900   : > { %5358 = vmatprep.subr.bf16.mxu1 %v6394_v20 }
 0x901   : > { %5351 = vmatpush3.bf16.msra.mxu0 %v5665_v27 }
 0x902   : > { %5376 = vmatprep.subr.bf16.mxu0 %v6394_v20 }
 0x903   : > { %5359 = vmatpush3.bf16.msra.mxu1 %v5667_v29 }
 0x904   : > { %5360 = vmatprep.subr.bf16.mxu1 %v6394_v20 }
 0x907   : > { %5361 = vmatpush3.bf16.msra.mxu1 %v5668_v30 }
 0x908   : > { %5362 = vmatprep.subr.bf16.mxu1 %v6394_v20 }
 0x90b   : > { %5363 = vmatpush3.bf16.msra.mxu1 %v5670_v51 }
 0x90c   : > { %5364 = vmatprep.subr.bf16.mxu1 %v6394_v20 }
 0x90f   : > { %5365 = vmatpush3.bf16.msra.mxu1 %v5672_v53 }
 0x910   : > { %5366 = vmatprep.subr.bf16.mxu1 %v6394_v20 }
 0x913   : > { %5367 = vmatpush3.bf16.msra.mxu1 %v5674_v55 }
 0x914   : > { %5368 = vmatprep.subr.bf16.mxu1 %v6394_v20 }
 0x917   : > { %5369 = vmatpush3.bf16.msra.mxu1 %v5676_v58 }
 0x918   : > { %5370 = vmatprep.subr.bf16.mxu1 %v6394_v20 }
 0x91b   : > { %5371 = vmatpush3.bf16.msra.mxu1 %v5678_v60 }
 0x91c   : > { %5396 = vmatprep.subr.bf16.mxu1 %v6394_v20 }
 0x9b0   : > { %v3214_v31 = vpop.f32.mrb[40].mxu1 }
 0x9b1   : > { %v5294_v32 = vpop.f32.mrb[41].mxu1 }
 0x9b2   : > { %v3217_v33 = vpop.f32.mrb[42].mxu1 }
 0x9b3   : > { %v5295_v34 = vpop.f32.mrb[43].mxu1 }
 0x9b7   : > { %v3315_v35 = vpop.f32.mrb[44].mxu0 }
 0x9b8   : > { %v3316_v36 = vadd.f32 %v3315_v35, %v3214_v31  ;;  %v5314_v37 = vpop.f32.mrb[45].mxu0 }
 0x9b9   : > { %v3318_v38 = vpop.f32.mrb[46].mxu0 }
 0x9ba   : > { %v5315_v39 = vpop.f32.mrb[47].mxu0 }
 0x9bb   : > { %v4600_v39 = vld [vmem:[%s6966_s10] ss:$0 sm:$0xff] }
 0x9d0   : > { %v3429_v41 = vpop.f32.mrb[44].mxu1 }
 0x9d1   : > { %v3435_v17 = vadd.f32 %v3429_v41, %v3316_v36  ;;  %v5334_v42 = vpop.f32.mrb[45].mxu1 }
 0x9d2   : > { %v3432_v43 = vpop.f32.mrb[46].mxu1 }
 0x9d3   : > { %v3441_v44 = vadd.f32 %v4518_v14, %v3435_v17  ;;  %v5335_v45 = vpop.f32.mrb[47].mxu1 }
 0x9d5   : > { %v3442_v46 = vmax.f32 %v3441_v44, 0.0 }
 0x9d7   : > { %v3443_v50 = vpack.c.bf16 %v3442_v46, %v3442_v46 }
 0x9d9   : > { %5353 = vmatmul.mubr.bf16.vlgmr.msra.gmra.mrb[48].mxu0 %v3443_v50 }
 0x9da   : > { %5377 = vmatpush3.bf16.msra.mxu0 %v5669_v48  ;;  %5392 = vmatprep.mubr.msk.bf16.mxu0 %vm5759_vm11, %v6394_v20 }
 0x9db   : > { %5378 = vmatprep.subr.bf16.mxu0 %v6394_v20 }
 0x9de   : > { %5379 = vmatpush3.bf16.msra.mxu0 %v5671_v52 }
 0x9df   : > { %5380 = vmatprep.subr.bf16.mxu0 %v6394_v20 }
 0x9e2   : > { %5381 = vmatpush3.bf16.msra.mxu0 %v5673_v54 }
 0x9e3   : > { %5382 = vmatprep.subr.bf16.mxu0 %v6394_v20 }
 0x9e6   : > { %5383 = vmatpush3.bf16.msra.mxu0 %v5675_v57 }
 0x9e7   : > { %5384 = vmatprep.subr.bf16.mxu0 %v6394_v20 }
 0x9ea   : > { %5385 = vmatpush3.bf16.msra.mxu0 %v5677_v59 }
 0x9eb   : > { %5386 = vmatprep.subr.bf16.mxu0 %v6394_v20 }
 0x9ee   : > { %5387 = vmatpush3.bf16.msra.mxu0 %v5679_v61 }
 0x9ef   : > { %5388 = vmatprep.subr.bf16.mxu0 %v6394_v20 }
 0x9f2   : > { %5389 = vmatpush3.bf16.msra.mxu0 %v5680_v62 }
 0x9f3   : > { %5390 = vmatprep.subr.bf16.mxu0 %v6394_v20 }
 0x9f6   : > { %5391 = vmatpush3.bf16.msra.mxu0 %v5682_v63 }
 0xaac   : > { %v3548_v1 = vpop.f32.mrb[48].mxu0 }
 0xaad   : > { %v3549_v2 = vadd.f32 %v4535_v0, %v3548_v1  ;;  %v5354_v40 = vpop.f32.mrb[49].mxu0 }
 0xaae   : > { %v3551_v3 = vpop.f32.mrb[50].mxu0 }
 0xaaf   : > { %v3554_v5 = vadd.f32 %v3549_v2, %v6729_v56  ;;  %v5355_v6 = vpop.f32.mrb[51].mxu0 }
 0xab1   : > { %3555 = vst [vmem:[#allocation2 + $0x10] sm:$0xff] %v3554_v5  ;;  %v3557_v7 = vpack.c.bf16 %v3554_v5, %v3554_v5 }
 0xab3   : > { %3558 = vst [vmem:[#allocation3 + $0x8] sm:$0xf] %v3557_v7 }
 0xaba   : > { %v3565_v11 = vld [vmem:[#allocation3 + $0x8] sm:$0xf] }
 0xabb   : > { %5373 = vmatmul.mubr.bf16.vlgmr.msra.gmra.mrb[48].mxu1 %v3565_v11  ;;  %v3692_v12 = vshrl.u32 %v3565_v11, 16  ;;  %v3695_v15 = vshll.u32 %v3565_v11, 16  ;;  %v3788_v49 = vld [vmem:[#allocation3 + $0x8] sm:$0x1f] }
 0xabc   : > { %5397 = vmatpush3.bf16.msra.mxu1 %v5681_v9  ;;  %5412 = vmatprep.mubr.msk.bf16.mxu1 %vm5759_vm11, %v6394_v20  ;;  %v3807_v27 = vshrl.u32 %v3788_v49, 16 }
 0xabd   : > { %v3694_v56 = vrot.slane %v3692_v12, 7  ;;  %5398 = vmatprep.subr.bf16.mxu1 %v6394_v20 }
 0xabf   : > { %v3697_v18 = vor.u32 %v3695_v15, %v3694_v56 }
 0xac0   : > { %5399 = vmatpush3.bf16.msra.mxu1 %v5683_v13 }
 0xac1   : > { %v3698_v21 = vsel %vm1812_vm0, %v3690_v4, %v3697_v18  ;;  %5400 = vmatprep.subr.bf16.mxu1 %v6394_v20 }
 0xac2   : > { %5393 = vmatmul.mubr.bf16.vlgmr.msra.gmra.mrb[52].mxu0 %v3698_v21 }
 0xac4   : > { %5401 = vmatpush3.bf16.msra.mxu1 %v5684_v19 }
 0xac5   : > { %5402 = vmatprep.subr.bf16.mxu1 %v6394_v20  ;;  %v3809_v20 = vshll.u32 %v3788_v49, 16 }
 0xac7   : > { %v3811_v26 = vrot.slane %v3809_v20, 1 }
 0xac8   : > { %5403 = vmatpush3.bf16.msra.mxu1 %v5685_v16 }
 0xac9   : > { %5404 = vmatprep.subr.bf16.mxu1 %v5692_v23  ;;  %v3812_v28 = vor.u32 %v3811_v26, %v3807_v27 }
 0xacc   : > { %5405 = vmatpush3.bf16.msra.mxu1 %v5686_v22 }
 0xacd   : > { %5406 = vmatprep.subr.bf16.mxu1 %v5692_v23 }
 0xad0   : > { %5407 = vmatpush3.bf16.msra.mxu1 %v5687_v47 }
 0xad1   : > { %5408 = vmatprep.subr.bf16.mxu1 %v5692_v23 }
 0xad4   : > { %5409 = vmatpush3.bf16.msra.mxu1 %v5688_v24 }
 0xad5   : > { %5410 = vmatprep.subr.bf16.mxu1 %v5692_v23 }
 0xad8   : > { %5411 = vmatpush3.bf16.msra.mxu1 %v5689_v25 }
 0xadb   : > { %5413 = vmatmul.mubr.bf16.vlgmr.msra.gmra.mrb[52].mxu1 %v3812_v28 }
 0xb8e   : > { %v3681_v29 = vpop.f32.mrb[48].mxu1 }
 0xb8f   : > { %v5374_v30 = vpop.f32.mrb[49].mxu1 }
 0xb90   : > { %v3684_v31 = vpop.f32.mrb[50].mxu1 }
 0xb91   : > { %v5375_v32 = vpop.f32.mrb[51].mxu1 }
 0xb95   : > { %v3782_v33 = vpop.f32.mrb[52].mxu0 }
 0xb96   : > { %v3783_v34 = vadd.f32 %v3782_v33, %v3681_v29  ;;  %v5394_v35 = vpop.f32.mrb[53].mxu0 }
 0xb97   : > { %v3785_v36 = vpop.f32.mrb[54].mxu0 }
 0xb98   : > { %v5395_v37 = vpop.f32.mrb[55].mxu0 }
 0xbae   : > { %v3896_v38 = vpop.f32.mrb[52].mxu1 }
 0xbaf   : > { %v3902_v41 = vadd.f32 %v3896_v38, %v3783_v34  ;;  %v5414_v14 = vpop.f32.mrb[53].mxu1 }
 0xbb0   : > { %v3899_v17 = vpop.f32.mrb[54].mxu1 }
 0xbb1   : > { %v3910_v42 = vadd.f32 %v4600_v39, %v3902_v41  ;;  %v5415_v43 = vpop.f32.mrb[55].mxu1 }
 0xbb3   : > { %3911 = vst [vmem:[%s379_s29] sm:$0xff] %v3910_v42 }
 0xbb4   : > { %5706 = shalt.err (!%p5703_p3)
}
 0xbb5   : > { %s5707_s15 = scalar_lea.hbm %s6914_s14, 128  ;;  %s5711_s12 = scalar_lea.hbm %s6967_s11, 512 }
 0xbb6   : > { %p5708_p4 = scmp.ne.s32.totalorder %s6914_s14, %s5707_s15  ;;  %p5712_p9 = scmp.lt.u32.totalorder %s6914_s14, %s6967_s11 }
 0xbb7   : > { %p5713_p10 = scmp.lt.u32.totalorder %s5711_s12, %s5707_s15  ;;  %p5715_p12 = scmp.lt.u32.totalorder %s5707_s15, %s6914_s14 }
 0xbb8   : > { %p5709_p7 = pnand %p5708_p4, %p5859_p5 }
 0xbb9   : > { %p5714_p11 = por %p5713_p10, %p5712_p9 }
 0xbba   : > { %p5710_p8 = pneg %p5709_p7 }
 0xbbb   : > { %p5716_p13 = por %p5715_p12, %p5714_p11 }
 0xbbd   : > { %p5717_p0 = pnand %p5716_p13, %p5710_p8 }
 0xbbf   : > { %5720 = shalt.err (!%p5717_p0)
}
 0xbc0   : > { %5427 = dma.vmem_to_hbm [thread:$0]  (%p5859_p5), %s6916_s30, 128, %s6914_s14, %s3913_s22  }
 0xbc1 PF: > { %p5433_p1 = scmp.ge.s32.totalorder %s5755_s20, 2  ;;  %s3938_s0 = sand.u32 1, %s5743_s17  }
 0xbc2   : > { %s3939_s21 = scalar_lea.sflag [#allocation6], %s3938_s0 }
 0xbc3   : > { %p5430_p2 = pnand %p5433_p1, %p5863_p6 }
 0xbc5   : > { %5738 = dma.done.wait (!%p5430_p2), %s3939_s21, 128  }
 0xbc6   : > { %5740 = vsyncadd (!%p5430_p2), %s3939_s21, 4294967168  ;;  %p21_p3 = scmp.ge.s32.totalorder %s5846_s23, 6   ;;  %s6974_s17 = smov %s5747_s18 }
 0xbc7   : > { %s6975_s18 = smov %s5751_s19  ;;  %s6976_s19 = smov %s5857_s26 }
 0xbc8   : > { %s6977_s20 = smov %s5846_s23  ;;  %23 = sbr.rel (!%p21_p3) target bundleno = 5 (0x5), region = 130 }
 0xbcf   :  { %3944 = vsyncpa [#allocation6], 1 }
 0xbd0   :  { %3946 = vsyncpa [#allocation6 + $0x1], 1 }

</bundles_post_ra>
